<compile_context>
chip_gen: v6e
topology: v6e:2x2x1
jax: 0.10.0
libtpu: 0.0.40
codegen_flags: <defaults>
</compile_context>

<pallas_src>
import functools

import jax
import jax.numpy as jnp
from jax import lax
from jax.experimental import pallas as pl
from jax.experimental.pallas import tpu as pltpu

# --- model dims (synthetic "args") -----------------------------------------
T = 8                        # sequence length (rows of state[0] / state[1])
JOBS_DIM = 8                 # args.jobs_embedding_dim
MACH_DIM = 8                 # args.machine_embedding_dim
IN_DIM = JOBS_DIM + MACH_DIM
EMB = 32                     # args.embedding_dim
USE_TANH = 1                 # args.use_tanh -> Tanh activation

# instances per grid program (lane axis). 128 fills the v5e MXU M-tile and the
# 128-lane vreg; use 256 on v6e/v7x for an even fuller MXU tile.
B_BLK = 128


def _act(x):
    return jnp.tanh(x) if USE_TANH else jnp.maximum(x, 0.0)


def _sigmoid(x):
    # sigmoid(x) = 0.5*(tanh(x/2) + 1): one EUP push instead of exp + add + div.
    return 0.5 * jnp.tanh(0.5 * x) + 0.5


# ---------------------------------------------------------------------------
# Kernel: one grid program == one block of b_blk (jobs, mach) instances.
# All tensors are in "transposed" layout: (features, batch-on-lanes).
# ---------------------------------------------------------------------------
def critic_lstm_kernel(
    x_ref,                                    # (T, IN_DIM, b_blk) fused jobs|mach
    wf_ref, bf_ref,                           # (4*EMB, IN_DIM), (4*EMB, 1) fused input proj
    whh_ref,                                  # (4*EMB, EMB) recurrent weights
    wa1_ref, ba1_ref, wa2_ref, ba2_ref,       # head a1, a2: (EMB, EMB) / (EMB, 1)
    wa3_ref, ba3_ref,                         # head a3:    (1, EMB)   / (1, 1)
    out_ref,                                  # (T, b_blk) lane-dense softmax probs
    h_scratch,                                # VMEM (EMB, T*b_blk)
    *, b_blk,
):
    wf = wf_ref[...]
    bf = bf_ref[...]
    whh = whh_ref[...]

    h = jnp.zeros((EMB, b_blk), jnp.float32)
    c = jnp.zeros((EMB, b_blk), jnp.float32)

    # ---- sequential LSTM, fully unrolled (T=8) ------------------------------
    # state stays in vregs; per-step hidden states stream to VMEM scratch
    # (the only store inside the loop, off the serial dependence chain).
    for t in range(T):
        gates = (jnp.dot(wf, x_ref[t], preferred_element_type=jnp.float32)
                 + jnp.dot(whh, h, preferred_element_type=jnp.float32)
                 + bf)                                        # (4*EMB, b_blk)
        # gate order i, f, g, o; sublane slices at multiples of 8 are free.
        i_g = _sigmoid(gates[0 * EMB:1 * EMB, :])
        f_g = _sigmoid(gates[1 * EMB:2 * EMB, :])
        g_g = jnp.tanh(gates[2 * EMB:3 * EMB, :])
        o_g = _sigmoid(gates[3 * EMB:4 * EMB, :])
        c = f_g * c + i_g * g_g
        h = o_g * jnp.tanh(c)
        h_scratch[:, t * b_blk:(t + 1) * b_blk] = h

    # ---- MLP head, batched over all T*b_blk columns: a3(act(a2(act(a1(h))))) -
    hs = h_scratch[...]                                       # (EMB, T*b_blk)
    z1 = _act(jnp.dot(wa1_ref[...], hs,
                      preferred_element_type=jnp.float32) + ba1_ref[...])
    z2 = _act(jnp.dot(wa2_ref[...], z1,
                      preferred_element_type=jnp.float32) + ba2_ref[...])

    # final (1, EMB) projection per time step -> lane-dense (T, b_blk) logits
    wa3 = wa3_ref[...]
    rows = [jnp.dot(wa3, z2[:, t * b_blk:(t + 1) * b_blk],
                    preferred_element_type=jnp.float32) for t in range(T)]
    logits = jnp.concatenate(rows, axis=0) + ba3_ref[...]     # (T, b_blk)

    # ---- softmax over the sequence axis (dim=1 of PyTorch's (1, T, 1)) ------
    m = jnp.max(logits, axis=0, keepdims=True)
    e = jnp.exp(logits - m)
    s = jnp.sum(e, axis=0, keepdims=True)
    r = pl.reciprocal(s, approx=True)
    r = r * (2.0 - s * r)            # one Newton step: EUP-seeded, f32-accurate
    out_ref[...] = e * r


# ---------------------------------------------------------------------------
# Wrapper: block the batch dim into the kernel (lane-dense), pad the tail.
# ---------------------------------------------------------------------------
def critic_lstm_forward(jobs, mach, fused_params, b_blk=B_BLK):
    B = jobs.shape[0]
    wf, bf, whh, wa1, ba1, wa2, ba2, wa3, ba3 = fused_params

    # single fused input stream: (B, T, 16)
    x = jnp.concatenate([jobs, mach], axis=-1)

    nb = (B + b_blk - 1) // b_blk
    b_pad = nb * b_blk
    if b_pad != B:
        x = jnp.pad(x, ((0, b_pad - B), (0, 0), (0, 0)))      # zero-pad tail block
    # lane-dense transposed layout: (nb, T, IN_DIM, b_blk) — batch on lanes
    x_t = x.reshape(nb, b_blk, T, IN_DIM).transpose(0, 2, 3, 1)

    def w_spec(w):
        nz = (0,) * w.ndim
        return pl.BlockSpec(w.shape, lambda g, _nz=nz: _nz)   # grid-invariant block

    out = pl.pallas_call(
        functools.partial(critic_lstm_kernel, b_blk=b_blk),
        out_shape=jax.ShapeDtypeStruct((nb, T, b_blk), jnp.float32),
        grid=(nb,),
        in_specs=[
            pl.BlockSpec((None, T, IN_DIM, b_blk), lambda g: (g, 0, 0, 0)),
            w_spec(wf), w_spec(bf), w_spec(whh),
            w_spec(wa1), w_spec(ba1), w_spec(wa2), w_spec(ba2),
            w_spec(wa3), w_spec(ba3),
        ],
        out_specs=pl.BlockSpec((None, T, b_blk), lambda g: (g, 0, 0)),
        scratch_shapes=[pltpu.VMEM((EMB, T * b_blk), jnp.float32)],
        compiler_params=pltpu.CompilerParams(
            dimension_semantics=("parallel",)),
    )(x_t, wf, bf, whh, wa1, ba1, wa2, ba2, wa3, ba3)

    # (nb, T, b_blk) -> (B, 1, T, 1), matching PyTorch's per-instance (1, T, 1)
    res = out.transpose(0, 2, 1).reshape(b_pad, T)[:B]
    return res.reshape(B, 1, T, 1)


# ---------------------------------------------------------------------------
# Parameter init (PyTorch orientation: (out_features, in_features)) + fusion.
# ---------------------------------------------------------------------------
def init_params(key):
    """PyTorch-style uniform(-1/sqrt(fan_in), 1/sqrt(fan_in)) init."""
    def lin(k, fan_in, fan_out):
        k1, k2 = jax.random.split(k)
        bound = 1.0 / jnp.sqrt(fan_in)
        w = jax.random.uniform(k1, (fan_out, fan_in), jnp.float32, -bound, bound)
        b = jax.random.uniform(k2, (fan_out,), jnp.float32, -bound, bound)
        return w, b

    keys = jax.random.split(key, 6)
    Wj, bj = lin(keys[0], JOBS_DIM, EMB)              # jobsEmbedding
    Wm, bm = lin(keys[1], MACH_DIM, EMB)              # machineEmbedding
    # LSTM: weight_ih (4H, 2E) / weight_hh (4H, H); gate order i, f, g, o
    bound = 1.0 / jnp.sqrt(EMB)
    k = jax.random.split(keys[2], 4)
    Wih = jax.random.uniform(k[0], (4 * EMB, 2 * EMB), jnp.float32, -bound, bound)
    Whh = jax.random.uniform(k[1], (4 * EMB, EMB), jnp.float32, -bound, bound)
    bih = jax.random.uniform(k[2], (4 * EMB,), jnp.float32, -bound, bound)
    bhh = jax.random.uniform(k[3], (4 * EMB,), jnp.float32, -bound, bound)
    Wa1, ba1 = lin(keys[3], EMB, EMB)                 # layers[0]['a1']
    Wa2, ba2 = lin(keys[4], EMB, EMB)                 # layers[0]['a2']
    Wa3, ba3 = lin(keys[5], EMB, 1)                   # layers[0]['a3']
    return (Wj, bj, Wm, bm, Wih, Whh, bih, bhh, Wa1, ba1, Wa2, ba2, Wa3, ba3)


def fuse_params(params):
    """Fold the embedding Linears into the LSTM input projection (valid: no
    nonlinearity between them in the reference) and shape biases as columns."""
    (Wj, bj, Wm, bm, Wih, Whh, bih, bhh, Wa1, ba1, Wa2, ba2, Wa3, ba3) = params
    Wih_j = Wih[:, :EMB]                             # cols consuming jobs embedding
    Wih_m = Wih[:, EMB:]                             # cols consuming machine embedding
    Wf = jnp.concatenate([Wih_j @ Wj, Wih_m @ Wm], axis=1)     # (4*EMB, 16)
    bf = Wih_j @ bj + Wih_m @ bm + bih + bhh                   # (4*EMB,)
    return (Wf, bf[:, None], Whh,
            Wa1, ba1[:, None], Wa2, ba2[:, None], Wa3, ba3[:, None])


# ---------------------------------------------------------------------------
# Pure-JAX reference (unfused) for correctness checking.
# ---------------------------------------------------------------------------
def critic_lstm_reference(jobs, mach, params):
    (Wj, bj, Wm, bm, Wih, Whh, bih, bhh, Wa1, ba1, Wa2, ba2, Wa3, ba3) = params

    def one(jb, mc):
        x = jnp.concatenate([jb @ Wj.T + bj, mc @ Wm.T + bm], axis=1)   # (T, 2E)

        def step(carry, xt):
            h, c = carry
            g = Wih @ xt + Whh @ h + bih + bhh
            i_g = jax.nn.sigmoid(g[0 * EMB:1 * EMB])
            f_g = jax.nn.sigmoid(g[1 * EMB:2 * EMB])
            g_g = jnp.tanh(g[2 * EMB:3 * EMB])
            o_g = jax.nn.sigmoid(g[3 * EMB:4 * EMB])
            c = f_g * c + i_g * g_g
            h = o_g * jnp.tanh(c)
            return (h, c), h

        init = (jnp.zeros((EMB,), jnp.float32), jnp.zeros((EMB,), jnp.float32))
        _, hs = lax.scan(step, init, x)                                 # (T, EMB)
        z1 = _act(hs @ Wa1.T + ba1)
        z2 = _act(z1 @ Wa2.T + ba2)
        logits = z2 @ Wa3.T + ba3                                       # (T, 1)
        return jax.nn.softmax(logits, axis=0)

    return jax.vmap(one)(jobs, mach)                                    # (B, T, 1)


if __name__ == "__main__":
    key = jax.random.PRNGKey(0)
    k_jobs, k_mach, k_par = jax.random.split(key, 3)

    B = 2
    jobs = jax.random.normal(k_jobs, (B, T, JOBS_DIM), jnp.float32)   # state[0] per instance
    mach = jax.random.normal(k_mach, (B, T, MACH_DIM), jnp.float32)   # state[1] per instance

    params = init_params(k_par)
    fused = fuse_params(params)

    a_prob = critic_lstm_forward(jobs, mach, fused)      # (B, 1, T, 1)
    jax.block_until_ready(a_prob)

    assert a_prob.shape == (B, 1, T, 1)
    # each instance's softmax over the sequence dim sums to 1
    assert jnp.allclose(jnp.sum(a_prob, axis=2), 1.0, atol=1e-3)
    # matches the unfused pure-JAX reference
    ref = critic_lstm_reference(jobs, mach, params)      # (B, T, 1)
    assert jnp.allclose(a_prob.reshape(B, T, 1), ref, atol=2e-3, rtol=2e-3)

    print("KERNEL_OK")
</pallas_src>

<mosaic_0001>
module attributes {stable_mosaic.version = 11 : i64} {
  func.func @critic_lstm_kernel(%arg0: i32, %arg1: memref<1x8x16x128xf32, #tpu.memory_space<vmem>>, %arg2: memref<128x16xf32, #tpu.memory_space<vmem>>, %arg3: memref<128x1xf32, #tpu.memory_space<vmem>>, %arg4: memref<128x32xf32, #tpu.memory_space<vmem>>, %arg5: memref<32x32xf32, #tpu.memory_space<vmem>>, %arg6: memref<32x1xf32, #tpu.memory_space<vmem>>, %arg7: memref<32x32xf32, #tpu.memory_space<vmem>>, %arg8: memref<32x1xf32, #tpu.memory_space<vmem>>, %arg9: memref<1x32xf32, #tpu.memory_space<vmem>>, %arg10: memref<1x1xf32, #tpu.memory_space<vmem>>, %arg11: memref<1x8x128xf32, #tpu.memory_space<vmem>>, %arg12: memref<32x1024xf32, #tpu.memory_space<vmem>>) attributes {dimension_semantics = [#tpu.dimension_semantics<parallel>], iteration_bounds = array<i64: 1>, scalar_prefetch = 0 : i64, scratch_operands = 1 : i64, tpu.core_type = #tpu.core_type<tc>, window_params = [{transform_indices = @transform_0, window_bounds = array<i64: 1, 8, 16, 128>}, {pipeline_mode = #tpu.pipeline_mode<synchronous>, transform_indices = @transform_1, window_bounds = array<i64: 128, 16>}, {pipeline_mode = #tpu.pipeline_mode<synchronous>, transform_indices = @transform_2, window_bounds = array<i64: 128, 1>}, {pipeline_mode = #tpu.pipeline_mode<synchronous>, transform_indices = @transform_3, window_bounds = array<i64: 128, 32>}, {pipeline_mode = #tpu.pipeline_mode<synchronous>, transform_indices = @transform_4, window_bounds = array<i64: 32, 32>}, {pipeline_mode = #tpu.pipeline_mode<synchronous>, transform_indices = @transform_5, window_bounds = array<i64: 32, 1>}, {pipeline_mode = #tpu.pipeline_mode<synchronous>, transform_indices = @transform_6, window_bounds = array<i64: 32, 32>}, {pipeline_mode = #tpu.pipeline_mode<synchronous>, transform_indices = @transform_7, window_bounds = array<i64: 32, 1>}, {pipeline_mode = #tpu.pipeline_mode<synchronous>, transform_indices = @transform_8, window_bounds = array<i64: 1, 32>}, {pipeline_mode = #tpu.pipeline_mode<synchronous>, transform_indices = @transform_9, window_bounds = array<i64: 1, 1>}, {transform_indices = @transform_10, window_bounds = array<i64: 1, 8, 128>}]} {
    %c0 = arith.constant 0 : index
    %c0_0 = arith.constant 0 : index
    %0 = vector.load %arg2[%c0, %c0_0] : memref<128x16xf32, #tpu.memory_space<vmem>>, vector<128x16xf32>
    %c0_1 = arith.constant 0 : index
    %c0_2 = arith.constant 0 : index
    %1 = vector.load %arg3[%c0_1, %c0_2] : memref<128x1xf32, #tpu.memory_space<vmem>>, vector<128x1xf32>
    %c0_3 = arith.constant 0 : index
    %c0_4 = arith.constant 0 : index
    %2 = vector.load %arg4[%c0_3, %c0_4] : memref<128x32xf32, #tpu.memory_space<vmem>>, vector<128x32xf32>
    %cst = arith.constant 0.000000e+00 : f32
    %3 = vector.broadcast %cst : f32 to vector<32x128xf32>
    %cst_5 = arith.constant 0.000000e+00 : f32
    %4 = vector.broadcast %cst_5 : f32 to vector<32x128xf32>
    %c0_6 = arith.constant 0 : index
    %c0_7 = arith.constant 0 : index
    %c0_8 = arith.constant 0 : index
    %c0_9 = arith.constant 0 : index
    %5 = vector.load %arg1[%c0_6, %c0_7, %c0_8, %c0_9] : memref<1x8x16x128xf32, #tpu.memory_space<vmem>>, vector<1x1x16x128xf32>
    %6 = vector.shape_cast %5 : vector<1x1x16x128xf32> to vector<16x128xf32>
    %cst_10 = arith.constant dense<0.000000e+00> : vector<128x128xf32>
    %7 = tpu.matmul %0, %6, %cst_10 {dimension_numbers = #tpu.dot_dimension_numbers<[1], [0], [0], [1], [0, 0, 1, 1], [], []>} : vector<128x16xf32>, vector<16x128xf32>, vector<128x128xf32> -> vector<128x128xf32>
    %cst_11 = arith.constant dense<0.000000e+00> : vector<128x128xf32>
    %8 = tpu.matmul %2, %3, %cst_11 {dimension_numbers = #tpu.dot_dimension_numbers<[1], [0], [0], [1], [0, 0, 1, 1], [], []>} : vector<128x32xf32>, vector<32x128xf32>, vector<128x128xf32> -> vector<128x128xf32>
    %9 = arith.addf %7, %8 : vector<128x128xf32>
    %10 = vector.broadcast %1 : vector<128x1xf32> to vector<128x128xf32>
    %11 = arith.addf %9, %10 : vector<128x128xf32>
    %12 = vector.extract_strided_slice %11 {offsets = [0, 0], sizes = [32, 128], strides = [1, 1]} : vector<128x128xf32> to vector<32x128xf32>
    %cst_12 = arith.constant 5.000000e-01 : f32
    %13 = vector.broadcast %cst_12 : f32 to vector<32x128xf32>
    %14 = arith.mulf %13, %12 : vector<32x128xf32>
    %15 = math.tanh %14 : vector<32x128xf32>
    %cst_13 = arith.constant 5.000000e-01 : f32
    %16 = vector.broadcast %cst_13 : f32 to vector<32x128xf32>
    %17 = arith.mulf %16, %15 : vector<32x128xf32>
    %cst_14 = arith.constant 5.000000e-01 : f32
    %18 = vector.broadcast %cst_14 : f32 to vector<32x128xf32>
    %19 = arith.addf %17, %18 : vector<32x128xf32>
    %20 = vector.extract_strided_slice %11 {offsets = [32, 0], sizes = [32, 128], strides = [1, 1]} : vector<128x128xf32> to vector<32x128xf32>
    %cst_15 = arith.constant 5.000000e-01 : f32
    %21 = vector.broadcast %cst_15 : f32 to vector<32x128xf32>
    %22 = arith.mulf %21, %20 : vector<32x128xf32>
    %23 = math.tanh %22 : vector<32x128xf32>
    %cst_16 = arith.constant 5.000000e-01 : f32
    %24 = vector.broadcast %cst_16 : f32 to vector<32x128xf32>
    %25 = arith.mulf %24, %23 : vector<32x128xf32>
    %cst_17 = arith.constant 5.000000e-01 : f32
    %26 = vector.broadcast %cst_17 : f32 to vector<32x128xf32>
    %27 = arith.addf %25, %26 : vector<32x128xf32>
    %28 = vector.extract_strided_slice %11 {offsets = [64, 0], sizes = [32, 128], strides = [1, 1]} : vector<128x128xf32> to vector<32x128xf32>
    %29 = math.tanh %28 : vector<32x128xf32>
    %30 = vector.extract_strided_slice %11 {offsets = [96, 0], sizes = [32, 128], strides = [1, 1]} : vector<128x128xf32> to vector<32x128xf32>
    %cst_18 = arith.constant 5.000000e-01 : f32
    %31 = vector.broadcast %cst_18 : f32 to vector<32x128xf32>
    %32 = arith.mulf %31, %30 : vector<32x128xf32>
    %33 = math.tanh %32 : vector<32x128xf32>
    %cst_19 = arith.constant 5.000000e-01 : f32
    %34 = vector.broadcast %cst_19 : f32 to vector<32x128xf32>
    %35 = arith.mulf %34, %33 : vector<32x128xf32>
    %cst_20 = arith.constant 5.000000e-01 : f32
    %36 = vector.broadcast %cst_20 : f32 to vector<32x128xf32>
    %37 = arith.addf %35, %36 : vector<32x128xf32>
    %38 = arith.mulf %27, %4 : vector<32x128xf32>
    %39 = arith.mulf %19, %29 : vector<32x128xf32>
    %40 = arith.addf %38, %39 : vector<32x128xf32>
    %41 = math.tanh %40 : vector<32x128xf32>
    %42 = arith.mulf %37, %41 : vector<32x128xf32>
    %c0_21 = arith.constant 0 : index
    %c0_22 = arith.constant 0 : index
    %43 = vector.load %arg12[%c0_21, %c0_22] : memref<32x1024xf32, #tpu.memory_space<vmem>>, vector<32x128xf32>
    tpu.vector_store %arg12[%c0_21, %c0_22], %42 {strides = array<i32>} : memref<32x1024xf32, #tpu.memory_space<vmem>>, vector<32x128xf32>,
    %c0_23 = arith.constant 0 : index
    %c1 = arith.constant 1 : index
    %c0_24 = arith.constant 0 : index
    %c0_25 = arith.constant 0 : index
    %44 = vector.load %arg1[%c0_23, %c1, %c0_24, %c0_25] : memref<1x8x16x128xf32, #tpu.memory_space<vmem>>, vector<1x1x16x128xf32>
    %45 = vector.shape_cast %44 : vector<1x1x16x128xf32> to vector<16x128xf32>
    %cst_26 = arith.constant dense<0.000000e+00> : vector<128x128xf32>
    %46 = tpu.matmul %0, %45, %cst_26 {dimension_numbers = #tpu.dot_dimension_numbers<[1], [0], [0], [1], [0, 0, 1, 1], [], []>} : vector<128x16xf32>, vector<16x128xf32>, vector<128x128xf32> -> vector<128x128xf32>
    %cst_27 = arith.constant dense<0.000000e+00> : vector<128x128xf32>
    %47 = tpu.matmul %2, %42, %cst_27 {dimension_numbers = #tpu.dot_dimension_numbers<[1], [0], [0], [1], [0, 0, 1, 1], [], []>} : vector<128x32xf32>, vector<32x128xf32>, vector<128x128xf32> -> vector<128x128xf32>
    %48 = arith.addf %46, %47 : vector<128x128xf32>
    %49 = vector.broadcast %1 : vector<128x1xf32> to vector<128x128xf32>
    %50 = arith.addf %48, %49 : vector<128x128xf32>
    %51 = vector.extract_strided_slice %50 {offsets = [0, 0], sizes = [32, 128], strides = [1, 1]} : vector<128x128xf32> to vector<32x128xf32>
    %cst_28 = arith.constant 5.000000e-01 : f32
    %52 = vector.broadcast %cst_28 : f32 to vector<32x128xf32>
    %53 = arith.mulf %52, %51 : vector<32x128xf32>
    %54 = math.tanh %53 : vector<32x128xf32>
    %cst_29 = arith.constant 5.000000e-01 : f32
    %55 = vector.broadcast %cst_29 : f32 to vector<32x128xf32>
    %56 = arith.mulf %55, %54 : vector<32x128xf32>
    %cst_30 = arith.constant 5.000000e-01 : f32
    %57 = vector.broadcast %cst_30 : f32 to vector<32x128xf32>
    %58 = arith.addf %56, %57 : vector<32x128xf32>
    %59 = vector.extract_strided_slice %50 {offsets = [32, 0], sizes = [32, 128], strides = [1, 1]} : vector<128x128xf32> to vector<32x128xf32>
    %cst_31 = arith.constant 5.000000e-01 : f32
    %60 = vector.broadcast %cst_31 : f32 to vector<32x128xf32>
    %61 = arith.mulf %60, %59 : vector<32x128xf32>
    %62 = math.tanh %61 : vector<32x128xf32>
    %cst_32 = arith.constant 5.000000e-01 : f32
    %63 = vector.broadcast %cst_32 : f32 to vector<32x128xf32>
    %64 = arith.mulf %63, %62 : vector<32x128xf32>
    %cst_33 = arith.constant 5.000000e-01 : f32
    %65 = vector.broadcast %cst_33 : f32 to vector<32x128xf32>
    %66 = arith.addf %64, %65 : vector<32x128xf32>
    %67 = vector.extract_strided_slice %50 {offsets = [64, 0], sizes = [32, 128], strides = [1, 1]} : vector<128x128xf32> to vector<32x128xf32>
    %68 = math.tanh %67 : vector<32x128xf32>
    %69 = vector.extract_strided_slice %50 {offsets = [96, 0], sizes = [32, 128], strides = [1, 1]} : vector<128x128xf32> to vector<32x128xf32>
    %cst_34 = arith.constant 5.000000e-01 : f32
    %70 = vector.broadcast %cst_34 : f32 to vector<32x128xf32>
    %71 = arith.mulf %70, %69 : vector<32x128xf32>
    %72 = math.tanh %71 : vector<32x128xf32>
    %cst_35 = arith.constant 5.000000e-01 : f32
    %73 = vector.broadcast %cst_35 : f32 to vector<32x128xf32>
    %74 = arith.mulf %73, %72 : vector<32x128xf32>
    %cst_36 = arith.constant 5.000000e-01 : f32
    %75 = vector.broadcast %cst_36 : f32 to vector<32x128xf32>
    %76 = arith.addf %74, %75 : vector<32x128xf32>
    %77 = arith.mulf %66, %40 : vector<32x128xf32>
    %78 = arith.mulf %58, %68 : vector<32x128xf32>
    %79 = arith.addf %77, %78 : vector<32x128xf32>
    %80 = math.tanh %79 : vector<32x128xf32>
    %81 = arith.mulf %76, %80 : vector<32x128xf32>
    %c0_37 = arith.constant 0 : index
    %c128 = arith.constant 128 : index
    %82 = vector.load %arg12[%c0_37, %c128] : memref<32x1024xf32, #tpu.memory_space<vmem>>, vector<32x128xf32>
    tpu.vector_store %arg12[%c0_37, %c128], %81 {strides = array<i32>} : memref<32x1024xf32, #tpu.memory_space<vmem>>, vector<32x128xf32>,
    %c0_38 = arith.constant 0 : index
    %c2 = arith.constant 2 : index
    %c0_39 = arith.constant 0 : index
    %c0_40 = arith.constant 0 : index
    %83 = vector.load %arg1[%c0_38, %c2, %c0_39, %c0_40] : memref<1x8x16x128xf32, #tpu.memory_space<vmem>>, vector<1x1x16x128xf32>
    %84 = vector.shape_cast %83 : vector<1x1x16x128xf32> to vector<16x128xf32>
    %cst_41 = arith.constant dense<0.000000e+00> : vector<128x128xf32>
    %85 = tpu.matmul %0, %84, %cst_41 {dimension_numbers = #tpu.dot_dimension_numbers<[1], [0], [0], [1], [0, 0, 1, 1], [], []>} : vector<128x16xf32>, vector<16x128xf32>, vector<128x128xf32> -> vector<128x128xf32>
    %cst_42 = arith.constant dense<0.000000e+00> : vector<128x128xf32>
    %86 = tpu.matmul %2, %81, %cst_42 {dimension_numbers = #tpu.dot_dimension_numbers<[1], [0], [0], [1], [0, 0, 1, 1], [], []>} : vector<128x32xf32>, vector<32x128xf32>, vector<128x128xf32> -> vector<128x128xf32>
    %87 = arith.addf %85, %86 : vector<128x128xf32>
    %88 = vector.broadcast %1 : vector<128x1xf32> to vector<128x128xf32>
    %89 = arith.addf %87, %88 : vector<128x128xf32>
    %90 = vector.extract_strided_slice %89 {offsets = [0, 0], sizes = [32, 128], strides = [1, 1]} : vector<128x128xf32> to vector<32x128xf32>
    %cst_43 = arith.constant 5.000000e-01 : f32
    %91 = vector.broadcast %cst_43 : f32 to vector<32x128xf32>
    %92 = arith.mulf %91, %90 : vector<32x128xf32>
    %93 = math.tanh %92 : vector<32x128xf32>
    %cst_44 = arith.constant 5.000000e-01 : f32
    %94 = vector.broadcast %cst_44 : f32 to vector<32x128xf32>
    %95 = arith.mulf %94, %93 : vector<32x128xf32>
    %cst_45 = arith.constant 5.000000e-01 : f32
    %96 = vector.broadcast %cst_45 : f32 to vector<32x128xf32>
    %97 = arith.addf %95, %96 : vector<32x128xf32>
    %98 = vector.extract_strided_slice %89 {offsets = [32, 0], sizes = [32, 128], strides = [1, 1]} : vector<128x128xf32> to vector<32x128xf32>
    %cst_46 = arith.constant 5.000000e-01 : f32
    %99 = vector.broadcast %cst_46 : f32 to vector<32x128xf32>
    %100 = arith.mulf %99, %98 : vector<32x128xf32>
    %101 = math.tanh %100 : vector<32x128xf32>
    %cst_47 = arith.constant 5.000000e-01 : f32
    %102 = vector.broadcast %cst_47 : f32 to vector<32x128xf32>
    %103 = arith.mulf %102, %101 : vector<32x128xf32>
    %cst_48 = arith.constant 5.000000e-01 : f32
    %104 = vector.broadcast %cst_48 : f32 to vector<32x128xf32>
    %105 = arith.addf %103, %104 : vector<32x128xf32>
    %106 = vector.extract_strided_slice %89 {offsets = [64, 0], sizes = [32, 128], strides = [1, 1]} : vector<128x128xf32> to vector<32x128xf32>
    %107 = math.tanh %106 : vector<32x128xf32>
    %108 = vector.extract_strided_slice %89 {offsets = [96, 0], sizes = [32, 128], strides = [1, 1]} : vector<128x128xf32> to vector<32x128xf32>
    %cst_49 = arith.constant 5.000000e-01 : f32
    %109 = vector.broadcast %cst_49 : f32 to vector<32x128xf32>
    %110 = arith.mulf %109, %108 : vector<32x128xf32>
    %111 = math.tanh %110 : vector<32x128xf32>
    %cst_50 = arith.constant 5.000000e-01 : f32
    %112 = vector.broadcast %cst_50 : f32 to vector<32x128xf32>
    %113 = arith.mulf %112, %111 : vector<32x128xf32>
    %cst_51 = arith.constant 5.000000e-01 : f32
    %114 = vector.broadcast %cst_51 : f32 to vector<32x128xf32>
    %115 = arith.addf %113, %114 : vector<32x128xf32>
    %116 = arith.mulf %105, %79 : vector<32x128xf32>
    %117 = arith.mulf %97, %107 : vector<32x128xf32>
    %118 = arith.addf %116, %117 : vector<32x128xf32>
    %119 = math.tanh %118 : vector<32x128xf32>
    %120 = arith.mulf %115, %119 : vector<32x128xf32>
    %c0_52 = arith.constant 0 : index
    %c256 = arith.constant 256 : index
    %121 = vector.load %arg12[%c0_52, %c256] : memref<32x1024xf32, #tpu.memory_space<vmem>>, vector<32x128xf32>
    tpu.vector_store %arg12[%c0_52, %c256], %120 {strides = array<i32>} : memref<32x1024xf32, #tpu.memory_space<vmem>>, vector<32x128xf32>,
    %c0_53 = arith.constant 0 : index
    %c3 = arith.constant 3 : index
    %c0_54 = arith.constant 0 : index
    %c0_55 = arith.constant 0 : index
    %122 = vector.load %arg1[%c0_53, %c3, %c0_54, %c0_55] : memref<1x8x16x128xf32, #tpu.memory_space<vmem>>, vector<1x1x16x128xf32>
    %123 = vector.shape_cast %122 : vector<1x1x16x128xf32> to vector<16x128xf32>
    %cst_56 = arith.constant dense<0.000000e+00> : vector<128x128xf32>
    %124 = tpu.matmul %0, %123, %cst_56 {dimension_numbers = #tpu.dot_dimension_numbers<[1], [0], [0], [1], [0, 0, 1, 1], [], []>} : vector<128x16xf32>, vector<16x128xf32>, vector<128x128xf32> -> vector<128x128xf32>
    %cst_57 = arith.constant dense<0.000000e+00> : vector<128x128xf32>
    %125 = tpu.matmul %2, %120, %cst_57 {dimension_numbers = #tpu.dot_dimension_numbers<[1], [0], [0], [1], [0, 0, 1, 1], [], []>} : vector<128x32xf32>, vector<32x128xf32>, vector<128x128xf32> -> vector<128x128xf32>
    %126 = arith.addf %124, %125 : vector<128x128xf32>
    %127 = vector.broadcast %1 : vector<128x1xf32> to vector<128x128xf32>
    %128 = arith.addf %126, %127 : vector<128x128xf32>
    %129 = vector.extract_strided_slice %128 {offsets = [0, 0], sizes = [32, 128], strides = [1, 1]} : vector<128x128xf32> to vector<32x128xf32>
    %cst_58 = arith.constant 5.000000e-01 : f32
    %130 = vector.broadcast %cst_58 : f32 to vector<32x128xf32>
    %131 = arith.mulf %130, %129 : vector<32x128xf32>
    %132 = math.tanh %131 : vector<32x128xf32>
    %cst_59 = arith.constant 5.000000e-01 : f32
    %133 = vector.broadcast %cst_59 : f32 to vector<32x128xf32>
    %134 = arith.mulf %133, %132 : vector<32x128xf32>
    %cst_60 = arith.constant 5.000000e-01 : f32
    %135 = vector.broadcast %cst_60 : f32 to vector<32x128xf32>
    %136 = arith.addf %134, %135 : vector<32x128xf32>
    %137 = vector.extract_strided_slice %128 {offsets = [32, 0], sizes = [32, 128], strides = [1, 1]} : vector<128x128xf32> to vector<32x128xf32>
    %cst_61 = arith.constant 5.000000e-01 : f32
    %138 = vector.broadcast %cst_61 : f32 to vector<32x128xf32>
    %139 = arith.mulf %138, %137 : vector<32x128xf32>
    %140 = math.tanh %139 : vector<32x128xf32>
    %cst_62 = arith.constant 5.000000e-01 : f32
    %141 = vector.broadcast %cst_62 : f32 to vector<32x128xf32>
    %142 = arith.mulf %141, %140 : vector<32x128xf32>
    %cst_63 = arith.constant 5.000000e-01 : f32
    %143 = vector.broadcast %cst_63 : f32 to vector<32x128xf32>
    %144 = arith.addf %142, %143 : vector<32x128xf32>
    %145 = vector.extract_strided_slice %128 {offsets = [64, 0], sizes = [32, 128], strides = [1, 1]} : vector<128x128xf32> to vector<32x128xf32>
    %146 = math.tanh %145 : vector<32x128xf32>
    %147 = vector.extract_strided_slice %128 {offsets = [96, 0], sizes = [32, 128], strides = [1, 1]} : vector<128x128xf32> to vector<32x128xf32>
    %cst_64 = arith.constant 5.000000e-01 : f32
    %148 = vector.broadcast %cst_64 : f32 to vector<32x128xf32>
    %149 = arith.mulf %148, %147 : vector<32x128xf32>
    %150 = math.tanh %149 : vector<32x128xf32>
    %cst_65 = arith.constant 5.000000e-01 : f32
    %151 = vector.broadcast %cst_65 : f32 to vector<32x128xf32>
    %152 = arith.mulf %151, %150 : vector<32x128xf32>
    %cst_66 = arith.constant 5.000000e-01 : f32
    %153 = vector.broadcast %cst_66 : f32 to vector<32x128xf32>
    %154 = arith.addf %152, %153 : vector<32x128xf32>
    %155 = arith.mulf %144, %118 : vector<32x128xf32>
    %156 = arith.mulf %136, %146 : vector<32x128xf32>
    %157 = arith.addf %155, %156 : vector<32x128xf32>
    %158 = math.tanh %157 : vector<32x128xf32>
    %159 = arith.mulf %154, %158 : vector<32x128xf32>
    %c0_67 = arith.constant 0 : index
    %c384 = arith.constant 384 : index
    %160 = vector.load %arg12[%c0_67, %c384] : memref<32x1024xf32, #tpu.memory_space<vmem>>, vector<32x128xf32>
    tpu.vector_store %arg12[%c0_67, %c384], %159 {strides = array<i32>} : memref<32x1024xf32, #tpu.memory_space<vmem>>, vector<32x128xf32>,
    %c0_68 = arith.constant 0 : index
    %c4 = arith.constant 4 : index
    %c0_69 = arith.constant 0 : index
    %c0_70 = arith.constant 0 : index
    %161 = vector.load %arg1[%c0_68, %c4, %c0_69, %c0_70] : memref<1x8x16x128xf32, #tpu.memory_space<vmem>>, vector<1x1x16x128xf32>
    %162 = vector.shape_cast %161 : vector<1x1x16x128xf32> to vector<16x128xf32>
    %cst_71 = arith.constant dense<0.000000e+00> : vector<128x128xf32>
    %163 = tpu.matmul %0, %162, %cst_71 {dimension_numbers = #tpu.dot_dimension_numbers<[1], [0], [0], [1], [0, 0, 1, 1], [], []>} : vector<128x16xf32>, vector<16x128xf32>, vector<128x128xf32> -> vector<128x128xf32>
    %cst_72 = arith.constant dense<0.000000e+00> : vector<128x128xf32>
    %164 = tpu.matmul %2, %159, %cst_72 {dimension_numbers = #tpu.dot_dimension_numbers<[1], [0], [0], [1], [0, 0, 1, 1], [], []>} : vector<128x32xf32>, vector<32x128xf32>, vector<128x128xf32> -> vector<128x128xf32>
    %165 = arith.addf %163, %164 : vector<128x128xf32>
    %166 = vector.broadcast %1 : vector<128x1xf32> to vector<128x128xf32>
    %167 = arith.addf %165, %166 : vector<128x128xf32>
    %168 = vector.extract_strided_slice %167 {offsets = [0, 0], sizes = [32, 128], strides = [1, 1]} : vector<128x128xf32> to vector<32x128xf32>
    %cst_73 = arith.constant 5.000000e-01 : f32
    %169 = vector.broadcast %cst_73 : f32 to vector<32x128xf32>
    %170 = arith.mulf %169, %168 : vector<32x128xf32>
    %171 = math.tanh %170 : vector<32x128xf32>
    %cst_74 = arith.constant 5.000000e-01 : f32
    %172 = vector.broadcast %cst_74 : f32 to vector<32x128xf32>
    %173 = arith.mulf %172, %171 : vector<32x128xf32>
    %cst_75 = arith.constant 5.000000e-01 : f32
    %174 = vector.broadcast %cst_75 : f32 to vector<32x128xf32>
    %175 = arith.addf %173, %174 : vector<32x128xf32>
    %176 = vector.extract_strided_slice %167 {offsets = [32, 0], sizes = [32, 128], strides = [1, 1]} : vector<128x128xf32> to vector<32x128xf32>
    %cst_76 = arith.constant 5.000000e-01 : f32
    %177 = vector.broadcast %cst_76 : f32 to vector<32x128xf32>
    %178 = arith.mulf %177, %176 : vector<32x128xf32>
    %179 = math.tanh %178 : vector<32x128xf32>
    %cst_77 = arith.constant 5.000000e-01 : f32
    %180 = vector.broadcast %cst_77 : f32 to vector<32x128xf32>
    %181 = arith.mulf %180, %179 : vector<32x128xf32>
    %cst_78 = arith.constant 5.000000e-01 : f32
    %182 = vector.broadcast %cst_78 : f32 to vector<32x128xf32>
    %183 = arith.addf %181, %182 : vector<32x128xf32>
    %184 = vector.extract_strided_slice %167 {offsets = [64, 0], sizes = [32, 128], strides = [1, 1]} : vector<128x128xf32> to vector<32x128xf32>
    %185 = math.tanh %184 : vector<32x128xf32>
    %186 = vector.extract_strided_slice %167 {offsets = [96, 0], sizes = [32, 128], strides = [1, 1]} : vector<128x128xf32> to vector<32x128xf32>
    %cst_79 = arith.constant 5.000000e-01 : f32
    %187 = vector.broadcast %cst_79 : f32 to vector<32x128xf32>
    %188 = arith.mulf %187, %186 : vector<32x128xf32>
    %189 = math.tanh %188 : vector<32x128xf32>
    %cst_80 = arith.constant 5.000000e-01 : f32
    %190 = vector.broadcast %cst_80 : f32 to vector<32x128xf32>
    %191 = arith.mulf %190, %189 : vector<32x128xf32>
    %cst_81 = arith.constant 5.000000e-01 : f32
    %192 = vector.broadcast %cst_81 : f32 to vector<32x128xf32>
    %193 = arith.addf %191, %192 : vector<32x128xf32>
    %194 = arith.mulf %183, %157 : vector<32x128xf32>
    %195 = arith.mulf %175, %185 : vector<32x128xf32>
    %196 = arith.addf %194, %195 : vector<32x128xf32>
    %197 = math.tanh %196 : vector<32x128xf32>
    %198 = arith.mulf %193, %197 : vector<32x128xf32>
    %c0_82 = arith.constant 0 : index
    %c512 = arith.constant 512 : index
    %199 = vector.load %arg12[%c0_82, %c512] : memref<32x1024xf32, #tpu.memory_space<vmem>>, vector<32x128xf32>
    tpu.vector_store %arg12[%c0_82, %c512], %198 {strides = array<i32>} : memref<32x1024xf32, #tpu.memory_space<vmem>>, vector<32x128xf32>,
    %c0_83 = arith.constant 0 : index
    %c5 = arith.constant 5 : index
    %c0_84 = arith.constant 0 : index
    %c0_85 = arith.constant 0 : index
    %200 = vector.load %arg1[%c0_83, %c5, %c0_84, %c0_85] : memref<1x8x16x128xf32, #tpu.memory_space<vmem>>, vector<1x1x16x128xf32>
    %201 = vector.shape_cast %200 : vector<1x1x16x128xf32> to vector<16x128xf32>
    %cst_86 = arith.constant dense<0.000000e+00> : vector<128x128xf32>
    %202 = tpu.matmul %0, %201, %cst_86 {dimension_numbers = #tpu.dot_dimension_numbers<[1], [0], [0], [1], [0, 0, 1, 1], [], []>} : vector<128x16xf32>, vector<16x128xf32>, vector<128x128xf32> -> vector<128x128xf32>
    %cst_87 = arith.constant dense<0.000000e+00> : vector<128x128xf32>
    %203 = tpu.matmul %2, %198, %cst_87 {dimension_numbers = #tpu.dot_dimension_numbers<[1], [0], [0], [1], [0, 0, 1, 1], [], []>} : vector<128x32xf32>, vector<32x128xf32>, vector<128x128xf32> -> vector<128x128xf32>
    %204 = arith.addf %202, %203 : vector<128x128xf32>
    %205 = vector.broadcast %1 : vector<128x1xf32> to vector<128x128xf32>
    %206 = arith.addf %204, %205 : vector<128x128xf32>
    %207 = vector.extract_strided_slice %206 {offsets = [0, 0], sizes = [32, 128], strides = [1, 1]} : vector<128x128xf32> to vector<32x128xf32>
    %cst_88 = arith.constant 5.000000e-01 : f32
    %208 = vector.broadcast %cst_88 : f32 to vector<32x128xf32>
    %209 = arith.mulf %208, %207 : vector<32x128xf32>
    %210 = math.tanh %209 : vector<32x128xf32>
    %cst_89 = arith.constant 5.000000e-01 : f32
    %211 = vector.broadcast %cst_89 : f32 to vector<32x128xf32>
    %212 = arith.mulf %211, %210 : vector<32x128xf32>
    %cst_90 = arith.constant 5.000000e-01 : f32
    %213 = vector.broadcast %cst_90 : f32 to vector<32x128xf32>
    %214 = arith.addf %212, %213 : vector<32x128xf32>
    %215 = vector.extract_strided_slice %206 {offsets = [32, 0], sizes = [32, 128], strides = [1, 1]} : vector<128x128xf32> to vector<32x128xf32>
    %cst_91 = arith.constant 5.000000e-01 : f32
    %216 = vector.broadcast %cst_91 : f32 to vector<32x128xf32>
    %217 = arith.mulf %216, %215 : vector<32x128xf32>
    %218 = math.tanh %217 : vector<32x128xf32>
    %cst_92 = arith.constant 5.000000e-01 : f32
    %219 = vector.broadcast %cst_92 : f32 to vector<32x128xf32>
    %220 = arith.mulf %219, %218 : vector<32x128xf32>
    %cst_93 = arith.constant 5.000000e-01 : f32
    %221 = vector.broadcast %cst_93 : f32 to vector<32x128xf32>
    %222 = arith.addf %220, %221 : vector<32x128xf32>
    %223 = vector.extract_strided_slice %206 {offsets = [64, 0], sizes = [32, 128], strides = [1, 1]} : vector<128x128xf32> to vector<32x128xf32>
    %224 = math.tanh %223 : vector<32x128xf32>
    %225 = vector.extract_strided_slice %206 {offsets = [96, 0], sizes = [32, 128], strides = [1, 1]} : vector<128x128xf32> to vector<32x128xf32>
    %cst_94 = arith.constant 5.000000e-01 : f32
    %226 = vector.broadcast %cst_94 : f32 to vector<32x128xf32>
    %227 = arith.mulf %226, %225 : vector<32x128xf32>
    %228 = math.tanh %227 : vector<32x128xf32>
    %cst_95 = arith.constant 5.000000e-01 : f32
    %229 = vector.broadcast %cst_95 : f32 to vector<32x128xf32>
    %230 = arith.mulf %229, %228 : vector<32x128xf32>
    %cst_96 = arith.constant 5.000000e-01 : f32
    %231 = vector.broadcast %cst_96 : f32 to vector<32x128xf32>
    %232 = arith.addf %230, %231 : vector<32x128xf32>
    %233 = arith.mulf %222, %196 : vector<32x128xf32>
    %234 = arith.mulf %214, %224 : vector<32x128xf32>
    %235 = arith.addf %233, %234 : vector<32x128xf32>
    %236 = math.tanh %235 : vector<32x128xf32>
    %237 = arith.mulf %232, %236 : vector<32x128xf32>
    %c0_97 = arith.constant 0 : index
    %c640 = arith.constant 640 : index
    %238 = vector.load %arg12[%c0_97, %c640] : memref<32x1024xf32, #tpu.memory_space<vmem>>, vector<32x128xf32>
    tpu.vector_store %arg12[%c0_97, %c640], %237 {strides = array<i32>} : memref<32x1024xf32, #tpu.memory_space<vmem>>, vector<32x128xf32>,
    %c0_98 = arith.constant 0 : index
    %c6 = arith.constant 6 : index
    %c0_99 = arith.constant 0 : index
    %c0_100 = arith.constant 0 : index
    %239 = vector.load %arg1[%c0_98, %c6, %c0_99, %c0_100] : memref<1x8x16x128xf32, #tpu.memory_space<vmem>>, vector<1x1x16x128xf32>
    %240 = vector.shape_cast %239 : vector<1x1x16x128xf32> to vector<16x128xf32>
    %cst_101 = arith.constant dense<0.000000e+00> : vector<128x128xf32>
    %241 = tpu.matmul %0, %240, %cst_101 {dimension_numbers = #tpu.dot_dimension_numbers<[1], [0], [0], [1], [0, 0, 1, 1], [], []>} : vector<128x16xf32>, vector<16x128xf32>, vector<128x128xf32> -> vector<128x128xf32>
    %cst_102 = arith.constant dense<0.000000e+00> : vector<128x128xf32>
    %242 = tpu.matmul %2, %237, %cst_102 {dimension_numbers = #tpu.dot_dimension_numbers<[1], [0], [0], [1], [0, 0, 1, 1], [], []>} : vector<128x32xf32>, vector<32x128xf32>, vector<128x128xf32> -> vector<128x128xf32>
    %243 = arith.addf %241, %242 : vector<128x128xf32>
    %244 = vector.broadcast %1 : vector<128x1xf32> to vector<128x128xf32>
    %245 = arith.addf %243, %244 : vector<128x128xf32>
    %246 = vector.extract_strided_slice %245 {offsets = [0, 0], sizes = [32, 128], strides = [1, 1]} : vector<128x128xf32> to vector<32x128xf32>
    %cst_103 = arith.constant 5.000000e-01 : f32
    %247 = vector.broadcast %cst_103 : f32 to vector<32x128xf32>
    %248 = arith.mulf %247, %246 : vector<32x128xf32>
    %249 = math.tanh %248 : vector<32x128xf32>
    %cst_104 = arith.constant 5.000000e-01 : f32
    %250 = vector.broadcast %cst_104 : f32 to vector<32x128xf32>
    %251 = arith.mulf %250, %249 : vector<32x128xf32>
    %cst_105 = arith.constant 5.000000e-01 : f32
    %252 = vector.broadcast %cst_105 : f32 to vector<32x128xf32>
    %253 = arith.addf %251, %252 : vector<32x128xf32>
    %254 = vector.extract_strided_slice %245 {offsets = [32, 0], sizes = [32, 128], strides = [1, 1]} : vector<128x128xf32> to vector<32x128xf32>
    %cst_106 = arith.constant 5.000000e-01 : f32
    %255 = vector.broadcast %cst_106 : f32 to vector<32x128xf32>
    %256 = arith.mulf %255, %254 : vector<32x128xf32>
    %257 = math.tanh %256 : vector<32x128xf32>
    %cst_107 = arith.constant 5.000000e-01 : f32
    %258 = vector.broadcast %cst_107 : f32 to vector<32x128xf32>
    %259 = arith.mulf %258, %257 : vector<32x128xf32>
    %cst_108 = arith.constant 5.000000e-01 : f32
    %260 = vector.broadcast %cst_108 : f32 to vector<32x128xf32>
    %261 = arith.addf %259, %260 : vector<32x128xf32>
    %262 = vector.extract_strided_slice %245 {offsets = [64, 0], sizes = [32, 128], strides = [1, 1]} : vector<128x128xf32> to vector<32x128xf32>
    %263 = math.tanh %262 : vector<32x128xf32>
    %264 = vector.extract_strided_slice %245 {offsets = [96, 0], sizes = [32, 128], strides = [1, 1]} : vector<128x128xf32> to vector<32x128xf32>
    %cst_109 = arith.constant 5.000000e-01 : f32
    %265 = vector.broadcast %cst_109 : f32 to vector<32x128xf32>
    %266 = arith.mulf %265, %264 : vector<32x128xf32>
    %267 = math.tanh %266 : vector<32x128xf32>
    %cst_110 = arith.constant 5.000000e-01 : f32
    %268 = vector.broadcast %cst_110 : f32 to vector<32x128xf32>
    %269 = arith.mulf %268, %267 : vector<32x128xf32>
    %cst_111 = arith.constant 5.000000e-01 : f32
    %270 = vector.broadcast %cst_111 : f32 to vector<32x128xf32>
    %271 = arith.addf %269, %270 : vector<32x128xf32>
    %272 = arith.mulf %261, %235 : vector<32x128xf32>
    %273 = arith.mulf %253, %263 : vector<32x128xf32>
    %274 = arith.addf %272, %273 : vector<32x128xf32>
    %275 = math.tanh %274 : vector<32x128xf32>
    %276 = arith.mulf %271, %275 : vector<32x128xf32>
    %c0_112 = arith.constant 0 : index
    %c768 = arith.constant 768 : index
    %277 = vector.load %arg12[%c0_112, %c768] : memref<32x1024xf32, #tpu.memory_space<vmem>>, vector<32x128xf32>
    tpu.vector_store %arg12[%c0_112, %c768], %276 {strides = array<i32>} : memref<32x1024xf32, #tpu.memory_space<vmem>>, vector<32x128xf32>,
    %c0_113 = arith.constant 0 : index
    %c7 = arith.constant 7 : index
    %c0_114 = arith.constant 0 : index
    %c0_115 = arith.constant 0 : index
    %278 = vector.load %arg1[%c0_113, %c7, %c0_114, %c0_115] : memref<1x8x16x128xf32, #tpu.memory_space<vmem>>, vector<1x1x16x128xf32>
    %279 = vector.shape_cast %278 : vector<1x1x16x128xf32> to vector<16x128xf32>
    %cst_116 = arith.constant dense<0.000000e+00> : vector<128x128xf32>
    %280 = tpu.matmul %0, %279, %cst_116 {dimension_numbers = #tpu.dot_dimension_numbers<[1], [0], [0], [1], [0, 0, 1, 1], [], []>} : vector<128x16xf32>, vector<16x128xf32>, vector<128x128xf32> -> vector<128x128xf32>
    %cst_117 = arith.constant dense<0.000000e+00> : vector<128x128xf32>
    %281 = tpu.matmul %2, %276, %cst_117 {dimension_numbers = #tpu.dot_dimension_numbers<[1], [0], [0], [1], [0, 0, 1, 1], [], []>} : vector<128x32xf32>, vector<32x128xf32>, vector<128x128xf32> -> vector<128x128xf32>
    %282 = arith.addf %280, %281 : vector<128x128xf32>
    %283 = vector.broadcast %1 : vector<128x1xf32> to vector<128x128xf32>
    %284 = arith.addf %282, %283 : vector<128x128xf32>
    %285 = vector.extract_strided_slice %284 {offsets = [0, 0], sizes = [32, 128], strides = [1, 1]} : vector<128x128xf32> to vector<32x128xf32>
    %cst_118 = arith.constant 5.000000e-01 : f32
    %286 = vector.broadcast %cst_118 : f32 to vector<32x128xf32>
    %287 = arith.mulf %286, %285 : vector<32x128xf32>
    %288 = math.tanh %287 : vector<32x128xf32>
    %cst_119 = arith.constant 5.000000e-01 : f32
    %289 = vector.broadcast %cst_119 : f32 to vector<32x128xf32>
    %290 = arith.mulf %289, %288 : vector<32x128xf32>
    %cst_120 = arith.constant 5.000000e-01 : f32
    %291 = vector.broadcast %cst_120 : f32 to vector<32x128xf32>
    %292 = arith.addf %290, %291 : vector<32x128xf32>
    %293 = vector.extract_strided_slice %284 {offsets = [32, 0], sizes = [32, 128], strides = [1, 1]} : vector<128x128xf32> to vector<32x128xf32>
    %cst_121 = arith.constant 5.000000e-01 : f32
    %294 = vector.broadcast %cst_121 : f32 to vector<32x128xf32>
    %295 = arith.mulf %294, %293 : vector<32x128xf32>
    %296 = math.tanh %295 : vector<32x128xf32>
    %cst_122 = arith.constant 5.000000e-01 : f32
    %297 = vector.broadcast %cst_122 : f32 to vector<32x128xf32>
    %298 = arith.mulf %297, %296 : vector<32x128xf32>
    %cst_123 = arith.constant 5.000000e-01 : f32
    %299 = vector.broadcast %cst_123 : f32 to vector<32x128xf32>
    %300 = arith.addf %298, %299 : vector<32x128xf32>
    %301 = vector.extract_strided_slice %284 {offsets = [64, 0], sizes = [32, 128], strides = [1, 1]} : vector<128x128xf32> to vector<32x128xf32>
    %302 = math.tanh %301 : vector<32x128xf32>
    %303 = vector.extract_strided_slice %284 {offsets = [96, 0], sizes = [32, 128], strides = [1, 1]} : vector<128x128xf32> to vector<32x128xf32>
    %cst_124 = arith.constant 5.000000e-01 : f32
    %304 = vector.broadcast %cst_124 : f32 to vector<32x128xf32>
    %305 = arith.mulf %304, %303 : vector<32x128xf32>
    %306 = math.tanh %305 : vector<32x128xf32>
    %cst_125 = arith.constant 5.000000e-01 : f32
    %307 = vector.broadcast %cst_125 : f32 to vector<32x128xf32>
    %308 = arith.mulf %307, %306 : vector<32x128xf32>
    %cst_126 = arith.constant 5.000000e-01 : f32
    %309 = vector.broadcast %cst_126 : f32 to vector<32x128xf32>
    %310 = arith.addf %308, %309 : vector<32x128xf32>
    %311 = arith.mulf %300, %274 : vector<32x128xf32>
    %312 = arith.mulf %292, %302 : vector<32x128xf32>
    %313 = arith.addf %311, %312 : vector<32x128xf32>
    %314 = math.tanh %313 : vector<32x128xf32>
    %315 = arith.mulf %310, %314 : vector<32x128xf32>
    %c0_127 = arith.constant 0 : index
    %c896 = arith.constant 896 : index
    %316 = vector.load %arg12[%c0_127, %c896] : memref<32x1024xf32, #tpu.memory_space<vmem>>, vector<32x128xf32>
    tpu.vector_store %arg12[%c0_127, %c896], %315 {strides = array<i32>} : memref<32x1024xf32, #tpu.memory_space<vmem>>, vector<32x128xf32>,
    %c0_128 = arith.constant 0 : index
    %c0_129 = arith.constant 0 : index
    %317 = vector.load %arg12[%c0_128, %c0_129] : memref<32x1024xf32, #tpu.memory_space<vmem>>, vector<32x1024xf32>
    %c0_130 = arith.constant 0 : index
    %c0_131 = arith.constant 0 : index
    %318 = vector.load %arg5[%c0_130, %c0_131] : memref<32x32xf32, #tpu.memory_space<vmem>>, vector<32x32xf32>
    %cst_132 = arith.constant dense<0.000000e+00> : vector<32x1024xf32>
    %319 = tpu.matmul %318, %317, %cst_132 {dimension_numbers = #tpu.dot_dimension_numbers<[1], [0], [0], [1], [0, 0, 1, 1], [], []>} : vector<32x32xf32>, vector<32x1024xf32>, vector<32x1024xf32> -> vector<32x1024xf32>
    %c0_133 = arith.constant 0 : index
    %c0_134 = arith.constant 0 : index
    %320 = vector.load %arg6[%c0_133, %c0_134] : memref<32x1xf32, #tpu.memory_space<vmem>>, vector<32x1xf32>
    %321 = vector.broadcast %320 : vector<32x1xf32> to vector<32x1024xf32>
    %322 = arith.addf %319, %321 : vector<32x1024xf32>
    %323 = math.tanh %322 : vector<32x1024xf32>
    %c0_135 = arith.constant 0 : index
    %c0_136 = arith.constant 0 : index
    %324 = vector.load %arg7[%c0_135, %c0_136] : memref<32x32xf32, #tpu.memory_space<vmem>>, vector<32x32xf32>
    %cst_137 = arith.constant dense<0.000000e+00> : vector<32x1024xf32>
    %325 = tpu.matmul %324, %323, %cst_137 {dimension_numbers = #tpu.dot_dimension_numbers<[1], [0], [0], [1], [0, 0, 1, 1], [], []>} : vector<32x32xf32>, vector<32x1024xf32>, vector<32x1024xf32> -> vector<32x1024xf32>
    %c0_138 = arith.constant 0 : index
    %c0_139 = arith.constant 0 : index
    %326 = vector.load %arg8[%c0_138, %c0_139] : memref<32x1xf32, #tpu.memory_space<vmem>>, vector<32x1xf32>
    %327 = vector.broadcast %326 : vector<32x1xf32> to vector<32x1024xf32>
    %328 = arith.addf %325, %327 : vector<32x1024xf32>
    %329 = math.tanh %328 : vector<32x1024xf32>
    %c0_140 = arith.constant 0 : index
    %c0_141 = arith.constant 0 : index
    %330 = vector.load %arg9[%c0_140, %c0_141] : memref<1x32xf32, #tpu.memory_space<vmem>>, vector<1x32xf32>
    %331 = vector.extract_strided_slice %329 {offsets = [0, 0], sizes = [32, 128], strides = [1, 1]} : vector<32x1024xf32> to vector<32x128xf32>
    %cst_142 = arith.constant dense<0.000000e+00> : vector<1x128xf32>
    %332 = tpu.matmul %330, %331, %cst_142 {dimension_numbers = #tpu.dot_dimension_numbers<[1], [0], [0], [1], [0, 0, 1, 1], [], []>} : vector<1x32xf32>, vector<32x128xf32>, vector<1x128xf32> -> vector<1x128xf32>
    %333 = vector.extract_strided_slice %329 {offsets = [0, 128], sizes = [32, 128], strides = [1, 1]} : vector<32x1024xf32> to vector<32x128xf32>
    %cst_143 = arith.constant dense<0.000000e+00> : vector<1x128xf32>
    %334 = tpu.matmul %330, %333, %cst_143 {dimension_numbers = #tpu.dot_dimension_numbers<[1], [0], [0], [1], [0, 0, 1, 1], [], []>} : vector<1x32xf32>, vector<32x128xf32>, vector<1x128xf32> -> vector<1x128xf32>
    %335 = vector.extract_strided_slice %329 {offsets = [0, 256], sizes = [32, 128], strides = [1, 1]} : vector<32x1024xf32> to vector<32x128xf32>
    %cst_144 = arith.constant dense<0.000000e+00> : vector<1x128xf32>
    %336 = tpu.matmul %330, %335, %cst_144 {dimension_numbers = #tpu.dot_dimension_numbers<[1], [0], [0], [1], [0, 0, 1, 1], [], []>} : vector<1x32xf32>, vector<32x128xf32>, vector<1x128xf32> -> vector<1x128xf32>
    %337 = vector.extract_strided_slice %329 {offsets = [0, 384], sizes = [32, 128], strides = [1, 1]} : vector<32x1024xf32> to vector<32x128xf32>
    %cst_145 = arith.constant dense<0.000000e+00> : vector<1x128xf32>
    %338 = tpu.matmul %330, %337, %cst_145 {dimension_numbers = #tpu.dot_dimension_numbers<[1], [0], [0], [1], [0, 0, 1, 1], [], []>} : vector<1x32xf32>, vector<32x128xf32>, vector<1x128xf32> -> vector<1x128xf32>
    %339 = vector.extract_strided_slice %329 {offsets = [0, 512], sizes = [32, 128], strides = [1, 1]} : vector<32x1024xf32> to vector<32x128xf32>
    %cst_146 = arith.constant dense<0.000000e+00> : vector<1x128xf32>
    %340 = tpu.matmul %330, %339, %cst_146 {dimension_numbers = #tpu.dot_dimension_numbers<[1], [0], [0], [1], [0, 0, 1, 1], [], []>} : vector<1x32xf32>, vector<32x128xf32>, vector<1x128xf32> -> vector<1x128xf32>
    %341 = vector.extract_strided_slice %329 {offsets = [0, 640], sizes = [32, 128], strides = [1, 1]} : vector<32x1024xf32> to vector<32x128xf32>
    %cst_147 = arith.constant dense<0.000000e+00> : vector<1x128xf32>
    %342 = tpu.matmul %330, %341, %cst_147 {dimension_numbers = #tpu.dot_dimension_numbers<[1], [0], [0], [1], [0, 0, 1, 1], [], []>} : vector<1x32xf32>, vector<32x128xf32>, vector<1x128xf32> -> vector<1x128xf32>
    %343 = vector.extract_strided_slice %329 {offsets = [0, 768], sizes = [32, 128], strides = [1, 1]} : vector<32x1024xf32> to vector<32x128xf32>
    %cst_148 = arith.constant dense<0.000000e+00> : vector<1x128xf32>
    %344 = tpu.matmul %330, %343, %cst_148 {dimension_numbers = #tpu.dot_dimension_numbers<[1], [0], [0], [1], [0, 0, 1, 1], [], []>} : vector<1x32xf32>, vector<32x128xf32>, vector<1x128xf32> -> vector<1x128xf32>
    %345 = vector.extract_strided_slice %329 {offsets = [0, 896], sizes = [32, 128], strides = [1, 1]} : vector<32x1024xf32> to vector<32x128xf32>
    %cst_149 = arith.constant dense<0.000000e+00> : vector<1x128xf32>
    %346 = tpu.matmul %330, %345, %cst_149 {dimension_numbers = #tpu.dot_dimension_numbers<[1], [0], [0], [1], [0, 0, 1, 1], [], []>} : vector<1x32xf32>, vector<32x128xf32>, vector<1x128xf32> -> vector<1x128xf32>
    %347 = tpu.concatenate %332, %334, %336, %338, %340, %342, %344, %346 in 0 : vector<1x128xf32>, vector<1x128xf32>, vector<1x128xf32>, vector<1x128xf32>, vector<1x128xf32>, vector<1x128xf32>, vector<1x128xf32>, vector<1x128xf32> -> vector<8x128xf32>
    %c0_150 = arith.constant 0 : index
    %c0_151 = arith.constant 0 : index
    %348 = vector.load %arg10[%c0_150, %c0_151] : memref<1x1xf32, #tpu.memory_space<vmem>>, vector<1x1xf32>
    %349 = vector.broadcast %348 : vector<1x1xf32> to vector<8x128xf32>
    %350 = arith.addf %347, %349 : vector<8x128xf32>
    %cst_152 = arith.constant dense<0xFF800000> : vector<128xf32>
    %351 = vector.multi_reduction <maximumf>, %350, %cst_152 [0] : vector<8x128xf32> to vector<128xf32>
    %352 = vector.shape_cast %351 : vector<128xf32> to vector<1x128xf32>
    %353 = vector.broadcast %352 : vector<1x128xf32> to vector<8x128xf32>
    %354 = arith.subf %350, %353 : vector<8x128xf32>
    %355 = math.exp %354 : vector<8x128xf32>
    %cst_153 = arith.constant dense<0.000000e+00> : vector<128xf32>
    %356 = vector.multi_reduction <add>, %355, %cst_153 [0] : vector<8x128xf32> to vector<128xf32>
    %357 = vector.shape_cast %356 : vector<128xf32> to vector<1x128xf32>
    %358 = tpu.reciprocal %357 {approx = true} : vector<1x128xf32> -> vector<1x128xf32>
    %359 = arith.mulf %357, %358 : vector<1x128xf32>
    %cst_154 = arith.constant 2.000000e+00 : f32
    %360 = vector.broadcast %cst_154 : f32 to vector<1x128xf32>
    %361 = arith.subf %360, %359 : vector<1x128xf32>
    %362 = arith.mulf %358, %361 : vector<1x128xf32>
    %363 = vector.broadcast %362 : vector<1x128xf32> to vector<8x128xf32>
    %364 = arith.mulf %355, %363 : vector<8x128xf32>
    %c0_155 = arith.constant 0 : index
    %c0_156 = arith.constant 0 : index
    %c0_157 = arith.constant 0 : index
    %365 = vector.load %arg11[%c0_155, %c0_156, %c0_157] : memref<1x8x128xf32, #tpu.memory_space<vmem>>, vector<1x8x128xf32>
    %366 = vector.shape_cast %365 : vector<1x8x128xf32> to vector<8x128xf32>
    %367 = vector.shape_cast %364 : vector<8x128xf32> to vector<1x8x128xf32>
    tpu.vector_store %arg11[%c0_155, %c0_156, %c0_157], %367 {strides = array<i32>} : memref<1x8x128xf32, #tpu.memory_space<vmem>>, vector<1x8x128xf32>,
    return
  }
  func.func @transform_0(%arg0: i32) -> (i32, i32, i32, i32) {
    %c0_i32 = arith.constant 0 : i32
    %c0_i32_0 = arith.constant 0 : i32
    %c0_i32_1 = arith.constant 0 : i32
    %c0_i32_2 = arith.constant 0 : i32
    return %arg0, %c0_i32, %c0_i32_0, %c0_i32_1 : i32, i32, i32, i32
  }
  func.func @transform_1(%arg0: i32) -> (i32, i32) {
    %c0_i32 = arith.constant 0 : i32
    %c0_i32_0 = arith.constant 0 : i32
    %c0_i32_1 = arith.constant 0 : i32
    return %c0_i32, %c0_i32_0 : i32, i32
  }
  func.func @transform_2(%arg0: i32) -> (i32, i32) {
    %c0_i32 = arith.constant 0 : i32
    %c0_i32_0 = arith.constant 0 : i32
    %c0_i32_1 = arith.constant 0 : i32
    return %c0_i32, %c0_i32_0 : i32, i32
  }
  func.func @transform_3(%arg0: i32) -> (i32, i32) {
    %c0_i32 = arith.constant 0 : i32
    %c0_i32_0 = arith.constant 0 : i32
    %c0_i32_1 = arith.constant 0 : i32
    return %c0_i32, %c0_i32_0 : i32, i32
  }
  func.func @transform_4(%arg0: i32) -> (i32, i32) {
    %c0_i32 = arith.constant 0 : i32
    %c0_i32_0 = arith.constant 0 : i32
    %c0_i32_1 = arith.constant 0 : i32
    return %c0_i32, %c0_i32_0 : i32, i32
  }
  func.func @transform_5(%arg0: i32) -> (i32, i32) {
    %c0_i32 = arith.constant 0 : i32
    %c0_i32_0 = arith.constant 0 : i32
    %c0_i32_1 = arith.constant 0 : i32
    return %c0_i32, %c0_i32_0 : i32, i32
  }
  func.func @transform_6(%arg0: i32) -> (i32, i32) {
    %c0_i32 = arith.constant 0 : i32
    %c0_i32_0 = arith.constant 0 : i32
    %c0_i32_1 = arith.constant 0 : i32
    return %c0_i32, %c0_i32_0 : i32, i32
  }
  func.func @transform_7(%arg0: i32) -> (i32, i32) {
    %c0_i32 = arith.constant 0 : i32
    %c0_i32_0 = arith.constant 0 : i32
    %c0_i32_1 = arith.constant 0 : i32
    return %c0_i32, %c0_i32_0 : i32, i32
  }
  func.func @transform_8(%arg0: i32) -> (i32, i32) {
    %c0_i32 = arith.constant 0 : i32
    %c0_i32_0 = arith.constant 0 : i32
    %c0_i32_1 = arith.constant 0 : i32
    return %c0_i32, %c0_i32_0 : i32, i32
  }
  func.func @transform_9(%arg0: i32) -> (i32, i32) {
    %c0_i32 = arith.constant 0 : i32
    %c0_i32_0 = arith.constant 0 : i32
    %c0_i32_1 = arith.constant 0 : i32
    return %c0_i32, %c0_i32_0 : i32, i32
  }
  func.func @transform_10(%arg0: i32) -> (i32, i32, i32) {
    %c0_i32 = arith.constant 0 : i32
    %c0_i32_0 = arith.constant 0 : i32
    %c0_i32_1 = arith.constant 0 : i32
    return %arg0, %c0_i32, %c0_i32_0 : i32, i32, i32
  }
}

</mosaic_0001>

<bundles_post_ra>
// kernel: tpu_custom_call.1
= control target key start
LH: loop header
LB: loop body
LE: loop exit
PB: predicated region body
PF: predicated region fallthrough
CT: control target
= control target key end

     0   :  { %s8466_s0 = inlined_call_operand.vmem [shape: f32[1,8,16,128], index: 0, kind: input, shape index: {}]   ;;  %s8467_s1 = inlined_call_operand.vmem [shape: f32[128,16], index: 1, kind: input, shape index: {}]   ;;  %s8468_s2 = inlined_call_operand.vmem [shape: f32[128,1], index: 2, kind: input, shape index: {}]   ;;  %s8469_s3 = inlined_call_operand.vmem [shape: f32[128,32], index: 3, kind: input, shape index: {}]   ;;  %s8470_s4 = inlined_call_operand.vmem [shape: f32[32,32], index: 4, kind: input, shape index: {}]   ;;  %s8471_s5 = inlined_call_operand.vmem [shape: f32[32,1], index: 5, kind: input, shape index: {}]   ;;  %s8472_s6 = inlined_call_operand.vmem [shape: f32[32,32], index: 6, kind: input, shape index: {}]   ;;  %s8473_s7 = inlined_call_operand.vmem [shape: f32[32,1], index: 7, kind: input, shape index: {}]   ;;  %s8474_s8 = inlined_call_operand.vmem [shape: f32[1,32], index: 8, kind: input, shape index: {}]   ;;  %s8475_s9 = inlined_call_operand.<no memory space> [shape: f32[1,1], index: 9, kind: input, shape index: {}]   ;;  %s8476_s10 = inlined_call_operand.hbm [shape: f32[1,8,128], index: 10, kind: output, shape index: {}]  }
   0x1   :  { %v15_v0 = vstv %s8475_s9 }
   0x2   :  { %16 = vst [vmem:[#allocation3] sm:$0x1] %v15_v0 }
   0x3   :  { %v87_v1 = vld [vmem:[%s8466_s0 + $0x8] sm:$0xff]  ;;  %v6690_v2 = vld [vmem:[%s8469_s3] sm:$0xff]  ;;  %vm88_vm0 = vcmask 261120   ;;  %v8477_v4 = vmov 0.0   ;;  %vm282_vm1 = vcmask 130048   ;;  %v6712_v7 = vld [vmem:[%s8469_s3 + $0x10] sm:$0xff] }
   0x4   :  { %v6695_v3 = vld [vmem:[%s8469_s3 + $0x8] sm:$0xff]  ;;  %5528 = vmatprep.subr.mxu0 %v8477_v4  ;;  %5554 = vmatprep.subr.mxu1 %v87_v1  ;;  %v86_v5 = vld [vmem:[%s8466_s0] sm:$0xff]  ;;  %v6726_v9 = vld [vmem:[%s8469_s3 + $0x18] sm:$0xff]  ;;  %v6623_v12 = vmov 0  }
   0x5   :  { %v6704_v6 = vld [vmem:[%s8467_s1] sm:$0xff]  ;;  %5529 = vmatpush3.msra.mxu0 %v8477_v4  ;;  %5530 = vmatprep.mubr.msk.f32.mxu0 %vm88_vm0, %v6690_v2  ;;  %v6719_v8 = vld [vmem:[%s8467_s1 + $0x8] sm:$0xff]  ;;  %v6731_v10 = vld [vmem:[%s8467_s1 + $0x10] sm:$0xff] }
   0x6   :  { %5555 = vmatpush3.msra.mxu1 %v87_v1  ;;  %5531 = vmatmul.mubr.msk.f32.vlgmr.msra.gmra.mxu0 %vm88_vm0, %v6695_v3  ;;  %v6738_v11 = vld [vmem:[%s8469_s3 + $0x20] sm:$0xff]  ;;  %v6749_v13 = vld [vmem:[%s8467_s1 + $0x18] sm:$0xff]  ;;  %v6756_v14 = vld [vmem:[%s8469_s3 + $0x28] sm:$0xff] }
   0x7   :  { %5556 = vmatprep.subr.mxu1 %v86_v5  ;;  %5558 = vmatprep.mubr.msk.f32.mxu1 %vm282_vm1, %v6704_v6  ;;  %v6761_v15 = vld [vmem:[%s8467_s1 + $0x20] sm:$0xff]  ;;  %v6766_v16 = vld [vmem:[%s8469_s3 + $0x30] sm:$0xff]  ;;  %v57_v17 = vld [vmem:[%s8468_s2 + $0x18] sm:$0xff] }
   0x8   :  { %5557 = vmatpush3.msra.mxu1 %v86_v5  ;;  %5533 = vmatprep.mubr.msk.f32.mxu0 %vm88_vm0, %v6712_v7  ;;  %v6780_v18 = vld [vmem:[%s8467_s1 + $0x28] sm:$0xff]  ;;  %v6787_v19 = vld [vmem:[%s8469_s3 + $0x38] sm:$0xff]  ;;  %v6792_v20 = vld [vmem:[%s8467_s1 + $0x30] sm:$0xff] }
   0x9   :  { %5559 = vmatmul.mubr.msk.f32.vlgmr.msra.gmra.mxu1 %vm282_vm1, %v6719_v8  ;;  %6094 = vset.pattern.permute.xlu0 %v6623_v12  ;;  %v56_v21 = vld [vmem:[%s8468_s2 + $0x10] sm:$0xff]  ;;  %v6800_v22 = vld [vmem:[%s8469_s3 + $0x40] sm:$0xff]  ;;  %v61_v23 = vld [vmem:[%s8468_s2 + $0x38] sm:$0xff] }
   0xa   :  { %5534 = vmatmul.mubr.msk.f32.gmra.mxu0 %vm88_vm0, %v6726_v9  ;;  %5561 = vmatprep.mubr.msk.f32.mxu1 %vm282_vm1, %v6731_v10  ;;  %v60_v24 = vld [vmem:[%s8468_s2 + $0x30] sm:$0xff]  ;;  %v6817_v25 = vld [vmem:[%s8467_s1 + $0x38] sm:$0xff]  ;;  %v6824_v26 = vld [vmem:[%s8469_s3 + $0x48] sm:$0xff] }
   0xb   :  { %5536 = vmatprep.mubr.msk.f32.mxu0 %vm88_vm0, %v6738_v11  ;;  %6095 = vset.pattern.permute.xlu1 %v6623_v12  ;;  %v6829_v27 = vld [vmem:[%s8467_s1 + $0x40] sm:$0xff]  ;;  %v6834_v28 = vld [vmem:[%s8469_s3 + $0x50] sm:$0xff]  ;;  %v55_v29 = vld [vmem:[%s8468_s2 + $0x8] sm:$0xff] }
   0xc   :  { %493 = vperm.xlu0 %6094, %v57_v17   ;;  %488 = vperm.xlu1 %6095, %v56_v21   ;;  %v59_v30 = vld [vmem:[%s8468_s2 + $0x28] sm:$0xff] }
   0xd   :  { %5562 = vmatmul.mubr.msk.f32.gmra.mxu1 %vm282_vm1, %v6749_v13  ;;  %v6851_v31 = vld [vmem:[%s8467_s1 + $0x48] sm:$0xff] }
   0xe   :  { %5537 = vmatmul.mubr.msk.f32.gmra.mxu0 %vm88_vm0, %v6756_v14  ;;  %5564 = vmatprep.mubr.msk.f32.mxu1 %vm282_vm1, %v6761_v15 }
   0xf   :  { %5539 = vmatprep.mubr.msk.f32.mxu0 %vm88_vm0, %v6766_v16 }
  0x10   :  { %513 = vperm.xlu0 %6094, %v61_v23   ;;  %508 = vperm.xlu1 %6095, %v60_v24  }
  0x11   :  { %5565 = vmatmul.mubr.msk.f32.gmra.mxu1 %vm282_vm1, %v6780_v18 }
  0x12   :  { %5540 = vmatmul.mubr.msk.f32.gmra.mxu0 %vm88_vm0, %v6787_v19  ;;  %5567 = vmatprep.mubr.msk.f32.mxu1 %vm282_vm1, %v6792_v20 }
  0x13   :  { %5542 = vmatprep.mubr.msk.f32.mxu0 %vm88_vm0, %v6800_v22 }
  0x15   :  { %5568 = vmatmul.mubr.msk.f32.gmra.mxu1 %vm282_vm1, %v6817_v25 }
  0x16   :  { %5543 = vmatmul.mubr.msk.f32.gmra.mxu0 %vm88_vm0, %v6824_v26  ;;  %5570 = vmatprep.mubr.msk.f32.mxu1 %vm282_vm1, %v6829_v27 }
  0x17   :  { %17 = vsyncpa [#allocation5], 0  ;;  %5545 = vmatprep.mubr.msk.f32.mxu0 %vm88_vm0, %v6834_v28  ;;  %v6858_v32 = vld [vmem:[%s8469_s3 + $0x58] sm:$0xff]  ;;  %v6863_v33 = vld [vmem:[%s8467_s1 + $0x50] sm:$0xff]  ;;  %483 = vperm.xlu0 %6094, %v55_v29   ;;  %vm6624_vm2 = vmmov 0   ;;  %vm4816_vm3 = vcmask 1040384  }
  0x18   :  { %v6868_v34 = vld [vmem:[%s8469_s3 + $0x60] sm:$0xff]  ;;  %503 = vperm.xlu1 %6095, %v59_v30   ;;  %v6885_v37 = vld [vmem:[%s8467_s1 + $0x58] sm:$0xff]  ;;  %v6897_v39 = vld [vmem:[%s8469_s3 + $0x68] sm:$0xff]  ;;  %vm4818_vm4 = vcmask 1041408   ;;  %vm4820_vm5 = vcmask 1042432   ;;  %vm4822_vm6 = vcmask 1043456  }
  0x19   :  { %v54_v35 = vld [vmem:[%s8468_s2] sm:$0xff]  ;;  %5571 = vmatmul.mubr.msk.f32.gmra.mxu1 %vm282_vm1, %v6851_v31  ;;  %v6902_v40 = vld [vmem:[%s8469_s3 + $0x70] sm:$0xff]  ;;  %v65_v41 = vld [vmem:[%s8468_s2 + $0x58] sm:$0xff]  ;;  %vm4824_vm7 = vcmask 1044480   ;;  %vm4826_vm8 = vcmask 1045504   ;;  %vm4828_vm9 = vcmask 1046528  }
  0x1a   :  { %v58_v36 = vld [vmem:[%s8468_s2 + $0x20] sm:$0xff]  ;;  %5546 = vmatmul.mubr.msk.f32.gmra.mxu0 %vm88_vm0, %v6858_v32  ;;  %5573 = vmatprep.mubr.msk.f32.mxu1 %vm282_vm1, %v6863_v33  ;;  %v64_v42 = vld [vmem:[%s8468_s2 + $0x50] sm:$0xff]  ;;  %v6919_v43 = vld [vmem:[%s8467_s1 + $0x68] sm:$0xff] }
  0x1b   :  { %5548 = vmatprep.mubr.msk.f32.mxu0 %vm88_vm0, %v6868_v34  ;;  %v6892_v38 = vld [vmem:[%s8467_s1 + $0x60] sm:$0xff]  ;;  %478 = vperm.xlu0 %6094, %v54_v35   ;;  %v6926_v44 = vld [vmem:[%s8467_s1 + $0x70] sm:$0xff]  ;;  %v6931_v45 = vld [vmem:[%s8469_s3 + $0x78] sm:$0xff] }
  0x1c   :  { %498 = vperm.xlu1 %6095, %v58_v36   ;;  %v63_v46 = vld [vmem:[%s8468_s2 + $0x48] sm:$0xff]  ;;  %v62_v47 = vld [vmem:[%s8468_s2 + $0x40] sm:$0xff]  ;;  %v6948_v48 = vld [vmem:[%s8467_s1 + $0x78] sm:$0xff] }
  0x1d   :  { %5574 = vmatmul.mubr.msk.f32.gmra.mxu1 %vm282_vm1, %v6885_v37  ;;  %v69_v49 = vld [vmem:[%s8468_s2 + $0x78] sm:$0xff]  ;;  %v68_v50 = vld [vmem:[%s8468_s2 + $0x70] sm:$0xff]  ;;  %v67_v51 = vld [vmem:[%s8468_s2 + $0x68] sm:$0xff] }
  0x1e   :  { %5576 = vmatprep.mubr.msk.f32.mxu1 %vm282_vm1, %v6892_v38  ;;  %5549 = vmatmul.mubr.msk.f32.gmra.mxu0 %vm88_vm0, %v6897_v39  ;;  %v66_v52 = vld [vmem:[%s8468_s2 + $0x60] sm:$0xff]  ;;  %v3382_v53 = vld [vmem:[%s8471_s5 + $0x18] sm:$0xff]  ;;  %v3381_v54 = vld [vmem:[%s8471_s5 + $0x10] sm:$0xff] }
  0x1f   :  { %5551 = vmatprep.mubr.msk.f32.mxu0 %vm88_vm0, %v6902_v40  ;;  %533 = vperm.xlu0 %6094, %v65_v41   ;;  %v3380_v55 = vld [vmem:[%s8471_s5 + $0x8] sm:$0xff]  ;;  %v3379_v56 = vld [vmem:[%s8471_s5] sm:$0xff]  ;;  %v3810_v57 = vld [vmem:[%s8473_s7 + $0x18] sm:$0xff] }
  0x20   :  { %528 = vperm.xlu1 %6095, %v64_v42   ;;  %v3809_v58 = vld [vmem:[%s8473_s7 + $0x10] sm:$0xff]  ;;  %v3808_v59 = vld [vmem:[%s8473_s7 + $0x8] sm:$0xff]  ;;  %v3807_v60 = vld [vmem:[%s8473_s7] sm:$0xff] }
  0x21   :  { %5577 = vmatmul.mubr.msk.f32.gmra.mxu1 %vm282_vm1, %v6919_v43  ;;  %v5186_v61 = vld [vmem:[#allocation3] ss:$0 sm:$0xff]  ;;  %v4909_v62 = vld [vmem:[%s8466_s0 + $0x18] sm:$0xff]  ;;  %v4908_v63 = vld [vmem:[%s8466_s0 + $0x10] sm:$0xff] }
  0x22   :  { %5579 = vmatprep.mubr.msk.f32.mxu1 %vm282_vm1, %v6926_v44  ;;  %5552 = vmatmul.mubr.msk.f32.gmra.mxu0 %vm88_vm0, %v6931_v45 }
  0x23   :  { %523 = vperm.xlu0 %6094, %v63_v46   ;;  %5590 = vmatprep.mubr.msk.f32.mxu0 %vm88_vm0, %v6690_v2 }
  0x24   :  { %518 = vperm.xlu1 %6095, %v62_v47   ;;  %5614 = vmatprep.subr.mxu1 %v4909_v62 }
  0x25   :  { %5580 = vmatmul.mubr.msk.f32.gmra.mxu1 %vm282_vm1, %v6948_v48 }
  0x26   :  { %5618 = vmatprep.mubr.msk.f32.mxu1 %vm282_vm1, %v6704_v6  ;;  %5615 = vmatpush3.msra.mxu1 %v4909_v62 }
  0x27   :  { %553 = vperm.xlu0 %6094, %v69_v49   ;;  %5616 = vmatprep.subr.mxu1 %v4908_v63 }
  0x28   :  { %548 = vperm.xlu1 %6095, %v68_v50   ;;  %5617 = vmatpush3.msra.mxu1 %v4908_v63 }
  0x29   :  { %5619 = vmatmul.mubr.msk.f32.vlgmr.msra.gmra.mxu1 %vm282_vm1, %v6719_v8 }
  0x2a   :  { %5621 = vmatprep.mubr.msk.f32.mxu1 %vm282_vm1, %v6731_v10 }
  0x2b   :  { %543 = vperm.xlu0 %6094, %v67_v51  }
  0x2c   :  { %538 = vperm.xlu1 %6095, %v66_v52  }
  0x2d   :  { %5622 = vmatmul.mubr.msk.f32.gmra.mxu1 %vm282_vm1, %v6749_v13 }
  0x2e   :  { %5624 = vmatprep.mubr.msk.f32.mxu1 %vm282_vm1, %v6761_v15 }
  0x2f   :  { %3400 = vperm.xlu0 %6094, %v3382_v53  }
  0x30   :  { %3395 = vperm.xlu1 %6095, %v3381_v54  }
  0x31   :  { %5625 = vmatmul.mubr.msk.f32.gmra.mxu1 %vm282_vm1, %v6780_v18 }
  0x32   :  { %5627 = vmatprep.mubr.msk.f32.mxu1 %vm282_vm1, %v6792_v20 }
  0x33   :  { %3390 = vperm.xlu0 %6094, %v3380_v55  }
  0x34   :  { %3385 = vperm.xlu1 %6095, %v3379_v56  }
  0x35   :  { %5628 = vmatmul.mubr.msk.f32.gmra.mxu1 %vm282_vm1, %v6817_v25 }
  0x36   :  { %5630 = vmatprep.mubr.msk.f32.mxu1 %vm282_vm1, %v6829_v27 }
  0x37   :  { %3828 = vperm.xlu0 %6094, %v3810_v57  }
  0x38   :  { %3823 = vperm.xlu1 %6095, %v3809_v58  }
  0x39   :  { %5631 = vmatmul.mubr.msk.f32.gmra.mxu1 %vm282_vm1, %v6851_v31 }
  0x3a   :  { %5633 = vmatprep.mubr.msk.f32.mxu1 %vm282_vm1, %v6863_v33 }
  0x3b   :  { %3818 = vperm.xlu0 %6094, %v3808_v59  }
  0x3c   :  { %3813 = vperm.xlu1 %6095, %v3807_v60  }
  0x3d   :  { %5634 = vmatmul.mubr.msk.f32.gmra.mxu1 %vm282_vm1, %v6885_v37 }
  0x3e   :  { %5636 = vmatprep.mubr.msk.f32.mxu1 %vm282_vm1, %v6892_v38 }
  0x3f   :  { %4837 = vperm.xlu0 %6094, %v5186_v61  }
  0x41   :  { %5637 = vmatmul.mubr.msk.f32.gmra.mxu1 %vm282_vm1, %v6919_v43 }
  0x42   :  { %5639 = vmatprep.mubr.msk.f32.mxu1 %vm282_vm1, %v6926_v44 }
  0x45   :  { %5640 = vmatmul.mubr.msk.f32.gmra.mxu1 %vm282_vm1, %v6948_v48 }
  0x46   :  { %5678 = vmatprep.mubr.msk.f32.mxu1 %vm282_vm1, %v6704_v6 }
  0x87   :  { %v7030_v0 = vpop.permute.xlu0 %493  ;;  %v7032_v1 = vpop.permute.xlu1 %488 }
  0x88   :  { %8533 = vst [vmem:[#allocation7_spill] sm:$0xff] %v7030_v0  ;;  %8534 = vst [vmem:[#allocation8_spill] sm:$0xff] %v7032_v1 }
  0x8b   :  { %v7034_v5 = vpop.permute.xlu0 %513  ;;  %v7036_v12 = vpop.permute.xlu1 %508 }
  0x8c   :  { %8535 = vst [vmem:[#allocation9_spill] sm:$0xff] %v7034_v5  ;;  %8536 = vst [vmem:[#allocation10_spill] sm:$0xff] %v7036_v12 }
  0x92   :  { %v7038_v23 = vpop.permute.xlu0 %483 }
  0x93   :  { %8537 = vst [vmem:[#allocation11_spill] sm:$0xff] %v7038_v23  ;;  %v7040_v30 = vpop.permute.xlu1 %503 }
  0x94   :  { %8538 = vst [vmem:[#allocation12_spill] sm:$0xff] %v7040_v30 }
  0x96   :  { %v7042_v50 = vpop.permute.xlu0 %478 }
  0x97   :  { %8539 = vst [vmem:[#allocation13_spill] sm:$0xff] %v7042_v50  ;;  %v7045_v54 = vpop.permute.xlu1 %498 }
  0x98   :  { %8540 = vst [vmem:[#allocation14_spill] sm:$0xff] %v7045_v54 }
  0xc6   :  { %v5532_v17 = vpop.f32.mrf.mxu0 }
  0xc8   :  { %v203_v21 = vpop.f32.mrf.mxu0 }
  0xc9   :  { %v5560_v24 = vpop.f32.mrf.mxu1 }
  0xca   :  { %v5535_v29 = vpop.f32.mrf.mxu0  ;;  %v403_v35 = vadd.f32 %v5560_v24, %v5532_v17  ;;  %v7050_v24 = vpop.permute.xlu0 %533 }
  0xcb   :  { %v397_v36 = vpop.f32.mrf.mxu1  ;;  %8541 = vst [vmem:[#allocation15_spill] sm:$0xff] %v7050_v24 }
  0xcc   :  { %v213_v41 = vpop.f32.mrf.mxu0  ;;  %v398_v42 = vadd.f32 %v397_v36, %v203_v21  ;;  %v557_v51 = vadd.f32 %v7038_v23, %v403_v35 }
  0xcd   :  { %v5563_v46 = vpop.f32.mrf.mxu1 }
  0xce   :  { %v413_v47 = vadd.f32 %v5563_v46, %v5535_v29  ;;  %v5538_v49 = vpop.f32.mrf.mxu0  ;;  %v556_v55 = vadd.f32 %v7042_v50, %v398_v42  ;;  %v573_v61 = vmul.f32 0.5, %v557_v51 }
  0xcf   :  { %v407_v52 = vpop.f32.mrf.mxu1 }
  0xd0   :  { %v223_v53 = vpop.f32.mrf.mxu0  ;;  %v408_v56 = vadd.f32 %v407_v52, %v213_v41  ;;  %v559_v58 = vadd.f32 %v7030_v0, %v413_v47  ;;  %v572_v29 = vmul.f32 0.5, %v556_v55  ;;  %6096 = vtanh.f32 %v573_v61 }
  0xd1   :  { %v5566_v57 = vpop.f32.mrf.mxu1 }
  0xd2   :  { %v423_v59 = vadd.f32 %v5566_v57, %v5538_v49  ;;  %v5541_v60 = vpop.f32.mrf.mxu0  ;;  %v558_v35 = vadd.f32 %v7032_v1, %v408_v56  ;;  %v575_v46 = vmul.f32 0.5, %v559_v58  ;;  %v7054_v49 = vpop.permute.xlu1 %528 }
  0xd3   :  { %v417_v62 = vpop.f32.mrf.mxu1  ;;  %8542 = vst [vmem:[#allocation16_spill] sm:$0xff] %v7054_v49 }
  0xd4   :  { %v561_v63 = vadd.f32 %v7040_v30, %v423_v59  ;;  %v418_v17 = vadd.f32 %v417_v62, %v223_v53  ;;  %v233_v21 = vpop.f32.mrf.mxu0  ;;  %v574_v55 = vmul.f32 0.5, %v558_v35 }
  0xd5   :  { %v5569_v36 = vpop.f32.mrf.mxu1 }
  0xd6   :  { %v589_v42 = vmul.f32 0.5, %v561_v63  ;;  %v560_v41 = vadd.f32 %v7045_v54, %v418_v17  ;;  %v433_v52 = vadd.f32 %v5569_v36, %v5541_v60  ;;  %v5544_v47 = vpop.f32.mrf.mxu0  ;;  %v7058_v36 = vpop.permute.xlu0 %523 }
  0xd7   :  { %v427_v51 = vpop.f32.mrf.mxu1  ;;  %8543 = vst [vmem:[#allocation17_spill] sm:$0xff] %v7058_v36 }
  0xd8   :  { %6098 = vtanh.f32 %v589_v42  ;;  %v588_v57 = vmul.f32 0.5, %v560_v41  ;;  %v563_v53 = vadd.f32 %v7034_v5, %v433_v52  ;;  %v428_v59 = vadd.f32 %v427_v51, %v233_v21  ;;  %v243_v62 = vpop.f32.mrf.mxu0  ;;  %v7061_v51 = vpop.permute.xlu1 %518 }
  0xd9   :  { %6100 = vtanh.f32 %v572_v29  ;;  %v5572_v56 = vpop.f32.mrf.mxu1  ;;  %8544 = vst [vmem:[#allocation18_spill] sm:$0xff] %v7061_v51 }
  0xda   :  { %6102 = vtanh.f32 %v575_v46  ;;  %v591_v58 = vmul.f32 0.5, %v563_v53  ;;  %v562_v63 = vadd.f32 %v7036_v12, %v428_v59  ;;  %v443_v17 = vadd.f32 %v5572_v56, %v5544_v47  ;;  %v5547_v60 = vpop.f32.mrf.mxu0 }
  0xdb   :  { %6104 = vtanh.f32 %v588_v57  ;;  %v437_v61 = vpop.f32.mrf.mxu1 }
  0xdc   :  { %6106 = vtanh.f32 %v591_v58  ;;  %v590_v42 = vmul.f32 0.5, %v562_v63  ;;  %v565_v41 = vadd.f32 %v7058_v36, %v443_v17  ;;  %v438_v52 = vadd.f32 %v437_v61, %v243_v62  ;;  %v253_v21 = vpop.f32.mrf.mxu0  ;;  %v7065_v63 = vpop.permute.xlu0 %553 }
  0xdd   :  { %6108 = vtanh.f32 %v574_v55  ;;  %v5575_v29 = vpop.f32.mrf.mxu1  ;;  %8545 = vst [vmem:[#allocation19_spill] sm:$0xff] %v7065_v63  ;;  %v6097_v61 = vpop.eup %6096 }
  0xde   :  { %6110 = vtanh.f32 %v590_v42  ;;  %v564_v35 = vadd.f32 %v7061_v51, %v438_v52  ;;  %v453_v46 = vadd.f32 %v5575_v29, %v5547_v60  ;;  %v5550_v47 = vpop.f32.mrf.mxu0  ;;  %v7068_v42 = vpop.permute.xlu1 %548 }
  0xdf   :  { %6112 = vtanh.f32 %v565_v41  ;;  %v447_v53 = vpop.f32.mrf.mxu1  ;;  %8546 = vst [vmem:[#allocation20_spill] sm:$0xff] %v7068_v42 }
  0xe0   :  { %v567_v57 = vadd.f32 %v7050_v24, %v453_v46  ;;  %v263_v59 = vpop.f32.mrf.mxu0  ;;  %6114 = vtanh.f32 %v564_v35  ;;  %v448_v56 = vadd.f32 %v447_v53, %v253_v21  ;;  %v7070_v51 = vpop.permute.xlu0 %543 }
  0xe1   :  { %v5578_v58 = vpop.f32.mrf.mxu1  ;;  %8547 = vst [vmem:[#allocation21_spill] sm:$0xff] %v7070_v51 }
  0xe2   :  { %6116 = vtanh.f32 %v567_v57  ;;  %v5553_v62 = vpop.f32.mrf.mxu0  ;;  %v566_v55 = vadd.f32 %v7054_v49, %v448_v56  ;;  %v463_v41 = vadd.f32 %v5578_v58, %v5550_v47  ;;  %v581_v57 = vmul.f32 0.5, %v6097_v61  ;;  %v7074_v47 = vpop.permute.xlu1 %538 }
  0xe3   :  { %v457_v17 = vpop.f32.mrf.mxu1  ;;  %8548 = vst [vmem:[#allocation22_spill] sm:$0xff] %v7074_v47 }
  0xe4   :  { %6118 = vtanh.f32 %v566_v55  ;;  %v273_v46 = vpop.f32.mrf.mxu0  ;;  %v458_v35 = vadd.f32 %v457_v17, %v263_v59  ;;  %v569_v49 = vadd.f32 %v7070_v51, %v463_v41  ;;  %v585_v30 = vadd.f32 0.5, %v581_v57 }
  0xe5   :  { %v6099_v60 = vpop.eup %6098  ;;  %v5581_v52 = vpop.f32.mrf.mxu1 }
  0xe6   :  { %v6101_v29 = vpop.eup %6100  ;;  %v473_v21 = vadd.f32 %v5581_v52, %v5553_v62  ;;  %v597_v36 = vmul.f32 0.5, %v6099_v60  ;;  %v568_v17 = vadd.f32 %v7074_v47, %v458_v35 }
  0xe7   :  { %v6103_v4 = vpop.eup %6102  ;;  %v467_v53 = vpop.f32.mrf.mxu1  ;;  %v580_v58 = vmul.f32 0.5, %v6101_v29 }
  0xe8   :  { %v6105_v24 = vpop.eup %6104  ;;  %v571_v12 = vadd.f32 %v7065_v63, %v473_v21  ;;  %v468_v5 = vadd.f32 %v467_v53, %v273_v46  ;;  %v583_v54 = vmul.f32 0.5, %v6103_v4  ;;  %v601_v0 = vadd.f32 0.5, %v597_v36 }
  0xe9   :  { %v6107_v56 = vpop.eup %6106  ;;  %v596_v62 = vmul.f32 0.5, %v6105_v24  ;;  %v609_v46 = vmul.f32 0.5, %v569_v49  ;;  %v584_v29 = vadd.f32 0.5, %v580_v58  ;;  %v608_v35 = vmul.f32 0.5, %v568_v17 }
  0xea   :  { %v6109_v55 = vpop.eup %6108  ;;  %v599_v1 = vmul.f32 0.5, %v6107_v56  ;;  %v611_v52 = vmul.f32 0.5, %v571_v12  ;;  %v570_v61 = vadd.f32 %v7068_v42, %v468_v5  ;;  %v587_v4 = vadd.f32 0.5, %v583_v54 }
  0xeb   :  { %v6111_v59 = vpop.eup %6110  ;;  %v582_v21 = vmul.f32 0.5, %v6109_v55  ;;  %v600_v24 = vadd.f32 0.5, %v596_v62  ;;  %v625_v12 = vmul.f32 0.0, %v601_v0 }
  0xec   :  { %v6113_v60 = vpop.eup %6112  ;;  %v603_v41 = vadd.f32 0.5, %v599_v1  ;;  %v598_v51 = vmul.f32 0.5, %v6111_v59  ;;  %6120 = vtanh.f32 %v611_v52  ;;  %v610_v53 = vmul.f32 0.5, %v570_v61 }
  0xed   :  { %v6115_v63 = vpop.eup %6114  ;;  %v629_v56 = vmul.f32 %v6113_v60, %v585_v30  ;;  %v586_v57 = vadd.f32 0.5, %v582_v21  ;;  %v624_v59 = vmul.f32 0.0, %v600_v24 }
  0xee   :  { %v602_v23 = vadd.f32 0.5, %v598_v51  ;;  %6122 = vtanh.f32 %v610_v53  ;;  %v627_v5 = vmul.f32 0.0, %v603_v41  ;;  %v628_v36 = vmul.f32 %v6115_v63, %v584_v29 }
  0xef   :  { %v6117_v50 = vpop.eup %6116  ;;  %6124 = vtanh.f32 %v609_v46  ;;  %v7078_v55 = vadd.f32 %v629_v56, %v625_v12 }
  0xf0   :  { %v631_v42 = vmul.f32 %v6117_v50, %v587_v4  ;;  %v626_v58 = vmul.f32 0.0, %v602_v23  ;;  %6126 = vtanh.f32 %v608_v35  ;;  %v7085_v51 = vadd.f32 %v628_v36, %v624_v59 }
  0xf1   :  { %v6119_v1 = vpop.eup %6118 }
  0xf2   :  { %v7080_v49 = vadd.f32 %v631_v42, %v627_v5  ;;  %v630_v54 = vmul.f32 %v6119_v1, %v586_v57 }
  0xf4   :  { %6128 = vtanh.f32 %v7080_v49  ;;  %v7083_v30 = vadd.f32 %v630_v54, %v626_v58  ;;  %v8553_v58 = vld [vmem:[#allocation11_spill] sm:$0xff] }
  0xf5   :  { %6130 = vtanh.f32 %v7078_v55 }
  0xf6   :  { %6132 = vtanh.f32 %v7083_v30 }
  0xf7   :  { %6134 = vtanh.f32 %v7085_v51 }
  0xf9   :  { %v6121_v0 = vpop.eup %6120 }
  0xfa   :  { %v619_v63 = vmul.f32 0.5, %v6121_v0 }
  0xfb   :  { %v6123_v50 = vpop.eup %6122 }
  0xfc   :  { %v6125_v42 = vpop.eup %6124  ;;  %v618_v62 = vmul.f32 0.5, %v6123_v50  ;;  %v623_v17 = vadd.f32 0.5, %v619_v63 }
  0xfd   :  { %v6127_v23 = vpop.eup %6126  ;;  %v617_v61 = vmul.f32 0.5, %v6125_v42 }
  0xfe   :  { %v622_v21 = vadd.f32 0.5, %v618_v62  ;;  %v616_v46 = vmul.f32 0.5, %v6127_v23  ;;  %v8555_v23 = vld [vmem:[#allocation7_spill] sm:$0xff] }
  0xff   :  { %v621_v4 = vadd.f32 0.5, %v617_v61 }
 0x100   :  { %v620_v35 = vadd.f32 0.5, %v616_v46 }
 0x101   :  { %v6129_v52 = vpop.eup %6128 }
 0x102   :  { %v7090_v60 = vmul.f32 %v6129_v52, %v623_v17  ;;  %v6131_v41 = vpop.eup %6130 }
 0x103   :  { %v6133_v53 = vpop.eup %6132  ;;  %v7097_v24 = vmul.f32 %v6131_v41, %v621_v4 }
 0x104   :  { %8549 = vst [vmem:[#allocation23_spill] sm:$0xff] %v7090_v60  ;;  %5582 = vmatprep.subr.mxu0 %v7090_v60  ;;  %v7094_v29 = vmul.f32 %v6133_v53, %v622_v21  ;;  %v6135_v56 = vpop.eup %6134  ;;  %v8556_v21 = vld [vmem:[#allocation12_spill] sm:$0xff] }
 0x105   :  { %5583 = vmatpush3.msra.mxu0 %v7090_v60  ;;  %8551 = vst [vmem:[#allocation25_spill] sm:$0xff] %v7097_v24  ;;  %v7101_v12 = vmul.f32 %v6135_v56, %v620_v35  ;;  %v8557_v35 = vld [vmem:[#allocation8_spill] sm:$0xff] }
 0x106   :  { %8550 = vst [vmem:[#allocation24_spill] sm:$0xff] %v7094_v29  ;;  %5584 = vmatprep.subr.mxu0 %v7094_v29 }
 0x107   :  { %5585 = vmatpush3.msra.mxu0 %v7094_v29  ;;  %8552 = vst [vmem:[#allocation26_spill] sm:$0xff] %v7101_v12 }
 0x108   :  { %5586 = vmatprep.subr.mxu0 %v7097_v24 }
 0x109   :  { %5587 = vmatpush3.msra.mxu0 %v7097_v24 }
 0x10a   :  { %5588 = vmatprep.subr.mxu0 %v7101_v12 }
 0x10b   :  { %5589 = vmatpush3.msra.mxu0 %v7101_v12 }
 0x10c   :  { %5591 = vmatmul.mubr.msk.f32.vlgmr.msra.gmra.mxu0 %vm88_vm0, %v6695_v3  ;;  %v4943_v3 = vld [vmem:[%s8466_s0 + $0x28] sm:$0xff] }
 0x10d   :  { %5593 = vmatprep.mubr.msk.f32.mxu0 %vm88_vm0, %v6712_v7  ;;  %5674 = vmatprep.subr.mxu1 %v4943_v3  ;;  %v4942_v7 = vld [vmem:[%s8466_s0 + $0x20] sm:$0xff] }
 0x10e   :  { %5675 = vmatpush3.msra.mxu1 %v4943_v3 }
 0x10f   :  { %5676 = vmatprep.subr.mxu1 %v4942_v7 }
 0x110   :  { %5594 = vmatmul.mubr.msk.f32.gmra.mxu0 %vm88_vm0, %v6726_v9  ;;  %5677 = vmatpush3.msra.mxu1 %v4942_v7 }
 0x111   :  { %5596 = vmatprep.mubr.msk.f32.mxu0 %vm88_vm0, %v6738_v11  ;;  %5679 = vmatmul.mubr.msk.f32.vlgmr.msra.gmra.mxu1 %vm282_vm1, %v6719_v8 }
 0x112   :  { %5681 = vmatprep.mubr.msk.f32.mxu1 %vm282_vm1, %v6731_v10 }
 0x114   :  { %5597 = vmatmul.mubr.msk.f32.gmra.mxu0 %vm88_vm0, %v6756_v14 }
 0x115   :  { %5599 = vmatprep.mubr.msk.f32.mxu0 %vm88_vm0, %v6766_v16  ;;  %5682 = vmatmul.mubr.msk.f32.gmra.mxu1 %vm282_vm1, %v6749_v13 }
 0x116   :  { %5684 = vmatprep.mubr.msk.f32.mxu1 %vm282_vm1, %v6761_v15 }
 0x118   :  { %5600 = vmatmul.mubr.msk.f32.gmra.mxu0 %vm88_vm0, %v6787_v19 }
 0x119   :  { %5602 = vmatprep.mubr.msk.f32.mxu0 %vm88_vm0, %v6800_v22  ;;  %5685 = vmatmul.mubr.msk.f32.gmra.mxu1 %vm282_vm1, %v6780_v18 }
 0x11a   :  { %5687 = vmatprep.mubr.msk.f32.mxu1 %vm282_vm1, %v6792_v20 }
 0x11c   :  { %5603 = vmatmul.mubr.msk.f32.gmra.mxu0 %vm88_vm0, %v6824_v26 }
 0x11d   :  { %5605 = vmatprep.mubr.msk.f32.mxu0 %vm88_vm0, %v6834_v28  ;;  %5688 = vmatmul.mubr.msk.f32.gmra.mxu1 %vm282_vm1, %v6817_v25 }
 0x11e   :  { %5690 = vmatprep.mubr.msk.f32.mxu1 %vm282_vm1, %v6829_v27 }
 0x120   :  { %5606 = vmatmul.mubr.msk.f32.gmra.mxu0 %vm88_vm0, %v6858_v32 }
 0x121   :  { %5608 = vmatprep.mubr.msk.f32.mxu0 %vm88_vm0, %v6868_v34  ;;  %5691 = vmatmul.mubr.msk.f32.gmra.mxu1 %vm282_vm1, %v6851_v31 }
 0x122   :  { %5693 = vmatprep.mubr.msk.f32.mxu1 %vm282_vm1, %v6863_v33 }
 0x124   :  { %5609 = vmatmul.mubr.msk.f32.gmra.mxu0 %vm88_vm0, %v6897_v39 }
 0x125   :  { %5611 = vmatprep.mubr.msk.f32.mxu0 %vm88_vm0, %v6902_v40  ;;  %5694 = vmatmul.mubr.msk.f32.gmra.mxu1 %vm282_vm1, %v6885_v37 }
 0x126   :  { %5696 = vmatprep.mubr.msk.f32.mxu1 %vm282_vm1, %v6892_v38 }
 0x128   :  { %5612 = vmatmul.mubr.msk.f32.gmra.mxu0 %vm88_vm0, %v6931_v45 }
 0x129   :  { %5650 = vmatprep.mubr.msk.f32.mxu0 %vm88_vm0, %v6690_v2  ;;  %5697 = vmatmul.mubr.msk.f32.gmra.mxu1 %vm282_vm1, %v6919_v43  ;;  %v5620_v2 = vpop.f32.mrf.mxu1 }
 0x12a   :  { %5699 = vmatprep.mubr.msk.f32.mxu1 %vm282_vm1, %v6926_v44 }
 0x12b   :  { %v862_v8 = vpop.f32.mrf.mxu1 }
 0x12d   :  { %5700 = vmatmul.mubr.msk.f32.gmra.mxu1 %vm282_vm1, %v6948_v48  ;;  %v5623_v9 = vpop.f32.mrf.mxu1 }
 0x12e   :  { %5738 = vmatprep.mubr.msk.f32.mxu1 %vm282_vm1, %v6704_v6  ;;  %v8554_v6 = vld [vmem:[#allocation13_spill] sm:$0xff] }
 0x12f   :  { %v872_v10 = vpop.f32.mrf.mxu1 }
 0x131   :  { %v5626_v11 = vpop.f32.mrf.mxu1 }
 0x133   :  { %v882_v13 = vpop.f32.mrf.mxu1 }
 0x135   :  { %v5629_v15 = vpop.f32.mrf.mxu1 }
 0x137   :  { %v892_v18 = vpop.f32.mrf.mxu1 }
 0x139   :  { %v5632_v57 = vpop.f32.mrf.mxu1 }
 0x13b   :  { %v902_v50 = vpop.f32.mrf.mxu1 }
 0x13d   :  { %v5635_v4 = vpop.f32.mrf.mxu1 }
 0x1cc   :  { %v5592_v20 = vpop.f32.mrf.mxu0 }
 0x1cd   :  { %v868_v25 = vadd.f32 %v5620_v2, %v5592_v20 }
 0x1ce   :  { %v717_v5 = vpop.f32.mrf.mxu0 }
 0x1cf   :  { %v863_v36 = vadd.f32 %v862_v8, %v717_v5  ;;  %v942_v54 = vadd.f32 %v868_v25, %v8553_v58 }
 0x1d0   :  { %v5595_v1 = vpop.f32.mrf.mxu0 }
 0x1d1   :  { %v878_v59 = vadd.f32 %v5623_v9, %v5595_v1  ;;  %v941_v63 = vadd.f32 %v863_v36, %v8554_v6  ;;  %v958_v61 = vmul.f32 0.5, %v942_v54  ;;  %v8558_v9 = vld [vmem:[#allocation14_spill] sm:$0xff] }
 0x1d2   :  { %v727_v0 = vpop.f32.mrf.mxu0 }
 0x1d3   :  { %v873_v42 = vadd.f32 %v872_v10, %v727_v0  ;;  %v944_v17 = vadd.f32 %v878_v59, %v8555_v23  ;;  %v957_v56 = vmul.f32 0.5, %v941_v63  ;;  %6136 = vtanh.f32 %v958_v61  ;;  %v912_v59 = vpop.f32.mrf.mxu1  ;;  %v8560_v63 = vld [vmem:[#allocation10_spill] sm:$0xff]  ;;  %v8561_v61 = vld [vmem:[#allocation17_spill] sm:$0xff] }
 0x1d4   :  { %v5598_v62 = vpop.f32.mrf.mxu0 }
 0x1d5   :  { %v888_v52 = vadd.f32 %v5626_v11, %v5598_v62  ;;  %v943_v3 = vadd.f32 %v873_v42, %v8557_v35  ;;  %v960_v2 = vmul.f32 0.5, %v944_v17  ;;  %v8559_v11 = vld [vmem:[#allocation9_spill] sm:$0xff]  ;;  %v5638_v17 = vpop.f32.mrf.mxu1 }
 0x1d6   :  { %v737_v41 = vpop.f32.mrf.mxu0 }
 0x1d7   :  { %v946_v46 = vadd.f32 %v888_v52, %v8556_v21  ;;  %v883_v53 = vadd.f32 %v882_v13, %v737_v41  ;;  %v959_v13 = vmul.f32 0.5, %v943_v3 }
 0x1d8   :  { %v5601_v7 = vpop.f32.mrf.mxu0 }
 0x1d9   :  { %v974_v8 = vmul.f32 0.5, %v946_v46  ;;  %v945_v20 = vadd.f32 %v883_v53, %v8558_v9  ;;  %v898_v25 = vadd.f32 %v5629_v15, %v5601_v7  ;;  %v922_v7 = vpop.f32.mrf.mxu1 }
 0x1da   :  { %v747_v10 = vpop.f32.mrf.mxu0 }
 0x1db   :  { %6138 = vtanh.f32 %v974_v8  ;;  %v973_v5 = vmul.f32 0.5, %v945_v20  ;;  %v948_v36 = vadd.f32 %v898_v25, %v8559_v11  ;;  %v893_v1 = vadd.f32 %v892_v18, %v747_v10  ;;  %v8562_v18 = vld [vmem:[#allocation18_spill] sm:$0xff]  ;;  %v8563_v8 = vld [vmem:[#allocation15_spill] sm:$0xff]  ;;  %v5641_v10 = vpop.f32.mrf.mxu1 }
 0x1dc   :  { %6140 = vtanh.f32 %v957_v56  ;;  %v5604_v54 = vpop.f32.mrf.mxu0 }
 0x1dd   :  { %6142 = vtanh.f32 %v960_v2  ;;  %v976_v0 = vmul.f32 0.5, %v948_v36  ;;  %v947_v42 = vadd.f32 %v893_v1, %v8560_v63  ;;  %v908_v62 = vadd.f32 %v5632_v57, %v5604_v54 }
 0x1de   :  { %6144 = vtanh.f32 %v973_v5  ;;  %v757_v52 = vpop.f32.mrf.mxu0  ;;  %v8564_v5 = vld [vmem:[#allocation16_spill] sm:$0xff] }
 0x1df   :  { %6146 = vtanh.f32 %v976_v0  ;;  %v975_v15 = vmul.f32 0.5, %v947_v42  ;;  %v950_v41 = vadd.f32 %v908_v62, %v8561_v61  ;;  %v903_v46 = vadd.f32 %v902_v50, %v757_v52 }
 0x1e0   :  { %6148 = vtanh.f32 %v959_v13  ;;  %v5607_v53 = vpop.f32.mrf.mxu0  ;;  %v6137_v50 = vpop.eup %6136 }
 0x1e1   :  { %6150 = vtanh.f32 %v975_v15  ;;  %v949_v56 = vadd.f32 %v903_v46, %v8562_v18  ;;  %v918_v3 = vadd.f32 %v5635_v4, %v5607_v53  ;;  %v932_v4 = vpop.f32.mrf.mxu1  ;;  %v966_v53 = vmul.f32 0.5, %v6137_v50 }
 0x1e2   :  { %6152 = vtanh.f32 %v950_v41  ;;  %v767_v2 = vpop.f32.mrf.mxu0 }
 0x1e3   :  { %v952_v20 = vadd.f32 %v918_v3, %v8563_v8  ;;  %6154 = vtanh.f32 %v949_v56  ;;  %v913_v57 = vadd.f32 %v912_v59, %v767_v2  ;;  %v8565_v3 = vld [vmem:[#allocation21_spill] sm:$0xff]  ;;  %v970_v50 = vadd.f32 0.5, %v966_v53 }
 0x1e4   :  { %v5610_v25 = vpop.f32.mrf.mxu0 }
 0x1e5   :  { %6156 = vtanh.f32 %v952_v20  ;;  %v951_v36 = vadd.f32 %v913_v57, %v8564_v5  ;;  %v928_v54 = vadd.f32 %v5638_v17, %v5610_v25  ;;  %v8566_v20 = vld [vmem:[#allocation19_spill] sm:$0xff] }
 0x1e6   :  { %v777_v1 = vpop.f32.mrf.mxu0 }
 0x1e7   :  { %6158 = vtanh.f32 %v951_v36  ;;  %v923_v52 = vadd.f32 %v922_v7, %v777_v1  ;;  %v954_v2 = vadd.f32 %v928_v54, %v8565_v3 }
 0x1e8   :  { %v6139_v13 = vpop.eup %6138  ;;  %v5613_v0 = vpop.f32.mrf.mxu0 }
 0x1e9   :  { %v6141_v42 = vpop.eup %6140  ;;  %v938_v15 = vadd.f32 %v5641_v10, %v5613_v0  ;;  %v982_v59 = vmul.f32 0.5, %v6139_v13  ;;  %v953_v5 = vadd.f32 %v923_v52, %v7074_v47  ;;  %v8567_v10 = vld [vmem:[#allocation20_spill] sm:$0xff]  ;;  %v994_v3 = vmul.f32 0.5, %v954_v2 }
 0x1ea   :  { %v6143_v62 = vpop.eup %6142  ;;  %v787_v41 = vpop.f32.mrf.mxu0  ;;  %v965_v29 = vmul.f32 0.5, %v6141_v42 }
 0x1eb   :  { %v6145_v46 = vpop.eup %6144  ;;  %v956_v57 = vadd.f32 %v938_v15, %v8566_v20  ;;  %v933_v12 = vadd.f32 %v932_v4, %v787_v41  ;;  %v968_v36 = vmul.f32 0.5, %v6143_v62  ;;  %v986_v13 = vadd.f32 0.5, %v982_v59 }
 0x1ec   :  { %v6147_v56 = vpop.eup %6146  ;;  %v981_v60 = vmul.f32 0.5, %v6145_v46  ;;  %v969_v42 = vadd.f32 0.5, %v965_v29  ;;  %v993_v52 = vmul.f32 0.5, %v953_v5 }
 0x1ed   :  { %v6149_v24 = vpop.eup %6148  ;;  %v984_v17 = vmul.f32 0.5, %v6147_v56  ;;  %v996_v7 = vmul.f32 0.5, %v956_v57  ;;  %v955_v1 = vadd.f32 %v933_v12, %v8567_v10  ;;  %v972_v62 = vadd.f32 0.5, %v968_v36 }
 0x1ee   :  { %v6151_v25 = vpop.eup %6150  ;;  %v967_v54 = vmul.f32 0.5, %v6149_v24  ;;  %v985_v46 = vadd.f32 0.5, %v981_v60  ;;  %v1010_v12 = vmul.f32 %v986_v13, %v7078_v55 }
 0x1ef   :  { %v6153_v0 = vpop.eup %6152  ;;  %v988_v8 = vadd.f32 0.5, %v984_v17  ;;  %v983_v18 = vmul.f32 0.5, %v6151_v25  ;;  %6160 = vtanh.f32 %v996_v7  ;;  %v995_v4 = vmul.f32 0.5, %v955_v1 }
 0x1f0   :  { %v6155_v15 = vpop.eup %6154  ;;  %v1014_v41 = vmul.f32 %v6153_v0, %v970_v50  ;;  %v971_v57 = vadd.f32 0.5, %v967_v54  ;;  %v1009_v29 = vmul.f32 %v985_v46, %v7085_v51 }
 0x1f1   :  { %v987_v20 = vadd.f32 0.5, %v983_v18  ;;  %6162 = vtanh.f32 %v995_v4  ;;  %v1012_v53 = vmul.f32 %v988_v8, %v7080_v49  ;;  %v1013_v17 = vmul.f32 %v6155_v15, %v969_v42 }
 0x1f2   :  { %v6157_v56 = vpop.eup %6156  ;;  %6164 = vtanh.f32 %v994_v3  ;;  %v7194_v2 = vadd.f32 %v1014_v41, %v1010_v12  ;;  %v7234_v12 = vld [vmem:[%s8469_s3 + $0x10] sm:$0xff] }
 0x1f3   :  { %v1016_v59 = vmul.f32 %v6157_v56, %v972_v62  ;;  %v1011_v60 = vmul.f32 %v987_v20, %v7083_v30  ;;  %6166 = vtanh.f32 %v993_v52  ;;  %v7203_v49 = vadd.f32 %v1013_v17, %v1009_v29  ;;  %v7227_v52 = vld [vmem:[%s8469_s3 + $0x8] sm:$0xff]  ;;  %v7388_v17 = vld [vmem:[%s8467_s1 + $0x40] sm:$0xff] }
 0x1f4   :  { %v6159_v24 = vpop.eup %6158  ;;  %v7395_v29 = vld [vmem:[%s8467_s1 + $0x48] sm:$0xff] }
 0x1f5   :  { %v7196_v25 = vadd.f32 %v1016_v59, %v1012_v53  ;;  %v1015_v18 = vmul.f32 %v6159_v24, %v971_v57  ;;  %v7241_v53 = vld [vmem:[%s8469_s3 + $0x18] sm:$0xff]  ;;  %v7248_v59 = vld [vmem:[%s8469_s3 + $0x20] sm:$0xff] }
 0x1f7   :  { %6168 = vtanh.f32 %v7196_v25  ;;  %v7201_v55 = vadd.f32 %v1015_v18, %v1011_v60  ;;  %v7402_v60 = vld [vmem:[%s8467_s1 + $0x50] sm:$0xff] }
 0x1f8   :  { %6170 = vtanh.f32 %v7194_v2 }
 0x1f9   :  { %6172 = vtanh.f32 %v7201_v55 }
 0x1fa   :  { %6174 = vtanh.f32 %v7203_v49 }
 0x1fc   :  { %v6161_v8 = vpop.eup %6160 }
 0x1fd   :  { %v1004_v3 = vmul.f32 0.5, %v6161_v8  ;;  %v7409_v8 = vld [vmem:[%s8467_s1 + $0x58] sm:$0xff] }
 0x1fe   :  { %v6163_v5 = vpop.eup %6162 }
 0x1ff   :  { %v6165_v51 = vpop.eup %6164  ;;  %v1003_v36 = vmul.f32 0.5, %v6163_v5  ;;  %v1008_v20 = vadd.f32 0.5, %v1004_v3  ;;  %v7416_v5 = vld [vmem:[%s8467_s1 + $0x60] sm:$0xff] }
 0x200   :  { %v6167_v30 = vpop.eup %6166  ;;  %v1002_v1 = vmul.f32 0.5, %v6165_v51  ;;  %v7423_v51 = vld [vmem:[%s8467_s1 + $0x68] sm:$0xff] }
 0x201   :  { %v1007_v13 = vadd.f32 0.5, %v1003_v36  ;;  %v1001_v54 = vmul.f32 0.5, %v6167_v30  ;;  %v7430_v36 = vld [vmem:[%s8467_s1 + $0x70] sm:$0xff] }
 0x202   :  { %v1006_v42 = vadd.f32 0.5, %v1002_v1 }
 0x203   :  { %v1005_v56 = vadd.f32 0.5, %v1001_v54 }
 0x204   :  { %v6169_v7 = vpop.eup %6168 }
 0x205   :  { %v7208_v0 = vmul.f32 %v6169_v7, %v1008_v20  ;;  %v6171_v50 = vpop.eup %6170 }
 0x206   :  { %v6173_v4 = vpop.eup %6172  ;;  %v7215_v41 = vmul.f32 %v6171_v50, %v1006_v42  ;;  %v5079_v50 = vld [vmem:[%s8466_s0 + $0x68] sm:$0xff] }
 0x207   :  { %8568 = vst [vmem:[#allocation13_spill] sm:$0xff] %v7208_v0  ;;  %5642 = vmatprep.subr.mxu0 %v7208_v0  ;;  %v7212_v15 = vmul.f32 %v6173_v4, %v1007_v13  ;;  %v6175_v62 = vpop.eup %6174 }
 0x208   :  { %5643 = vmatpush3.msra.mxu0 %v7208_v0  ;;  %8570 = vst [vmem:[#allocation12_spill] sm:$0xff] %v7215_v41  ;;  %v7219_v46 = vmul.f32 %v6175_v62, %v1005_v56 }
 0x209   :  { %8569 = vst [vmem:[#allocation7_spill] sm:$0xff] %v7212_v15  ;;  %5644 = vmatprep.subr.mxu0 %v7212_v15 }
 0x20a   :  { %5645 = vmatpush3.msra.mxu0 %v7212_v15  ;;  %8571 = vst [vmem:[#allocation8_spill] sm:$0xff] %v7219_v46 }
 0x20b   :  { %5646 = vmatprep.subr.mxu0 %v7215_v41 }
 0x20c   :  { %5647 = vmatpush3.msra.mxu0 %v7215_v41 }
 0x20d   :  { %5648 = vmatprep.subr.mxu0 %v7219_v46 }
 0x20e   :  { %5649 = vmatpush3.msra.mxu0 %v7219_v46 }
 0x20f   :  { %5651 = vmatmul.mubr.msk.f32.vlgmr.msra.gmra.mxu0 %vm88_vm0, %v7227_v52 }
 0x210   :  { %5653 = vmatprep.mubr.msk.f32.mxu0 %vm88_vm0, %v7234_v12 }
 0x213   :  { %5654 = vmatmul.mubr.msk.f32.gmra.mxu0 %vm88_vm0, %v7241_v53 }
 0x214   :  { %5656 = vmatprep.mubr.msk.f32.mxu0 %vm88_vm0, %v7248_v59 }
 0x217   :  { %5657 = vmatmul.mubr.msk.f32.gmra.mxu0 %vm88_vm0, %v6756_v14  ;;  %v7277_v14 = vld [vmem:[%s8469_s3] sm:$0xff] }
 0x218   :  { %5659 = vmatprep.mubr.msk.f32.mxu0 %vm88_vm0, %v6766_v16  ;;  %v4977_v16 = vld [vmem:[%s8466_s0 + $0x38] sm:$0xff] }
 0x219   :  { %5734 = vmatprep.subr.mxu1 %v4977_v16 }
 0x21a   :  { %5735 = vmatpush3.msra.mxu1 %v4977_v16 }
 0x21b   :  { %5660 = vmatmul.mubr.msk.f32.gmra.mxu0 %vm88_vm0, %v6787_v19  ;;  %v4976_v19 = vld [vmem:[%s8466_s0 + $0x30] sm:$0xff] }
 0x21c   :  { %5662 = vmatprep.mubr.msk.f32.mxu0 %vm88_vm0, %v6800_v22  ;;  %5736 = vmatprep.subr.mxu1 %v4976_v19  ;;  %v7290_v22 = vld [vmem:[%s8467_s1 + $0x8] sm:$0xff] }
 0x21d   :  { %5737 = vmatpush3.msra.mxu1 %v4976_v19 }
 0x21e   :  { %5739 = vmatmul.mubr.msk.f32.vlgmr.msra.gmra.mxu1 %vm282_vm1, %v7290_v22 }
 0x21f   :  { %5663 = vmatmul.mubr.msk.f32.gmra.mxu0 %vm88_vm0, %v6824_v26  ;;  %v7297_v26 = vld [vmem:[%s8467_s1 + $0x10] sm:$0xff] }
 0x220   :  { %5665 = vmatprep.mubr.msk.f32.mxu0 %vm88_vm0, %v6834_v28  ;;  %5741 = vmatprep.mubr.msk.f32.mxu1 %vm282_vm1, %v7297_v26  ;;  %v7304_v28 = vld [vmem:[%s8467_s1 + $0x18] sm:$0xff] }
 0x222   :  { %5742 = vmatmul.mubr.msk.f32.gmra.mxu1 %vm282_vm1, %v7304_v28 }
 0x223   :  { %5666 = vmatmul.mubr.msk.f32.gmra.mxu0 %vm88_vm0, %v6858_v32  ;;  %v7311_v32 = vld [vmem:[%s8467_s1 + $0x20] sm:$0xff] }
 0x224   :  { %5668 = vmatprep.mubr.msk.f32.mxu0 %vm88_vm0, %v6868_v34  ;;  %5744 = vmatprep.mubr.msk.f32.mxu1 %vm282_vm1, %v7311_v32  ;;  %v7318_v34 = vld [vmem:[%s8467_s1 + $0x28] sm:$0xff] }
 0x226   :  { %5745 = vmatmul.mubr.msk.f32.gmra.mxu1 %vm282_vm1, %v7318_v34 }
 0x227   :  { %5669 = vmatmul.mubr.msk.f32.gmra.mxu0 %vm88_vm0, %v6897_v39  ;;  %v7325_v39 = vld [vmem:[%s8467_s1 + $0x30] sm:$0xff] }
 0x228   :  { %5671 = vmatprep.mubr.msk.f32.mxu0 %vm88_vm0, %v6902_v40  ;;  %5747 = vmatprep.mubr.msk.f32.mxu1 %vm282_vm1, %v7325_v39  ;;  %v7332_v40 = vld [vmem:[%s8467_s1 + $0x38] sm:$0xff] }
 0x22a   :  { %5748 = vmatmul.mubr.msk.f32.gmra.mxu1 %vm282_vm1, %v7332_v40 }
 0x22b   :  { %5672 = vmatmul.mubr.msk.f32.gmra.mxu0 %vm88_vm0, %v6931_v45  ;;  %5750 = vmatprep.mubr.msk.f32.mxu1 %vm282_vm1, %v6829_v27  ;;  %v7355_v27 = vld [vmem:[%s8467_s1] sm:$0xff] }
 0x22c   :  { %5710 = vmatprep.mubr.msk.f32.mxu0 %vm88_vm0, %v7277_v14 }
 0x22e   :  { %5751 = vmatmul.mubr.msk.f32.gmra.mxu1 %vm282_vm1, %v6851_v31  ;;  %v5011_v31 = vld [vmem:[%s8466_s0 + $0x48] sm:$0xff] }
 0x22f   :  { %5753 = vmatprep.mubr.msk.f32.mxu1 %vm282_vm1, %v6863_v33  ;;  %v5010_v33 = vld [vmem:[%s8466_s0 + $0x40] sm:$0xff]  ;;  %5794 = vmatprep.subr.mxu1 %v5011_v31 }
 0x230   :  { %5795 = vmatpush3.msra.mxu1 %v5011_v31 }
 0x231   :  { %5796 = vmatprep.subr.mxu1 %v5010_v33 }
 0x232   :  { %5754 = vmatmul.mubr.msk.f32.gmra.mxu1 %vm282_vm1, %v6885_v37  ;;  %v5045_v37 = vld [vmem:[%s8466_s0 + $0x58] sm:$0xff] }
 0x233   :  { %5756 = vmatprep.mubr.msk.f32.mxu1 %vm282_vm1, %v6892_v38  ;;  %v5680_v38 = vpop.f32.mrf.mxu1  ;;  %5797 = vmatpush3.msra.mxu1 %v5010_v33 }
 0x234   :  { %5854 = vmatprep.subr.mxu1 %v5045_v37 }
 0x236   :  { %5757 = vmatmul.mubr.msk.f32.gmra.mxu1 %vm282_vm1, %v6919_v43  ;;  %v5044_v43 = vld [vmem:[%s8466_s0 + $0x50] sm:$0xff] }
 0x237   :  { %5759 = vmatprep.mubr.msk.f32.mxu1 %vm282_vm1, %v6926_v44  ;;  %v1247_v44 = vpop.f32.mrf.mxu1 }
 0x239   :  { %v5683_v45 = vpop.f32.mrf.mxu1 }
 0x23a   :  { %5760 = vmatmul.mubr.msk.f32.gmra.mxu1 %vm282_vm1, %v6948_v48 }
 0x23b   :  { %5798 = vmatprep.mubr.msk.f32.mxu1 %vm282_vm1, %v7355_v27  ;;  %v1257_v57 = vpop.f32.mrf.mxu1 }
 0x23d   :  { %v5686_v24 = vpop.f32.mrf.mxu1 }
 0x23e   :  { %5799 = vmatmul.mubr.msk.f32.vlgmr.msra.gmra.mxu1 %vm282_vm1, %v7290_v22 }
 0x23f   :  { %5801 = vmatprep.mubr.msk.f32.mxu1 %vm282_vm1, %v7297_v26  ;;  %5855 = vmatpush3.msra.mxu1 %v5045_v37  ;;  %v1267_v18 = vpop.f32.mrf.mxu1 }
 0x240   :  { %5856 = vmatprep.subr.mxu1 %v5044_v43 }
 0x241   :  { %5857 = vmatpush3.msra.mxu1 %v5044_v43  ;;  %v5689_v3 = vpop.f32.mrf.mxu1 }
 0x242   :  { %5802 = vmatmul.mubr.msk.f32.gmra.mxu1 %vm282_vm1, %v7304_v28  ;;  %5914 = vmatprep.subr.mxu1 %v5079_v50 }
 0x243   :  { %5804 = vmatprep.mubr.msk.f32.mxu1 %vm282_vm1, %v7311_v32  ;;  %v1277_v30 = vpop.f32.mrf.mxu1 }
 0x245   :  { %v5692_v13 = vpop.f32.mrf.mxu1 }
 0x246   :  { %5805 = vmatmul.mubr.msk.f32.gmra.mxu1 %vm282_vm1, %v7318_v34 }
 0x247   :  { %5807 = vmatprep.mubr.msk.f32.mxu1 %vm282_vm1, %v7325_v39  ;;  %v1287_v56 = vpop.f32.mrf.mxu1 }
 0x24a   :  { %5808 = vmatmul.mubr.msk.f32.gmra.mxu1 %vm282_vm1, %v7332_v40 }
 0x24b   :  { %5810 = vmatprep.mubr.msk.f32.mxu1 %vm282_vm1, %v7388_v17 }
 0x24e   :  { %5811 = vmatmul.mubr.msk.f32.gmra.mxu1 %vm282_vm1, %v7395_v29 }
 0x24f   :  { %5813 = vmatprep.mubr.msk.f32.mxu1 %vm282_vm1, %v7402_v60 }
 0x252   :  { %5814 = vmatmul.mubr.msk.f32.gmra.mxu1 %vm282_vm1, %v7409_v8 }
 0x253   :  { %5816 = vmatprep.mubr.msk.f32.mxu1 %vm282_vm1, %v7416_v5 }
 0x256   :  { %5817 = vmatmul.mubr.msk.f32.gmra.mxu1 %vm282_vm1, %v7423_v51 }
 0x257   :  { %5819 = vmatprep.mubr.msk.f32.mxu1 %vm282_vm1, %v7430_v36 }
 0x25a   :  { %5820 = vmatmul.mubr.msk.f32.gmra.mxu1 %vm282_vm1, %v6948_v48 }
 0x25b   :  { %5858 = vmatprep.mubr.msk.f32.mxu1 %vm282_vm1, %v7355_v27 }
 0x25e   :  { %5859 = vmatmul.mubr.msk.f32.vlgmr.msra.gmra.mxu1 %vm282_vm1, %v7290_v22 }
 0x25f   :  { %5861 = vmatprep.mubr.msk.f32.mxu1 %vm282_vm1, %v7297_v26  ;;  %5915 = vmatpush3.msra.mxu1 %v5079_v50 }
 0x262   :  { %5862 = vmatmul.mubr.msk.f32.gmra.mxu1 %vm282_vm1, %v7304_v28 }
 0x263   :  { %5864 = vmatprep.mubr.msk.f32.mxu1 %vm282_vm1, %v7311_v32 }
 0x266   :  { %5865 = vmatmul.mubr.msk.f32.gmra.mxu1 %vm282_vm1, %v7318_v34 }
 0x267   :  { %5867 = vmatprep.mubr.msk.f32.mxu1 %vm282_vm1, %v7325_v39 }
 0x26a   :  { %5868 = vmatmul.mubr.msk.f32.gmra.mxu1 %vm282_vm1, %v7332_v40 }
 0x26b   :  { %5870 = vmatprep.mubr.msk.f32.mxu1 %vm282_vm1, %v7388_v17 }
 0x26e   :  { %5871 = vmatmul.mubr.msk.f32.gmra.mxu1 %vm282_vm1, %v7395_v29 }
 0x26f   :  { %5873 = vmatprep.mubr.msk.f32.mxu1 %vm282_vm1, %v7402_v60 }
 0x272   :  { %5874 = vmatmul.mubr.msk.f32.gmra.mxu1 %vm282_vm1, %v7409_v8 }
 0x273   :  { %5876 = vmatprep.mubr.msk.f32.mxu1 %vm282_vm1, %v7416_v5 }
 0x276   :  { %5877 = vmatmul.mubr.msk.f32.gmra.mxu1 %vm282_vm1, %v7423_v51 }
 0x277   :  { %5879 = vmatprep.mubr.msk.f32.mxu1 %vm282_vm1, %v7430_v36 }
 0x2cf   :  { %v5652_v20 = vpop.f32.mrf.mxu0 }
 0x2d0   :  { %v1253_v7 = vadd.f32 %v5680_v38, %v5652_v20  ;;  %v5695_v20 = vpop.f32.mrf.mxu1 }
 0x2d1   :  { %v1102_v1 = vpop.f32.mrf.mxu0 }
 0x2d2   :  { %v1248_v54 = vadd.f32 %v1247_v44, %v1102_v1  ;;  %v1327_v62 = vadd.f32 %v1253_v7, %v8553_v58 }
 0x2d3   :  { %v5655_v4 = vpop.f32.mrf.mxu0 }
 0x2d4   :  { %v1263_v42 = vadd.f32 %v5683_v45, %v5655_v4  ;;  %v1326_v16 = vadd.f32 %v1248_v54, %v8554_v6  ;;  %v1343_v38 = vmul.f32 0.5, %v1327_v62 }
 0x2d5   :  { %v1112_v48 = vpop.f32.mrf.mxu0 }
 0x2d6   :  { %v1258_v19 = vadd.f32 %v1257_v57, %v1112_v48  ;;  %v1329_v33 = vadd.f32 %v1263_v42, %v8555_v23  ;;  %v1342_v7 = vmul.f32 0.5, %v1326_v16  ;;  %6176 = vtanh.f32 %v1343_v38  ;;  %v1297_v16 = vpop.f32.mrf.mxu1 }
 0x2d7   :  { %v5658_v31 = vpop.f32.mrf.mxu0 }
 0x2d8   :  { %v1273_v37 = vadd.f32 %v5686_v24, %v5658_v31  ;;  %v1328_v1 = vadd.f32 %v1258_v19, %v8557_v35  ;;  %v1345_v50 = vmul.f32 0.5, %v1329_v33 }
 0x2d9   :  { %v1122_v43 = vpop.f32.mrf.mxu0 }
 0x2da   :  { %v1331_v44 = vadd.f32 %v1273_v37, %v8556_v21  ;;  %v1268_v45 = vadd.f32 %v1267_v18, %v1122_v43  ;;  %v1344_v19 = vmul.f32 0.5, %v1328_v1  ;;  %v5698_v43 = vpop.f32.mrf.mxu1  ;;  %v8572_v1 = vld [vmem:[#allocation18_spill] sm:$0xff] }
 0x2db   :  { %v5661_v57 = vpop.f32.mrf.mxu0 }
 0x2dc   :  { %v1359_v54 = vmul.f32 0.5, %v1331_v44  ;;  %v1330_v24 = vadd.f32 %v1268_v45, %v8558_v9  ;;  %v1283_v4 = vadd.f32 %v5689_v3, %v5661_v57 }
 0x2dd   :  { %v1132_v42 = vpop.f32.mrf.mxu0 }
 0x2de   :  { %6178 = vtanh.f32 %v1359_v54  ;;  %v1358_v18 = vmul.f32 0.5, %v1330_v24  ;;  %v1333_v62 = vadd.f32 %v1283_v4, %v8559_v11  ;;  %v1278_v48 = vadd.f32 %v1277_v30, %v1132_v42  ;;  %v8573_v24 = vld [vmem:[#allocation15_spill] sm:$0xff] }
 0x2df   :  { %6180 = vtanh.f32 %v1342_v7  ;;  %v5664_v31 = vpop.f32.mrf.mxu0 }
 0x2e0   :  { %6182 = vtanh.f32 %v1345_v50  ;;  %v1361_v33 = vmul.f32 0.5, %v1333_v62  ;;  %v1332_v3 = vadd.f32 %v1278_v48, %v8560_v63  ;;  %v1293_v37 = vadd.f32 %v5692_v13, %v5664_v31  ;;  %v1307_v50 = vpop.f32.mrf.mxu1 }
 0x2e1   :  { %6184 = vtanh.f32 %v1358_v18  ;;  %v1142_v38 = vpop.f32.mrf.mxu0 }
 0x2e2   :  { %6186 = vtanh.f32 %v1361_v33  ;;  %v1360_v30 = vmul.f32 0.5, %v1332_v3  ;;  %v1335_v44 = vadd.f32 %v1293_v37, %v8561_v61  ;;  %v1288_v45 = vadd.f32 %v1287_v56, %v1142_v38  ;;  %v5701_v18 = vpop.f32.mrf.mxu1 }
 0x2e3   :  { %6188 = vtanh.f32 %v1344_v19  ;;  %v5667_v7 = vpop.f32.mrf.mxu0  ;;  %v6177_v19 = vpop.eup %6176 }
 0x2e4   :  { %6190 = vtanh.f32 %v1360_v30  ;;  %v1334_v57 = vadd.f32 %v1288_v45, %v8572_v1  ;;  %v1303_v13 = vadd.f32 %v5695_v20, %v5667_v7  ;;  %v8574_v20 = vld [vmem:[#allocation16_spill] sm:$0xff]  ;;  %v1317_v38 = vpop.f32.mrf.mxu1 }
 0x2e5   :  { %6192 = vtanh.f32 %v1335_v44  ;;  %v1152_v54 = vpop.f32.mrf.mxu0 }
 0x2e6   :  { %v1337_v4 = vadd.f32 %v1303_v13, %v8573_v24  ;;  %6194 = vtanh.f32 %v1334_v57  ;;  %v1298_v42 = vadd.f32 %v1297_v16, %v1152_v54  ;;  %v1351_v57 = vmul.f32 0.5, %v6177_v19 }
 0x2e7   :  { %v5670_v56 = vpop.f32.mrf.mxu0 }
 0x2e8   :  { %6196 = vtanh.f32 %v1337_v4  ;;  %v1336_v62 = vadd.f32 %v1298_v42, %v8574_v20  ;;  %v1313_v33 = vadd.f32 %v5698_v43, %v5670_v56  ;;  %v8575_v4 = vld [vmem:[#allocation21_spill] sm:$0xff]  ;;  %v8576_v43 = vld [vmem:[#allocation19_spill] sm:$0xff] }
 0x2e9   :  { %v1162_v48 = vpop.f32.mrf.mxu0 }
 0x2ea   :  { %6198 = vtanh.f32 %v1336_v62  ;;  %v1308_v30 = vadd.f32 %v1307_v50, %v1162_v48  ;;  %v1339_v42 = vadd.f32 %v1313_v33, %v8575_v4  ;;  %v7486_v50 = vld [vmem:[%s8467_s1 + $0x78] sm:$0xff] }
 0x2eb   :  { %v6179_v31 = vpop.eup %6178  ;;  %v5673_v3 = vpop.f32.mrf.mxu0  ;;  %5880 = vmatmul.mubr.msk.f32.gmra.mxu1 %vm282_vm1, %v7486_v50 }
 0x2ec   :  { %v6181_v37 = vpop.eup %6180  ;;  %v1323_v44 = vadd.f32 %v5701_v18, %v5673_v3  ;;  %v1367_v13 = vmul.f32 0.5, %v6179_v31  ;;  %v1338_v19 = vadd.f32 %v1308_v30, %v7074_v47  ;;  %5918 = vmatprep.mubr.msk.f32.mxu1 %vm282_vm1, %v7355_v27 }
 0x2ed   :  { %v6183_v16 = vpop.eup %6182  ;;  %v1172_v45 = vpop.f32.mrf.mxu0  ;;  %v1350_v41 = vmul.f32 0.5, %v6181_v37  ;;  %v1355_v37 = vadd.f32 0.5, %v1351_v57 }
 0x2ee   :  { %v6185_v7 = vpop.eup %6184  ;;  %v1341_v56 = vadd.f32 %v1323_v44, %v8576_v43  ;;  %v1318_v62 = vadd.f32 %v1317_v38, %v1172_v45  ;;  %v1353_v15 = vmul.f32 0.5, %v6183_v16  ;;  %v1371_v38 = vadd.f32 0.5, %v1367_v13 }
 0x2ef   :  { %v6187_v54 = vpop.eup %6186  ;;  %v1366_v48 = vmul.f32 0.5, %v6185_v7  ;;  %v1354_v20 = vadd.f32 0.5, %v1350_v41 }
 0x2f0   :  { %v6189_v46 = vpop.eup %6188  ;;  %v1369_v0 = vmul.f32 0.5, %v6187_v54  ;;  %v1381_v31 = vmul.f32 0.5, %v1341_v56  ;;  %v1340_v33 = vadd.f32 %v1318_v62, %v8567_v10  ;;  %v1379_v54 = vmul.f32 0.5, %v1339_v42 }
 0x2f1   :  { %v6191_v18 = vpop.eup %6190  ;;  %v1352_v45 = vmul.f32 0.5, %v6189_v46  ;;  %v1357_v7 = vadd.f32 0.5, %v1353_v15  ;;  %v1370_v56 = vadd.f32 0.5, %v1366_v48  ;;  %v1378_v62 = vmul.f32 0.5, %v1338_v19 }
 0x2f2   :  { %v6193_v3 = vpop.eup %6192  ;;  %v1373_v16 = vadd.f32 0.5, %v1369_v0  ;;  %v1368_v44 = vmul.f32 0.5, %v6191_v18  ;;  %6200 = vtanh.f32 %v1381_v31  ;;  %v1380_v43 = vmul.f32 0.5, %v1340_v33 }
 0x2f3   :  { %v6195_v4 = vpop.eup %6194  ;;  %v1399_v24 = vmul.f32 %v6193_v3, %v1355_v37  ;;  %v1395_v10 = vmul.f32 %v1371_v38, %v7194_v2  ;;  %v1356_v0 = vadd.f32 0.5, %v1352_v45  ;;  %v1394_v15 = vmul.f32 %v1370_v56, %v7203_v49 }
 0x2f4   :  { %v1372_v47 = vadd.f32 0.5, %v1368_v44  ;;  %6202 = vtanh.f32 %v1380_v43  ;;  %v1397_v57 = vmul.f32 %v1373_v16, %v7196_v25  ;;  %v1398_v18 = vmul.f32 %v6195_v4, %v1354_v20 }
 0x2f5   :  { %v6197_v30 = vpop.eup %6196  ;;  %6204 = vtanh.f32 %v1379_v54  ;;  %v7496_v42 = vadd.f32 %v1399_v24, %v1395_v10 }
 0x2f6   :  { %v1401_v13 = vmul.f32 %v6197_v30, %v1357_v7  ;;  %v1396_v41 = vmul.f32 %v1372_v47, %v7201_v55  ;;  %6206 = vtanh.f32 %v1378_v62  ;;  %v7505_v25 = vadd.f32 %v1398_v18, %v1394_v15  ;;  %v7537_v62 = vld [vmem:[%s8469_s3 + $0x28] sm:$0xff]  ;;  %v7579_v15 = vld [vmem:[%s8469_s3 + $0x58] sm:$0xff] }
 0x2f7   :  { %v6199_v46 = vpop.eup %6198  ;;  %v7565_v18 = vld [vmem:[%s8469_s3 + $0x48] sm:$0xff] }
 0x2f8   :  { %v7498_v31 = vadd.f32 %v1401_v13, %v1397_v57  ;;  %v1400_v48 = vmul.f32 %v6199_v46, %v1356_v0  ;;  %v7544_v57 = vld [vmem:[%s8469_s3 + $0x30] sm:$0xff]  ;;  %v7551_v13 = vld [vmem:[%s8469_s3 + $0x38] sm:$0xff]  ;;  %v7558_v0 = vld [vmem:[%s8469_s3 + $0x40] sm:$0xff] }
 0x2f9   :  { %v7572_v46 = vld [vmem:[%s8469_s3 + $0x50] sm:$0xff] }
 0x2fa   :  { %6208 = vtanh.f32 %v7498_v31  ;;  %v7503_v2 = vadd.f32 %v1400_v48, %v1396_v41  ;;  %v7586_v41 = vld [vmem:[%s8469_s3 + $0x60] sm:$0xff]  ;;  %v7593_v48 = vld [vmem:[%s8469_s3 + $0x68] sm:$0xff] }
 0x2fb   :  { %6210 = vtanh.f32 %v7496_v42 }
 0x2fc   :  { %6212 = vtanh.f32 %v7503_v2 }
 0x2fd   :  { %6214 = vtanh.f32 %v7505_v25 }
 0x2ff   :  { %v6201_v10 = vpop.eup %6200 }
 0x300   :  { %v1389_v20 = vmul.f32 0.5, %v6201_v10  ;;  %v7600_v10 = vld [vmem:[%s8469_s3 + $0x70] sm:$0xff] }
 0x301   :  { %v6203_v24 = vpop.eup %6202 }
 0x302   :  { %v6205_v49 = vpop.eup %6204  ;;  %v1388_v4 = vmul.f32 0.5, %v6203_v24  ;;  %v1393_v55 = vadd.f32 0.5, %v1389_v20  ;;  %v7607_v24 = vld [vmem:[%s8469_s3 + $0x78] sm:$0xff]  ;;  %v5078_v20 = vld [vmem:[%s8466_s0 + $0x60] sm:$0xff] }
 0x303   :  { %v6207_v47 = vpop.eup %6206  ;;  %v1387_v19 = vmul.f32 0.5, %v6205_v49  ;;  %5916 = vmatprep.subr.mxu1 %v5078_v20  ;;  %v5113_v49 = vld [vmem:[%s8466_s0 + $0x78] sm:$0xff] }
 0x304   :  { %v1392_v37 = vadd.f32 0.5, %v1388_v4  ;;  %v1386_v38 = vmul.f32 0.5, %v6207_v47  ;;  %5917 = vmatpush3.msra.mxu1 %v5078_v20  ;;  %v5112_v4 = vld [vmem:[%s8466_s0 + $0x70] sm:$0xff] }
 0x305   :  { %v1391_v45 = vadd.f32 0.5, %v1387_v19  ;;  %5919 = vmatmul.mubr.msk.f32.vlgmr.msra.gmra.mxu1 %vm282_vm1, %v7290_v22  ;;  %5974 = vmatprep.subr.mxu1 %v5113_v49 }
 0x306   :  { %v1390_v30 = vadd.f32 0.5, %v1386_v38  ;;  %5921 = vmatprep.mubr.msk.f32.mxu1 %vm282_vm1, %v7297_v26  ;;  %5975 = vmatpush3.msra.mxu1 %v5113_v49 }
 0x307   :  { %v6209_v43 = vpop.eup %6208  ;;  %5976 = vmatprep.subr.mxu1 %v5112_v4 }
 0x308   :  { %v7510_v33 = vmul.f32 %v6209_v43, %v1393_v55  ;;  %v6211_v3 = vpop.eup %6210  ;;  %5977 = vmatpush3.msra.mxu1 %v5112_v4 }
 0x309   :  { %v6213_v16 = vpop.eup %6212  ;;  %v7517_v7 = vmul.f32 %v6211_v3, %v1391_v45  ;;  %5922 = vmatmul.mubr.msk.f32.gmra.mxu1 %vm282_vm1, %v7304_v28 }
 0x30a   :  { %5702 = vmatprep.subr.mxu0 %v7510_v33  ;;  %v7514_v44 = vmul.f32 %v6213_v16, %v1392_v37  ;;  %v6215_v54 = vpop.eup %6214  ;;  %5924 = vmatprep.mubr.msk.f32.mxu1 %vm282_vm1, %v7311_v32 }
 0x30b   :  { %5703 = vmatpush3.msra.mxu0 %v7510_v33  ;;  %v7521_v56 = vmul.f32 %v6215_v54, %v1390_v30 }
 0x30c   :  { %5704 = vmatprep.subr.mxu0 %v7514_v44 }
 0x30d   :  { %5705 = vmatpush3.msra.mxu0 %v7514_v44  ;;  %5925 = vmatmul.mubr.msk.f32.gmra.mxu1 %vm282_vm1, %v7318_v34 }
 0x30e   :  { %5706 = vmatprep.subr.mxu0 %v7517_v7  ;;  %5927 = vmatprep.mubr.msk.f32.mxu1 %vm282_vm1, %v7325_v39 }
 0x30f   :  { %5707 = vmatpush3.msra.mxu0 %v7517_v7 }
 0x310   :  { %5708 = vmatprep.subr.mxu0 %v7521_v56 }
 0x311   :  { %5709 = vmatpush3.msra.mxu0 %v7521_v56  ;;  %5928 = vmatmul.mubr.msk.f32.gmra.mxu1 %vm282_vm1, %v7332_v40 }
 0x312   :  { %5711 = vmatmul.mubr.msk.f32.vlgmr.msra.gmra.mxu0 %vm88_vm0, %v7227_v52  ;;  %5930 = vmatprep.mubr.msk.f32.mxu1 %vm282_vm1, %v7388_v17 }
 0x313   :  { %5713 = vmatprep.mubr.msk.f32.mxu0 %vm88_vm0, %v7234_v12 }
 0x315   :  { %5931 = vmatmul.mubr.msk.f32.gmra.mxu1 %vm282_vm1, %v7395_v29 }
 0x316   :  { %5714 = vmatmul.mubr.msk.f32.gmra.mxu0 %vm88_vm0, %v7241_v53  ;;  %5933 = vmatprep.mubr.msk.f32.mxu1 %vm282_vm1, %v7402_v60 }
 0x317   :  { %5716 = vmatprep.mubr.msk.f32.mxu0 %vm88_vm0, %v7248_v59 }
 0x319   :  { %5934 = vmatmul.mubr.msk.f32.gmra.mxu1 %vm282_vm1, %v7409_v8 }
 0x31a   :  { %5717 = vmatmul.mubr.msk.f32.gmra.mxu0 %vm88_vm0, %v7537_v62  ;;  %5936 = vmatprep.mubr.msk.f32.mxu1 %vm282_vm1, %v7416_v5 }
 0x31b   :  { %5719 = vmatprep.mubr.msk.f32.mxu0 %vm88_vm0, %v7544_v57 }
 0x31d   :  { %5937 = vmatmul.mubr.msk.f32.gmra.mxu1 %vm282_vm1, %v7423_v51 }
 0x31e   :  { %5720 = vmatmul.mubr.msk.f32.gmra.mxu0 %vm88_vm0, %v7551_v13  ;;  %5939 = vmatprep.mubr.msk.f32.mxu1 %vm282_vm1, %v7430_v36 }
 0x31f   :  { %5722 = vmatprep.mubr.msk.f32.mxu0 %vm88_vm0, %v7558_v0 }
 0x321   :  { %5940 = vmatmul.mubr.msk.f32.gmra.mxu1 %vm282_vm1, %v7486_v50 }
 0x322   :  { %5723 = vmatmul.mubr.msk.f32.gmra.mxu0 %vm88_vm0, %v7565_v18  ;;  %5978 = vmatprep.mubr.msk.f32.mxu1 %vm282_vm1, %v7355_v27 }
 0x323   :  { %5725 = vmatprep.mubr.msk.f32.mxu0 %vm88_vm0, %v7572_v46 }
 0x325   :  { %5979 = vmatmul.mubr.msk.f32.vlgmr.msra.gmra.mxu1 %vm282_vm1, %v7290_v22  ;;  %v8577_v22 = vmov 0.0  }
 0x326   :  { %5726 = vmatmul.mubr.msk.f32.gmra.mxu0 %vm88_vm0, %v7579_v15  ;;  %5981 = vmatprep.mubr.msk.f32.mxu1 %vm282_vm1, %v7297_v26  ;;  %v5740_v26 = vpop.f32.mrf.mxu1 }
 0x327   :  { %5728 = vmatprep.mubr.msk.f32.mxu0 %vm88_vm0, %v7586_v41 }
 0x329   :  { %5982 = vmatmul.mubr.msk.f32.gmra.mxu1 %vm282_vm1, %v7304_v28  ;;  %v1632_v28 = vpop.f32.mrf.mxu1 }
 0x32a   :  { %5729 = vmatmul.mubr.msk.f32.gmra.mxu0 %vm88_vm0, %v7593_v48  ;;  %5984 = vmatprep.mubr.msk.f32.mxu1 %vm282_vm1, %v7311_v32 }
 0x32b   :  { %5731 = vmatprep.mubr.msk.f32.mxu0 %vm88_vm0, %v7600_v10  ;;  %v5743_v32 = vpop.f32.mrf.mxu1 }
 0x32d   :  { %5985 = vmatmul.mubr.msk.f32.gmra.mxu1 %vm282_vm1, %v7318_v34  ;;  %v1642_v34 = vpop.f32.mrf.mxu1 }
 0x32e   :  { %5732 = vmatmul.mubr.msk.f32.gmra.mxu0 %vm88_vm0, %v7607_v24  ;;  %5987 = vmatprep.mubr.msk.f32.mxu1 %vm282_vm1, %v7325_v39 }
 0x32f   :  { %5770 = vmatprep.mubr.msk.f32.mxu0 %vm88_vm0, %v7277_v14  ;;  %v5746_v39 = vpop.f32.mrf.mxu1 }
 0x331   :  { %5988 = vmatmul.mubr.msk.f32.gmra.mxu1 %vm282_vm1, %v7332_v40  ;;  %v1652_v40 = vpop.f32.mrf.mxu1 }
 0x332   :  { %5990 = vmatprep.mubr.msk.f32.mxu1 %vm282_vm1, %v7388_v17 }
 0x333   :  { %v5749_v27 = vpop.f32.mrf.mxu1 }
 0x335   :  { %5991 = vmatmul.mubr.msk.f32.gmra.mxu1 %vm282_vm1, %v7395_v29  ;;  %v1662_v17 = vpop.f32.mrf.mxu1 }
 0x336   :  { %5993 = vmatprep.mubr.msk.f32.mxu1 %vm282_vm1, %v7402_v60 }
 0x339   :  { %5994 = vmatmul.mubr.msk.f32.gmra.mxu1 %vm282_vm1, %v7409_v8 }
 0x33a   :  { %5996 = vmatprep.mubr.msk.f32.mxu1 %vm282_vm1, %v7416_v5  ;;  %v5752_v5 = vpop.f32.mrf.mxu1 }
 0x33c   :  { %v1672_v43 = vpop.f32.mrf.mxu1 }
 0x33d   :  { %5997 = vmatmul.mubr.msk.f32.gmra.mxu1 %vm282_vm1, %v7423_v51 }
 0x33e   :  { %5999 = vmatprep.mubr.msk.f32.mxu1 %vm282_vm1, %v7430_v36  ;;  %v5755_v49 = vpop.f32.mrf.mxu1 }
 0x341   :  { %6000 = vmatmul.mubr.msk.f32.gmra.mxu1 %vm282_vm1, %v7486_v50 }
 0x342   :  { %3568 = vmatprep.mubr.f32.mxu1 %v8577_v22 }
 0x3d2   :  { %v5712_v29 = vpop.f32.mrf.mxu0 }
 0x3d3   :  { %v1638_v60 = vadd.f32 %v5740_v26, %v5712_v29 }
 0x3d4   :  { %v1487_v8 = vpop.f32.mrf.mxu0 }
 0x3d5   :  { %v1633_v51 = vadd.f32 %v1632_v28, %v1487_v8  ;;  %v1712_v55 = vadd.f32 %v1638_v60, %v8553_v58 }
 0x3d6   :  { %v5715_v47 = vpop.f32.mrf.mxu0 }
 0x3d7   :  { %v1648_v36 = vadd.f32 %v5743_v32, %v5715_v47  ;;  %v1711_v19 = vadd.f32 %v1633_v51, %v8554_v6  ;;  %v1728_v45 = vmul.f32 0.5, %v1712_v55 }
 0x3d8   :  { %v1497_v50 = vpop.f32.mrf.mxu0 }
 0x3d9   :  { %v1643_v3 = vadd.f32 %v1642_v34, %v1497_v50  ;;  %v1714_v38 = vadd.f32 %v1648_v36, %v8555_v23  ;;  %v1727_v4 = vmul.f32 0.5, %v1711_v19  ;;  %6216 = vtanh.f32 %v1728_v45  ;;  %v1682_v36 = vpop.f32.mrf.mxu1 }
 0x3da   :  { %v5718_v37 = vpop.f32.mrf.mxu0 }
 0x3db   :  { %v1658_v16 = vadd.f32 %v5746_v39, %v5718_v37  ;;  %v1713_v26 = vadd.f32 %v1643_v3, %v8557_v35  ;;  %v1730_v32 = vmul.f32 0.5, %v1714_v38  ;;  %v5758_v37 = vpop.f32.mrf.mxu1 }
 0x3dc   :  { %v1507_v54 = vpop.f32.mrf.mxu0 }
 0x3dd   :  { %v1716_v30 = vadd.f32 %v1658_v16, %v8556_v21  ;;  %v1653_v20 = vadd.f32 %v1652_v40, %v1507_v54  ;;  %v1729_v40 = vmul.f32 0.5, %v1713_v26  ;;  %v8578_v26 = vld [vmem:[#allocation15_spill] sm:$0xff] }
 0x3de   :  { %v5721_v28 = vpop.f32.mrf.mxu0 }
 0x3df   :  { %v1744_v29 = vmul.f32 0.5, %v1716_v30  ;;  %v1715_v60 = vadd.f32 %v1653_v20, %v8558_v9  ;;  %v1668_v8 = vadd.f32 %v5749_v27, %v5721_v28  ;;  %v1692_v20 = vpop.f32.mrf.mxu1 }
 0x3e0   :  { %v1517_v34 = vpop.f32.mrf.mxu0 }
 0x3e1   :  { %6218 = vtanh.f32 %v1744_v29  ;;  %v1743_v51 = vmul.f32 0.5, %v1715_v60  ;;  %v1718_v39 = vadd.f32 %v1668_v8, %v8559_v11  ;;  %v1663_v47 = vadd.f32 %v1662_v17, %v1517_v34  ;;  %v5761_v29 = vpop.f32.mrf.mxu1  ;;  %v8579_v60 = vld [vmem:[#allocation16_spill] sm:$0xff] }
 0x3e2   :  { %6220 = vtanh.f32 %v1727_v4  ;;  %v5724_v55 = vpop.f32.mrf.mxu0 }
 0x3e3   :  { %6222 = vtanh.f32 %v1730_v32  ;;  %v1746_v50 = vmul.f32 0.5, %v1718_v39  ;;  %v1717_v19 = vadd.f32 %v1663_v47, %v8560_v63  ;;  %v1678_v3 = vadd.f32 %v5752_v5, %v5724_v55 }
 0x3e4   :  { %6224 = vtanh.f32 %v1743_v51  ;;  %v1527_v38 = vpop.f32.mrf.mxu0 }
 0x3e5   :  { %6226 = vtanh.f32 %v1746_v50  ;;  %v1745_v27 = vmul.f32 0.5, %v1717_v19  ;;  %v1720_v16 = vadd.f32 %v1678_v3, %v8561_v61  ;;  %v1673_v45 = vadd.f32 %v1672_v43, %v1527_v38 }
 0x3e6   :  { %6228 = vtanh.f32 %v1729_v40  ;;  %v5727_v54 = vpop.f32.mrf.mxu0  ;;  %v6217_v43 = vpop.eup %6216 }
 0x3e7   :  { %6230 = vtanh.f32 %v1745_v27  ;;  %v1719_v17 = vadd.f32 %v1673_v45, %v8572_v1  ;;  %v1688_v30 = vadd.f32 %v5755_v49, %v5727_v54  ;;  %v1702_v49 = vpop.f32.mrf.mxu1  ;;  %v1736_v27 = vmul.f32 0.5, %v6217_v43  ;;  %v8580_v45 = vld [vmem:[#allocation21_spill] sm:$0xff] }
 0x3e8   :  { %6232 = vtanh.f32 %v1720_v16  ;;  %v1537_v4 = vpop.f32.mrf.mxu0 }
 0x3e9   :  { %v1722_v28 = vadd.f32 %v1688_v30, %v8578_v26  ;;  %6234 = vtanh.f32 %v1719_v17  ;;  %v1683_v5 = vadd.f32 %v1682_v36, %v1537_v4  ;;  %v8581_v17 = vld [vmem:[#allocation19_spill] sm:$0xff]  ;;  %v8582_v26 = vld [vmem:[#allocation22_spill] sm:$0xff]  ;;  %v1740_v43 = vadd.f32 0.5, %v1736_v27 }
 0x3ea   :  { %v5730_v32 = vpop.f32.mrf.mxu0 }
 0x3eb   :  { %6236 = vtanh.f32 %v1722_v28  ;;  %v1721_v8 = vadd.f32 %v1683_v5, %v8579_v60  ;;  %v1698_v39 = vadd.f32 %v5758_v37, %v5730_v32 }
 0x3ec   :  { %v1547_v34 = vpop.f32.mrf.mxu0 }
 0x3ed   :  { %6238 = vtanh.f32 %v1721_v8  ;;  %v1693_v50 = vadd.f32 %v1692_v20, %v1547_v34  ;;  %v1724_v54 = vadd.f32 %v1698_v39, %v8580_v45 }
 0x3ee   :  { %v6219_v51 = vpop.eup %6218  ;;  %v5733_v47 = vpop.f32.mrf.mxu0 }
 0x3ef   :  { %v6221_v40 = vpop.eup %6220  ;;  %v1708_v19 = vadd.f32 %v5761_v29, %v5733_v47  ;;  %v1752_v36 = vmul.f32 0.5, %v6219_v51  ;;  %v1723_v1 = vadd.f32 %v1693_v50, %v8582_v26  ;;  %v8583_v29 = vld [vmem:[#allocation20_spill] sm:$0xff]  ;;  %v1764_v45 = vmul.f32 0.5, %v1724_v54 }
 0x3f0   :  { %v6223_v55 = vpop.eup %6222  ;;  %v1557_v3 = vpop.f32.mrf.mxu0  ;;  %v1735_v5 = vmul.f32 0.5, %v6221_v40 }
 0x3f1   :  { %v6225_v38 = vpop.eup %6224  ;;  %v1726_v30 = vadd.f32 %v1708_v19, %v8581_v17  ;;  %v1703_v4 = vadd.f32 %v1702_v49, %v1557_v3  ;;  %v1738_v8 = vmul.f32 0.5, %v6223_v55  ;;  %v1756_v51 = vadd.f32 0.5, %v1752_v36 }
 0x3f2   :  { %v6227_v16 = vpop.eup %6226  ;;  %v1751_v60 = vmul.f32 0.5, %v6225_v38  ;;  %v1739_v40 = vadd.f32 0.5, %v1735_v5  ;;  %v1763_v50 = vmul.f32 0.5, %v1723_v1 }
 0x3f3   :  { %v6229_v28 = vpop.eup %6228  ;;  %v1754_v37 = vmul.f32 0.5, %v6227_v16  ;;  %v1766_v20 = vmul.f32 0.5, %v1726_v30  ;;  %v1725_v34 = vadd.f32 %v1703_v4, %v8583_v29  ;;  %v1742_v55 = vadd.f32 0.5, %v1738_v8 }
 0x3f4   :  { %v6231_v32 = vpop.eup %6230  ;;  %v1737_v39 = vmul.f32 0.5, %v6229_v28  ;;  %v1755_v38 = vadd.f32 0.5, %v1751_v60  ;;  %v1780_v30 = vmul.f32 %v1756_v51, %v7496_v42 }
 0x3f5   :  { %v6233_v47 = vpop.eup %6232  ;;  %v1758_v61 = vadd.f32 0.5, %v1754_v37  ;;  %v1753_v63 = vmul.f32 0.5, %v6231_v32  ;;  %6240 = vtanh.f32 %v1766_v20  ;;  %v1765_v49 = vmul.f32 0.5, %v1725_v34 }
 0x3f6   :  { %v6235_v19 = vpop.eup %6234  ;;  %v1784_v3 = vmul.f32 %v6233_v47, %v1740_v43  ;;  %v1741_v4 = vadd.f32 0.5, %v1737_v39  ;;  %v1779_v5 = vmul.f32 %v1755_v38, %v7505_v25 }
 0x3f7   :  { %v1757_v17 = vadd.f32 0.5, %v1753_v63  ;;  %6242 = vtanh.f32 %v1765_v49  ;;  %v1782_v27 = vmul.f32 %v1758_v61, %v7498_v31  ;;  %v1783_v37 = vmul.f32 %v6235_v19, %v1739_v40 }
 0x3f8   :  { %v6237_v16 = vpop.eup %6236  ;;  %6244 = vtanh.f32 %v1764_v45  ;;  %v7703_v28 = vadd.f32 %v1784_v3, %v1780_v30 }
 0x3f9   :  { %v1786_v36 = vmul.f32 %v6237_v16, %v1742_v55  ;;  %v1781_v60 = vmul.f32 %v1757_v17, %v7503_v2  ;;  %6246 = vtanh.f32 %v1763_v50  ;;  %v7710_v1 = vadd.f32 %v1783_v37, %v1779_v5 }
 0x3fa   :  { %v6239_v54 = vpop.eup %6238 }
 0x3fb   :  { %v7705_v32 = vadd.f32 %v1786_v36, %v1782_v27  ;;  %v1785_v63 = vmul.f32 %v6239_v54, %v1741_v4 }
 0x3fd   :  { %6248 = vtanh.f32 %v7705_v32  ;;  %v7712_v61 = vadd.f32 %v1785_v63, %v1781_v60 }
 0x3fe   :  { %6250 = vtanh.f32 %v7703_v28 }
 0x3ff   :  { %6252 = vtanh.f32 %v7712_v61 }
 0x400   :  { %6254 = vtanh.f32 %v7710_v1 }
 0x402   :  { %v6241_v42 = vpop.eup %6240 }
 0x403   :  { %v1774_v45 = vmul.f32 0.5, %v6241_v42 }
 0x404   :  { %v6243_v31 = vpop.eup %6242 }
 0x405   :  { %v6245_v25 = vpop.eup %6244  ;;  %v1773_v8 = vmul.f32 0.5, %v6243_v31  ;;  %v1778_v17 = vadd.f32 0.5, %v1774_v45 }
 0x406   :  { %v6247_v2 = vpop.eup %6246  ;;  %v1772_v34 = vmul.f32 0.5, %v6245_v25 }
 0x407   :  { %v1777_v51 = vadd.f32 0.5, %v1773_v8  ;;  %v1771_v39 = vmul.f32 0.5, %v6247_v2 }
 0x408   :  { %v1776_v40 = vadd.f32 0.5, %v1772_v34 }
 0x409   :  { %v1775_v16 = vadd.f32 0.5, %v1771_v39 }
 0x40a   :  { %v6249_v20 = vpop.eup %6248 }
 0x40b   :  { %v1798_v47 = vmul.f32 %v6249_v20, %v1778_v17  ;;  %v6251_v43 = vpop.eup %6250 }
 0x40c   :  { %v6253_v49 = vpop.eup %6252  ;;  %v1796_v3 = vmul.f32 %v6251_v43, %v1776_v40 }
 0x40d   :  { %5762 = vmatprep.subr.mxu0 %v1798_v47  ;;  %3528 = vmatprep.subr.mxu1 %v1798_v47  ;;  %v1797_v19 = vmul.f32 %v6253_v49, %v1777_v51  ;;  %v6255_v55 = vpop.eup %6254 }
 0x40e   :  { %5763 = vmatpush3.msra.mxu0 %v1798_v47  ;;  %3529 = vmatpush1.msra.mxu1 %v7510_v33  ;;  %v1795_v38 = vmul.f32 %v6255_v55, %v1775_v16  ;;  %v3375_v33 = vld [vmem:[%s8470_s4] sm:$0xff] }
 0x40f   :  { %5764 = vmatprep.subr.mxu0 %v1797_v19  ;;  %3530 = vmatprep.subr.mxu1 %v1797_v19 }
 0x410   :  { %5765 = vmatpush3.msra.mxu0 %v1797_v19  ;;  %3531 = vmatpush1.msra.mxu1 %v7514_v44  ;;  %v3376_v44 = vld [vmem:[%s8470_s4 + $0x8] sm:$0xff] }
 0x411   :  { %5766 = vmatprep.subr.mxu0 %v1796_v3  ;;  %3532 = vmatprep.subr.mxu1 %v1796_v3 }
 0x412   :  { %5767 = vmatpush3.msra.mxu0 %v1796_v3  ;;  %3533 = vmatpush1.msra.mxu1 %v7517_v7 }
 0x413   :  { %5768 = vmatprep.subr.mxu0 %v1795_v38  ;;  %3534 = vmatprep.subr.mxu1 %v1795_v38 }
 0x414   :  { %5769 = vmatpush3.msra.mxu0 %v1795_v38  ;;  %3535 = vmatpush1.msra.mxu1 %v7521_v56 }
 0x415   :  { %5771 = vmatmul.mubr.msk.f32.vlgmr.msra.gmra.mxu0 %vm88_vm0, %v7227_v52  ;;  %5150 = vmatmul.mubr.msk.f32.vlgmr.msra.gmra.mxu1 %vm88_vm0, %v3375_v33  ;;  %v3377_v52 = vld [vmem:[%s8470_s4 + $0x10] sm:$0xff] }
 0x416   :  { %5773 = vmatprep.mubr.msk.f32.mxu0 %vm88_vm0, %v7234_v12  ;;  %3574 = vmatprep.mubr.f32.mxu1 %v8577_v22  ;;  %v3378_v12 = vld [vmem:[%s8470_s4 + $0x18] sm:$0xff] }
 0x419   :  { %5774 = vmatmul.mubr.msk.f32.gmra.mxu0 %vm88_vm0, %v7241_v53  ;;  %5151 = vmatmul.mubr.msk.f32.gmra.mxu1 %vm88_vm0, %v3376_v44  ;;  %v5800_v53 = vpop.f32.mrf.mxu1 }
 0x41a   :  { %5776 = vmatprep.mubr.msk.f32.mxu0 %vm88_vm0, %v7248_v59  ;;  %3580 = vmatprep.mubr.f32.mxu1 %v8577_v22 }
 0x41b   :  { %v2017_v59 = vpop.f32.mrf.mxu1 }
 0x41d   :  { %5777 = vmatmul.mubr.msk.f32.gmra.mxu0 %vm88_vm0, %v7537_v62  ;;  %5152 = vmatmul.mubr.msk.f32.gmra.mxu1 %vm88_vm0, %v3377_v52  ;;  %v5803_v7 = vpop.f32.mrf.mxu1 }
 0x41e   :  { %5779 = vmatprep.mubr.msk.f32.mxu0 %vm88_vm0, %v7544_v57  ;;  %3586 = vmatprep.mubr.f32.mxu1 %v8577_v22 }
 0x41f   :  { %v2027_v56 = vpop.f32.mrf.mxu1 }
 0x421   :  { %5780 = vmatmul.mubr.msk.f32.gmra.mxu0 %vm88_vm0, %v7551_v13  ;;  %5153 = vmatmul.mubr.msk.f32.gmra.mxu1 %vm88_vm0, %v3378_v12  ;;  %v5806_v50 = vpop.f32.mrf.mxu1 }
 0x422   :  { %5782 = vmatprep.mubr.msk.f32.mxu0 %vm88_vm0, %v7558_v0  ;;  %3746 = vmatprep.mubr.f32.mxu1 %v8577_v22 }
 0x423   :  { %v2037_v30 = vpop.f32.mrf.mxu1 }
 0x425   :  { %5783 = vmatmul.mubr.msk.f32.gmra.mxu0 %vm88_vm0, %v7565_v18  ;;  %v5809_v27 = vpop.f32.mrf.mxu1 }
 0x426   :  { %5785 = vmatprep.mubr.msk.f32.mxu0 %vm88_vm0, %v7572_v46 }
 0x427   :  { %v2047_v36 = vpop.f32.mrf.mxu1 }
 0x429   :  { %5786 = vmatmul.mubr.msk.f32.gmra.mxu0 %vm88_vm0, %v7579_v15  ;;  %v5812_v5 = vpop.f32.mrf.mxu1 }
 0x42a   :  { %5788 = vmatprep.mubr.msk.f32.mxu0 %vm88_vm0, %v7586_v41 }
 0x42b   :  { %v2057_v25 = vpop.f32.mrf.mxu1 }
 0x42d   :  { %5789 = vmatmul.mubr.msk.f32.gmra.mxu0 %vm88_vm0, %v7593_v48  ;;  %v5815_v43 = vpop.f32.mrf.mxu1 }
 0x42e   :  { %5791 = vmatprep.mubr.msk.f32.mxu0 %vm88_vm0, %v7600_v10 }
 0x42f   :  { %v2067_v44 = vpop.f32.mrf.mxu1 }
 0x431   :  { %5792 = vmatmul.mubr.msk.f32.gmra.mxu0 %vm88_vm0, %v7607_v24 }
 0x432   :  { %5830 = vmatprep.mubr.msk.f32.mxu0 %vm88_vm0, %v7277_v14 }
 0x4d5   :  { %v5772_v4 = vpop.f32.mrf.mxu0 }
 0x4d6   :  { %v2023_v37 = vadd.f32 %v5800_v53, %v5772_v4 }
 0x4d7   :  { %v1872_v54 = vpop.f32.mrf.mxu0 }
 0x4d8   :  { %v2018_v60 = vadd.f32 %v2017_v59, %v1872_v54  ;;  %v2097_v31 = vadd.f32 %v2023_v37, %v8553_v58  ;;  %v5818_v54 = vpop.f32.mrf.mxu1 }
 0x4d9   :  { %v5775_v63 = vpop.f32.mrf.mxu0 }
 0x4da   :  { %v2033_v42 = vadd.f32 %v5803_v7, %v5775_v63  ;;  %v2096_v14 = vadd.f32 %v2018_v60, %v8554_v6  ;;  %v2113_v34 = vmul.f32 0.5, %v2097_v31  ;;  %v8585_v60 = vld [vmem:[#allocation17_spill] sm:$0xff] }
 0x4db   :  { %v1882_v45 = vpop.f32.mrf.mxu0 }
 0x4dc   :  { %v2028_v8 = vadd.f32 %v2027_v56, %v1882_v45  ;;  %v2099_v17 = vadd.f32 %v2033_v42, %v8555_v23  ;;  %v2112_v49 = vmul.f32 0.5, %v2096_v14  ;;  %6256 = vtanh.f32 %v2113_v34 }
 0x4dd   :  { %v5778_v2 = vpop.f32.mrf.mxu0 }
 0x4de   :  { %v2043_v20 = vadd.f32 %v5806_v50, %v5778_v2  ;;  %v2098_v19 = vadd.f32 %v2028_v8, %v8557_v35  ;;  %v2115_v55 = vmul.f32 0.5, %v2099_v17  ;;  %v8584_v50 = vld [vmem:[#allocation10_spill] sm:$0xff]  ;;  %v2077_v2 = vpop.f32.mrf.mxu1  ;;  %v8587_v17 = vld [vmem:[#allocation15_spill] sm:$0xff] }
 0x4df   :  { %v1892_v47 = vpop.f32.mrf.mxu0 }
 0x4e0   :  { %v2101_v51 = vadd.f32 %v2043_v20, %v8556_v21  ;;  %v2038_v39 = vadd.f32 %v2037_v30, %v1892_v47  ;;  %v2114_v59 = vmul.f32 0.5, %v2098_v19  ;;  %v8588_v47 = vld [vmem:[#allocation16_spill] sm:$0xff] }
 0x4e1   :  { %v5781_v40 = vpop.f32.mrf.mxu0 }
 0x4e2   :  { %v2129_v3 = vmul.f32 0.5, %v2101_v51  ;;  %v2100_v16 = vadd.f32 %v2038_v39, %v8558_v9  ;;  %v2053_v38 = vadd.f32 %v5809_v27, %v5781_v40 }
 0x4e3   :  { %v1902_v33 = vpop.f32.mrf.mxu0 }
 0x4e4   :  { %6258 = vtanh.f32 %v2129_v3  ;;  %v2128_v52 = vmul.f32 0.5, %v2100_v16  ;;  %v2103_v12 = vadd.f32 %v2053_v38, %v8559_v11  ;;  %v2048_v53 = vadd.f32 %v2047_v36, %v1902_v33  ;;  %v8586_v36 = vld [vmem:[#allocation18_spill] sm:$0xff] }
 0x4e5   :  { %6260 = vtanh.f32 %v2112_v49  ;;  %v5784_v7 = vpop.f32.mrf.mxu0 }
 0x4e6   :  { %6262 = vtanh.f32 %v2115_v55  ;;  %v2131_v56 = vmul.f32 0.5, %v2103_v12  ;;  %v2102_v30 = vadd.f32 %v2048_v53, %v8584_v50  ;;  %v2063_v4 = vadd.f32 %v5812_v5, %v5784_v7  ;;  %v8589_v7 = vld [vmem:[#allocation21_spill] sm:$0xff] }
 0x4e7   :  { %6264 = vtanh.f32 %v2128_v52  ;;  %v1912_v37 = vpop.f32.mrf.mxu0 }
 0x4e8   :  { %6266 = vtanh.f32 %v2131_v56  ;;  %v2130_v27 = vmul.f32 0.5, %v2102_v30  ;;  %v2105_v63 = vadd.f32 %v2063_v4, %v8585_v60  ;;  %v2058_v42 = vadd.f32 %v2057_v25, %v1912_v37  ;;  %v5821_v25 = vpop.f32.mrf.mxu1  ;;  %v8590_v30 = vld [vmem:[#allocation19_spill] sm:$0xff] }
 0x4e9   :  { %6268 = vtanh.f32 %v2114_v59  ;;  %v5787_v31 = vpop.f32.mrf.mxu0  ;;  %v6257_v49 = vpop.eup %6256 }
 0x4ea   :  { %6270 = vtanh.f32 %v2130_v27  ;;  %v2104_v45 = vadd.f32 %v2058_v42, %v8586_v36  ;;  %v2073_v14 = vadd.f32 %v5815_v43, %v5787_v31  ;;  %v2087_v12 = vpop.f32.mrf.mxu1  ;;  %v2121_v53 = vmul.f32 0.5, %v6257_v49 }
 0x4eb   :  { %6272 = vtanh.f32 %v2105_v63  ;;  %v1922_v8 = vpop.f32.mrf.mxu0 }
 0x4ec   :  { %v2107_v20 = vadd.f32 %v2073_v14, %v8587_v17  ;;  %6274 = vtanh.f32 %v2104_v45  ;;  %v2068_v5 = vadd.f32 %v2067_v44, %v1922_v8 }
 0x4ed   :  { %v5790_v34 = vpop.f32.mrf.mxu0 }
 0x4ee   :  { %6276 = vtanh.f32 %v2107_v20  ;;  %v2106_v51 = vadd.f32 %v2068_v5, %v8588_v47  ;;  %v2083_v40 = vadd.f32 %v5818_v54, %v5790_v34  ;;  %v2125_v5 = vadd.f32 0.5, %v2121_v53 }
 0x4ef   :  { %v1932_v39 = vpop.f32.mrf.mxu0 }
 0x4f0   :  { %6278 = vtanh.f32 %v2106_v51  ;;  %v2078_v16 = vadd.f32 %v2077_v2, %v1932_v39  ;;  %v2109_v56 = vadd.f32 %v2083_v40, %v8589_v7 }
 0x4f1   :  { %v6259_v19 = vpop.eup %6258  ;;  %v5793_v55 = vpop.f32.mrf.mxu0 }
 0x4f2   :  { %v6261_v3 = vpop.eup %6260  ;;  %v2093_v38 = vadd.f32 %v5821_v25, %v5793_v55  ;;  %v2137_v44 = vmul.f32 0.5, %v6259_v19  ;;  %v2108_v14 = vadd.f32 %v2078_v16, %v8582_v26  ;;  %v2149_v25 = vmul.f32 0.5, %v2109_v56 }
 0x4f3   :  { %v6263_v43 = vpop.eup %6262  ;;  %v1942_v33 = vpop.f32.mrf.mxu0  ;;  %v2120_v63 = vmul.f32 0.5, %v6261_v3 }
 0x4f4   :  { %v6265_v52 = vpop.eup %6264  ;;  %v2111_v4 = vadd.f32 %v2093_v38, %v8590_v30  ;;  %v2088_v37 = vadd.f32 %v2087_v12, %v1942_v33  ;;  %v2123_v42 = vmul.f32 0.5, %v6263_v43  ;;  %v2141_v34 = vadd.f32 0.5, %v2137_v44 }
 0x4f5   :  { %v6267_v59 = vpop.eup %6266  ;;  %v2136_v45 = vmul.f32 0.5, %v6265_v52  ;;  %v2124_v55 = vadd.f32 0.5, %v2120_v63  ;;  %v2148_v16 = vmul.f32 0.5, %v2108_v14 }
 0x4f6   :  { %v6269_v27 = vpop.eup %6268  ;;  %v2139_v54 = vmul.f32 0.5, %v6267_v59  ;;  %v2151_v8 = vmul.f32 0.5, %v2111_v4  ;;  %v2110_v2 = vadd.f32 %v2088_v37, %v8583_v29  ;;  %v2127_v3 = vadd.f32 0.5, %v2123_v42 }
 0x4f7   :  { %v6271_v31 = vpop.eup %6270  ;;  %v2122_v49 = vmul.f32 0.5, %v6269_v27  ;;  %v2140_v33 = vadd.f32 0.5, %v2136_v45  ;;  %v2165_v12 = vmul.f32 %v2141_v34, %v7703_v28 }
 0x4f8   :  { %v6273_v20 = vpop.eup %6272  ;;  %v2143_v51 = vadd.f32 0.5, %v2139_v54  ;;  %v2138_v39 = vmul.f32 0.5, %v6271_v31  ;;  %6280 = vtanh.f32 %v2151_v8  ;;  %v2150_v19 = vmul.f32 0.5, %v2110_v2 }
 0x4f9   :  { %v6275_v40 = vpop.eup %6274  ;;  %v2169_v43 = vmul.f32 %v6273_v20, %v2125_v5  ;;  %v2126_v59 = vadd.f32 0.5, %v2122_v49  ;;  %v2164_v63 = vmul.f32 %v2140_v33, %v7710_v1  ;;  %v7824_v33 = vld [vmem:[%s8469_s3 + $0x8] sm:$0xff] }
 0x4fa   :  { %v2142_v52 = vadd.f32 0.5, %v2138_v39  ;;  %6282 = vtanh.f32 %v2150_v19  ;;  %v2167_v53 = vmul.f32 %v2143_v51, %v7705_v32  ;;  %v2168_v4 = vmul.f32 %v6275_v40, %v2124_v55 }
 0x4fb   :  { %v6277_v38 = vpop.eup %6276  ;;  %6284 = vtanh.f32 %v2149_v25  ;;  %v7791_v37 = vadd.f32 %v2169_v43, %v2165_v12  ;;  %v7845_v12 = vld [vmem:[%s8469_s3 + $0x20] sm:$0xff] }
 0x4fc   :  { %v2171_v44 = vmul.f32 %v6277_v38, %v2127_v3  ;;  %v2166_v42 = vmul.f32 %v2142_v52, %v7712_v61  ;;  %6286 = vtanh.f32 %v2148_v16  ;;  %v7798_v28 = vadd.f32 %v2168_v4, %v2164_v63  ;;  %v7831_v52 = vld [vmem:[%s8469_s3 + $0x10] sm:$0xff]  ;;  %v7838_v16 = vld [vmem:[%s8469_s3 + $0x18] sm:$0xff] }
 0x4fd   :  { %v6279_v56 = vpop.eup %6278 }
 0x4fe   :  { %v7793_v27 = vadd.f32 %v2171_v44, %v2167_v53  ;;  %v2170_v54 = vmul.f32 %v6279_v56, %v2126_v59 }
 0x500   :  { %6288 = vtanh.f32 %v7793_v27  ;;  %v7800_v32 = vadd.f32 %v2170_v54, %v2166_v42 }
 0x501   :  { %6290 = vtanh.f32 %v7791_v37 }
 0x502   :  { %6292 = vtanh.f32 %v7800_v32 }
 0x503   :  { %6294 = vtanh.f32 %v7798_v28 }
 0x505   :  { %v6281_v31 = vpop.eup %6280 }
 0x506   :  { %v2159_v14 = vmul.f32 0.5, %v6281_v31 }
 0x507   :  { %v6283_v45 = vpop.eup %6282 }
 0x508   :  { %v6285_v1 = vpop.eup %6284  ;;  %v2158_v8 = vmul.f32 0.5, %v6283_v45  ;;  %v2163_v2 = vadd.f32 0.5, %v2159_v14 }
 0x509   :  { %v6287_v61 = vpop.eup %6286  ;;  %v2157_v5 = vmul.f32 0.5, %v6285_v1 }
 0x50a   :  { %v2162_v39 = vadd.f32 0.5, %v2158_v8  ;;  %v2156_v49 = vmul.f32 0.5, %v6287_v61 }
 0x50b   :  { %v2161_v40 = vadd.f32 0.5, %v2157_v5 }
 0x50c   :  { %v2160_v43 = vadd.f32 0.5, %v2156_v49 }
 0x50d   :  { %v6289_v20 = vpop.eup %6288 }
 0x50e   :  { %v7805_v34 = vmul.f32 %v6289_v20, %v2163_v2  ;;  %v6291_v51 = vpop.eup %6290 }
 0x50f   :  { %v6293_v25 = vpop.eup %6292  ;;  %v7812_v3 = vmul.f32 %v6291_v51, %v2161_v40 }
 0x510   :  { %5822 = vmatprep.subr.mxu0 %v7805_v34  ;;  %v7809_v19 = vmul.f32 %v6293_v25, %v2162_v39  ;;  %v6295_v55 = vpop.eup %6294 }
 0x511   :  { %5823 = vmatpush3.msra.mxu0 %v7805_v34  ;;  %8592 = vst [vmem:[#allocation9_spill] sm:$0xff] %v7812_v3  ;;  %v7816_v38 = vmul.f32 %v6295_v55, %v2160_v43 }
 0x512   :  { %8591 = vst [vmem:[#allocation14_spill] sm:$0xff] %v7809_v19  ;;  %5824 = vmatprep.subr.mxu0 %v7809_v19 }
 0x513   :  { %5825 = vmatpush3.msra.mxu0 %v7809_v19  ;;  %8593 = vst [vmem:[#allocation22_spill] sm:$0xff] %v7816_v38 }
 0x514   :  { %5826 = vmatprep.subr.mxu0 %v7812_v3 }
 0x515   :  { %5827 = vmatpush3.msra.mxu0 %v7812_v3 }
 0x516   :  { %5828 = vmatprep.subr.mxu0 %v7816_v38 }
 0x517   :  { %5829 = vmatpush3.msra.mxu0 %v7816_v38 }
 0x518   :  { %5831 = vmatmul.mubr.msk.f32.vlgmr.msra.gmra.mxu0 %vm88_vm0, %v7824_v33 }
 0x519   :  { %5833 = vmatprep.mubr.msk.f32.mxu0 %vm88_vm0, %v7831_v52 }
 0x51c   :  { %5834 = vmatmul.mubr.msk.f32.gmra.mxu0 %vm88_vm0, %v7838_v16 }
 0x51d   :  { %5836 = vmatprep.mubr.msk.f32.mxu0 %vm88_vm0, %v7845_v12 }
 0x520   :  { %5837 = vmatmul.mubr.msk.f32.gmra.mxu0 %vm88_vm0, %v7537_v62  ;;  %v7874_v62 = vld [vmem:[%s8469_s3] sm:$0xff] }
 0x521   :  { %5839 = vmatprep.mubr.msk.f32.mxu0 %vm88_vm0, %v7544_v57  ;;  %v5860_v57 = vpop.f32.mrf.mxu1 }
 0x524   :  { %5840 = vmatmul.mubr.msk.f32.gmra.mxu0 %vm88_vm0, %v7551_v13  ;;  %v2402_v13 = vpop.f32.mrf.mxu1 }
 0x525   :  { %5842 = vmatprep.mubr.msk.f32.mxu0 %vm88_vm0, %v7558_v0 }
 0x526   :  { %v5863_v0 = vpop.f32.mrf.mxu1 }
 0x528   :  { %5843 = vmatmul.mubr.msk.f32.gmra.mxu0 %vm88_vm0, %v7565_v18  ;;  %v2412_v18 = vpop.f32.mrf.mxu1 }
 0x529   :  { %5845 = vmatprep.mubr.msk.f32.mxu0 %vm88_vm0, %v7572_v46 }
 0x52a   :  { %v5866_v46 = vpop.f32.mrf.mxu1 }
 0x52c   :  { %5846 = vmatmul.mubr.msk.f32.gmra.mxu0 %vm88_vm0, %v7579_v15  ;;  %v2422_v15 = vpop.f32.mrf.mxu1 }
 0x52d   :  { %5848 = vmatprep.mubr.msk.f32.mxu0 %vm88_vm0, %v7586_v41 }
 0x52e   :  { %v5869_v41 = vpop.f32.mrf.mxu1 }
 0x530   :  { %5849 = vmatmul.mubr.msk.f32.gmra.mxu0 %vm88_vm0, %v7593_v48  ;;  %v2432_v48 = vpop.f32.mrf.mxu1 }
 0x531   :  { %5851 = vmatprep.mubr.msk.f32.mxu0 %vm88_vm0, %v7600_v10 }
 0x534   :  { %5852 = vmatmul.mubr.msk.f32.gmra.mxu0 %vm88_vm0, %v7607_v24  ;;  %v5872_v24 = vpop.f32.mrf.mxu1 }
 0x535   :  { %5890 = vmatprep.mubr.msk.f32.mxu0 %vm88_vm0, %v7874_v62 }
 0x536   :  { %v2442_v54 = vpop.f32.mrf.mxu1 }
 0x538   :  { %v5875_v20 = vpop.f32.mrf.mxu1 }
 0x5d8   :  { %v5832_v10 = vpop.f32.mrf.mxu0 }
 0x5d9   :  { %v2408_v53 = vadd.f32 %v5860_v57, %v5832_v10 }
 0x5da   :  { %v2257_v44 = vpop.f32.mrf.mxu0 }
 0x5db   :  { %v2403_v59 = vadd.f32 %v2402_v13, %v2257_v44  ;;  %v2482_v63 = vadd.f32 %v2408_v53, %v8553_v58 }
 0x5dc   :  { %v5835_v4 = vpop.f32.mrf.mxu0 }
 0x5dd   :  { %v2418_v56 = vadd.f32 %v5863_v0, %v5835_v4  ;;  %v2481_v31 = vadd.f32 %v2403_v59, %v8554_v6  ;;  %v2498_v61 = vmul.f32 0.5, %v2482_v63  ;;  %v2452_v0 = vpop.f32.mrf.mxu1 }
 0x5de   :  { %v2267_v42 = vpop.f32.mrf.mxu0 }
 0x5df   :  { %v2413_v45 = vadd.f32 %v2412_v18, %v2267_v42  ;;  %v2484_v1 = vadd.f32 %v2418_v56, %v8555_v23  ;;  %v2497_v39 = vmul.f32 0.5, %v2481_v31  ;;  %6296 = vtanh.f32 %v2498_v61  ;;  %v5878_v63 = vpop.f32.mrf.mxu1 }
 0x5e0   :  { %v5838_v14 = vpop.f32.mrf.mxu0 }
 0x5e1   :  { %v2428_v8 = vadd.f32 %v5866_v46, %v5838_v14  ;;  %v2483_v49 = vadd.f32 %v2413_v45, %v8557_v35  ;;  %v2500_v40 = vmul.f32 0.5, %v2484_v1 }
 0x5e2   :  { %v2277_v2 = vpop.f32.mrf.mxu0 }
 0x5e3   :  { %v2486_v5 = vadd.f32 %v2428_v8, %v8556_v21  ;;  %v2423_v51 = vadd.f32 %v2422_v15, %v2277_v2  ;;  %v2499_v53 = vmul.f32 0.5, %v2483_v49  ;;  %v2462_v8 = vpop.f32.mrf.mxu1 }
 0x5e4   :  { %v5841_v25 = vpop.f32.mrf.mxu0 }
 0x5e5   :  { %v2514_v55 = vmul.f32 0.5, %v2486_v5  ;;  %v2485_v43 = vadd.f32 %v2423_v51, %v8558_v9  ;;  %v2438_v57 = vadd.f32 %v5869_v41, %v5841_v25 }
 0x5e6   :  { %v2287_v13 = vpop.f32.mrf.mxu0 }
 0x5e7   :  { %6298 = vtanh.f32 %v2514_v55  ;;  %v2513_v18 = vmul.f32 0.5, %v2485_v43  ;;  %v2488_v46 = vadd.f32 %v2438_v57, %v8559_v11  ;;  %v2433_v10 = vadd.f32 %v2432_v48, %v2287_v13 }
 0x5e8   :  { %6300 = vtanh.f32 %v2497_v39  ;;  %v5844_v15 = vpop.f32.mrf.mxu0 }
 0x5e9   :  { %6302 = vtanh.f32 %v2500_v40  ;;  %v2516_v44 = vmul.f32 0.5, %v2488_v46  ;;  %v2487_v59 = vadd.f32 %v2433_v10, %v8584_v50  ;;  %v2448_v4 = vadd.f32 %v5872_v24, %v5844_v15 }
 0x5ea   :  { %6304 = vtanh.f32 %v2513_v18  ;;  %v2297_v56 = vpop.f32.mrf.mxu0 }
 0x5eb   :  { %6306 = vtanh.f32 %v2516_v44  ;;  %v2515_v41 = vmul.f32 0.5, %v2487_v59  ;;  %v2490_v42 = vadd.f32 %v2448_v4, %v8585_v60  ;;  %v2443_v31 = vadd.f32 %v2442_v54, %v2297_v56  ;;  %v5881_v54 = vpop.f32.mrf.mxu1 }
 0x5ec   :  { %6308 = vtanh.f32 %v2499_v53  ;;  %v5847_v45 = vpop.f32.mrf.mxu0  ;;  %v6297_v39 = vpop.eup %6296 }
 0x5ed   :  { %6310 = vtanh.f32 %v2515_v41  ;;  %v2489_v48 = vadd.f32 %v2443_v31, %v8586_v36  ;;  %v2458_v14 = vadd.f32 %v5875_v20, %v5847_v45  ;;  %v2472_v46 = vpop.f32.mrf.mxu1  ;;  %v2506_v10 = vmul.f32 0.5, %v6297_v39 }
 0x5ee   :  { %6312 = vtanh.f32 %v2490_v42  ;;  %v2307_v1 = vpop.f32.mrf.mxu0 }
 0x5ef   :  { %v2492_v61 = vadd.f32 %v2458_v14, %v8587_v17  ;;  %6314 = vtanh.f32 %v2489_v48  ;;  %v2453_v24 = vadd.f32 %v2452_v0, %v2307_v1 }
 0x5f0   :  { %v5850_v2 = vpop.f32.mrf.mxu0 }
 0x5f1   :  { %6316 = vtanh.f32 %v2492_v61  ;;  %v2491_v5 = vadd.f32 %v2453_v24, %v8588_v47  ;;  %v2468_v25 = vadd.f32 %v5878_v63, %v5850_v2 }
 0x5f2   :  { %v2317_v51 = vpop.f32.mrf.mxu0 }
 0x5f3   :  { %6318 = vtanh.f32 %v2491_v5  ;;  %v2463_v43 = vadd.f32 %v2462_v8, %v2317_v51  ;;  %v2494_v15 = vadd.f32 %v2468_v25, %v8589_v7  ;;  %v2510_v8 = vadd.f32 0.5, %v2506_v10 }
 0x5f4   :  { %v6299_v49 = vpop.eup %6298  ;;  %v5853_v40 = vpop.f32.mrf.mxu0 }
 0x5f5   :  { %v6301_v55 = vpop.eup %6300  ;;  %v2478_v57 = vadd.f32 %v5881_v54, %v5853_v40  ;;  %v2522_v0 = vmul.f32 0.5, %v6299_v49  ;;  %v2493_v45 = vadd.f32 %v2463_v43, %v8582_v26  ;;  %v2534_v51 = vmul.f32 0.5, %v2494_v15 }
 0x5f6   :  { %v6303_v20 = vpop.eup %6302  ;;  %v2327_v13 = vpop.f32.mrf.mxu0  ;;  %v2505_v56 = vmul.f32 0.5, %v6301_v55 }
 0x5f7   :  { %v6305_v18 = vpop.eup %6304  ;;  %v2496_v44 = vadd.f32 %v2478_v57, %v8590_v30  ;;  %v2473_v59 = vadd.f32 %v2472_v46, %v2327_v13  ;;  %v2508_v41 = vmul.f32 0.5, %v6303_v20  ;;  %v2526_v61 = vadd.f32 0.5, %v2522_v0 }
 0x5f8   :  { %v6307_v53 = vpop.eup %6306  ;;  %v2521_v31 = vmul.f32 0.5, %v6305_v18  ;;  %v2509_v49 = vadd.f32 0.5, %v2505_v56  ;;  %v2533_v43 = vmul.f32 0.5, %v2493_v45 }
 0x5f9   :  { %v6309_v4 = vpop.eup %6308  ;;  %v2524_v63 = vmul.f32 0.5, %v6307_v53  ;;  %v2536_v48 = vmul.f32 0.5, %v2496_v44  ;;  %v2495_v14 = vadd.f32 %v2473_v59, %v8583_v29  ;;  %v2512_v25 = vadd.f32 0.5, %v2508_v41 }
 0x5fa   :  { %v6311_v42 = vpop.eup %6310  ;;  %v2507_v5 = vmul.f32 0.5, %v6309_v4  ;;  %v2525_v20 = vadd.f32 0.5, %v2521_v31  ;;  %v2550_v13 = vmul.f32 %v2526_v61, %v7791_v37 }
 0x5fb   :  { %v6313_v1 = vpop.eup %6312  ;;  %v2528_v24 = vadd.f32 0.5, %v2524_v63  ;;  %v2523_v2 = vmul.f32 0.5, %v6311_v42  ;;  %6320 = vtanh.f32 %v2536_v48  ;;  %v2535_v39 = vmul.f32 0.5, %v2495_v14 }
 0x5fc   :  { %v6315_v54 = vpop.eup %6314  ;;  %v2554_v40 = vmul.f32 %v6313_v1, %v2510_v8  ;;  %v2511_v10 = vadd.f32 0.5, %v2507_v5  ;;  %v2549_v59 = vmul.f32 %v2525_v20, %v7798_v28  ;;  %v7951_v20 = vld [vmem:[%s8469_s3 + $0x38] sm:$0xff] }
 0x5fd   :  { %v2527_v57 = vadd.f32 0.5, %v2523_v2  ;;  %6322 = vtanh.f32 %v2535_v39  ;;  %v2552_v18 = vmul.f32 %v2528_v24, %v7793_v27  ;;  %v2553_v0 = vmul.f32 %v6315_v54, %v2509_v49 }
 0x5fe   :  { %v6317_v55 = vpop.eup %6316  ;;  %6324 = vtanh.f32 %v2534_v51  ;;  %v7896_v15 = vadd.f32 %v2554_v40, %v2550_v13  ;;  %v7937_v40 = vld [vmem:[%s8469_s3 + $0x28] sm:$0xff]  ;;  %v7972_v13 = vld [vmem:[%s8469_s3 + $0x50] sm:$0xff] }
 0x5ff   :  { %v2556_v46 = vmul.f32 %v6317_v55, %v2512_v25  ;;  %v2551_v4 = vmul.f32 %v2527_v57, %v7800_v32  ;;  %6326 = vtanh.f32 %v2533_v43  ;;  %v7903_v37 = vadd.f32 %v2553_v0, %v2549_v59  ;;  %v7944_v55 = vld [vmem:[%s8469_s3 + $0x30] sm:$0xff]  ;;  %v7958_v57 = vld [vmem:[%s8469_s3 + $0x40] sm:$0xff]  ;;  %v7965_v43 = vld [vmem:[%s8469_s3 + $0x48] sm:$0xff]  ;;  %v5920_v59 = vpop.f32.mrf.mxu1 }
 0x600   :  { %v6319_v53 = vpop.eup %6318  ;;  %v8000_v0 = vld [vmem:[%s8469_s3 + $0x70] sm:$0xff] }
 0x601   :  { %v7898_v44 = vadd.f32 %v2556_v46, %v2552_v18  ;;  %v2555_v56 = vmul.f32 %v6319_v53, %v2511_v10  ;;  %v7979_v18 = vld [vmem:[%s8469_s3 + $0x58] sm:$0xff]  ;;  %v7986_v46 = vld [vmem:[%s8469_s3 + $0x60] sm:$0xff]  ;;  %v7993_v10 = vld [vmem:[%s8469_s3 + $0x68] sm:$0xff] }
 0x602   :  { %v8007_v53 = vld [vmem:[%s8469_s3 + $0x78] sm:$0xff] }
 0x603   :  { %6328 = vtanh.f32 %v7898_v44  ;;  %v7905_v27 = vadd.f32 %v2555_v56, %v2551_v4  ;;  %v2787_v4 = vpop.f32.mrf.mxu1 }
 0x604   :  { %6330 = vtanh.f32 %v7896_v15 }
 0x605   :  { %6332 = vtanh.f32 %v7905_v27  ;;  %v5923_v56 = vpop.f32.mrf.mxu1 }
 0x606   :  { %6334 = vtanh.f32 %v7903_v37 }
 0x608   :  { %v6321_v41 = vpop.eup %6320 }
 0x609   :  { %v2544_v42 = vmul.f32 0.5, %v6321_v41  ;;  %v2797_v41 = vpop.f32.mrf.mxu1 }
 0x60a   :  { %v6323_v63 = vpop.eup %6322 }
 0x60b   :  { %v6325_v28 = vpop.eup %6324  ;;  %v2543_v31 = vmul.f32 0.5, %v6323_v63  ;;  %v2548_v45 = vadd.f32 0.5, %v2544_v42  ;;  %v5926_v63 = vpop.f32.mrf.mxu1 }
 0x60c   :  { %v6327_v32 = vpop.eup %6326  ;;  %v2542_v14 = vmul.f32 0.5, %v6325_v28 }
 0x60d   :  { %v2547_v61 = vadd.f32 0.5, %v2543_v31  ;;  %v2541_v24 = vmul.f32 0.5, %v6327_v32  ;;  %v2807_v42 = vpop.f32.mrf.mxu1 }
 0x60e   :  { %v2546_v51 = vadd.f32 0.5, %v2542_v14 }
 0x60f   :  { %v2545_v49 = vadd.f32 0.5, %v2541_v24  ;;  %v5929_v28 = vpop.f32.mrf.mxu1 }
 0x610   :  { %v6329_v48 = vpop.eup %6328 }
 0x611   :  { %v7910_v1 = vmul.f32 %v6329_v48, %v2548_v45  ;;  %v6331_v8 = vpop.eup %6330  ;;  %v2817_v31 = vpop.f32.mrf.mxu1 }
 0x612   :  { %v6333_v2 = vpop.eup %6332  ;;  %v7917_v54 = vmul.f32 %v6331_v8, %v2546_v51 }
 0x613   :  { %5882 = vmatprep.subr.mxu0 %v7910_v1  ;;  %v7914_v5 = vmul.f32 %v6333_v2, %v2547_v61  ;;  %v6335_v39 = vpop.eup %6334  ;;  %v5932_v14 = vpop.f32.mrf.mxu1 }
 0x614   :  { %5883 = vmatpush3.msra.mxu0 %v7910_v1  ;;  %8595 = vst [vmem:[#allocation10_spill] sm:$0xff] %v7917_v54  ;;  %v7921_v25 = vmul.f32 %v6335_v39, %v2545_v49 }
 0x615   :  { %8594 = vst [vmem:[#allocation20_spill] sm:$0xff] %v7914_v5  ;;  %5884 = vmatprep.subr.mxu0 %v7914_v5  ;;  %v2827_v39 = vpop.f32.mrf.mxu1 }
 0x616   :  { %5885 = vmatpush3.msra.mxu0 %v7914_v5  ;;  %8596 = vst [vmem:[#allocation17_spill] sm:$0xff] %v7921_v25 }
 0x617   :  { %5886 = vmatprep.subr.mxu0 %v7917_v54  ;;  %v5935_v5 = vpop.f32.mrf.mxu1 }
 0x618   :  { %5887 = vmatpush3.msra.mxu0 %v7917_v54 }
 0x619   :  { %5888 = vmatprep.subr.mxu0 %v7921_v25 }
 0x61a   :  { %5889 = vmatpush3.msra.mxu0 %v7921_v25 }
 0x61b   :  { %5891 = vmatmul.mubr.msk.f32.vlgmr.msra.gmra.mxu0 %vm88_vm0, %v7824_v33 }
 0x61c   :  { %5893 = vmatprep.mubr.msk.f32.mxu0 %vm88_vm0, %v7831_v52 }
 0x61f   :  { %5894 = vmatmul.mubr.msk.f32.gmra.mxu0 %vm88_vm0, %v7838_v16 }
 0x620   :  { %5896 = vmatprep.mubr.msk.f32.mxu0 %vm88_vm0, %v7845_v12 }
 0x623   :  { %5897 = vmatmul.mubr.msk.f32.gmra.mxu0 %vm88_vm0, %v7937_v40 }
 0x624   :  { %5899 = vmatprep.mubr.msk.f32.mxu0 %vm88_vm0, %v7944_v55 }
 0x627   :  { %5900 = vmatmul.mubr.msk.f32.gmra.mxu0 %vm88_vm0, %v7951_v20 }
 0x628   :  { %5902 = vmatprep.mubr.msk.f32.mxu0 %vm88_vm0, %v7958_v57 }
 0x62b   :  { %5903 = vmatmul.mubr.msk.f32.gmra.mxu0 %vm88_vm0, %v7965_v43 }
 0x62c   :  { %5905 = vmatprep.mubr.msk.f32.mxu0 %vm88_vm0, %v7972_v13 }
 0x62f   :  { %5906 = vmatmul.mubr.msk.f32.gmra.mxu0 %vm88_vm0, %v7979_v18 }
 0x630   :  { %5908 = vmatprep.mubr.msk.f32.mxu0 %vm88_vm0, %v7986_v46 }
 0x633   :  { %5909 = vmatmul.mubr.msk.f32.gmra.mxu0 %vm88_vm0, %v7993_v10 }
 0x634   :  { %5911 = vmatprep.mubr.msk.f32.mxu0 %vm88_vm0, %v8000_v0 }
 0x637   :  { %5912 = vmatmul.mubr.msk.f32.gmra.mxu0 %vm88_vm0, %v8007_v53 }
 0x638   :  { %5950 = vmatprep.mubr.msk.f32.mxu0 %vm88_vm0, %v7874_v62 }
 0x6db   :  { %v5892_v32 = vpop.f32.mrf.mxu0 }
 0x6dc   :  { %v2793_v45 = vadd.f32 %v5920_v59, %v5892_v32 }
 0x6dd   :  { %v2642_v48 = vpop.f32.mrf.mxu0 }
 0x6de   :  { %v2788_v8 = vadd.f32 %v2787_v4, %v2642_v48  ;;  %v2867_v2 = vadd.f32 %v2793_v45, %v8553_v58 }
 0x6df   :  { %v5895_v61 = vpop.f32.mrf.mxu0 }
 0x6e0   :  { %v2803_v24 = vadd.f32 %v5923_v56, %v5895_v61  ;;  %v2866_v62 = vadd.f32 %v2788_v8, %v8554_v6  ;;  %v2883_v54 = vmul.f32 0.5, %v2867_v2 }
 0x6e1   :  { %v2652_v51 = vpop.f32.mrf.mxu0 }
 0x6e2   :  { %v2798_v49 = vadd.f32 %v2797_v41, %v2652_v51  ;;  %v2869_v25 = vadd.f32 %v2803_v24, %v8555_v23  ;;  %v2882_v4 = vmul.f32 0.5, %v2866_v62  ;;  %6336 = vtanh.f32 %v2883_v54  ;;  %v2837_v51 = vpop.f32.mrf.mxu1 }
 0x6e3   :  { %v5898_v38 = vpop.f32.mrf.mxu0 }
 0x6e4   :  { %v2813_v3 = vadd.f32 %v5926_v63, %v5898_v38  ;;  %v2868_v56 = vadd.f32 %v2798_v49, %v8557_v35  ;;  %v2885_v45 = vmul.f32 0.5, %v2869_v25  ;;  %v5938_v49 = vpop.f32.mrf.mxu1 }
 0x6e5   :  { %v2662_v19 = vpop.f32.mrf.mxu0 }
 0x6e6   :  { %v2871_v59 = vadd.f32 %v2813_v3, %v8556_v21  ;;  %v2808_v32 = vadd.f32 %v2807_v42, %v2662_v19  ;;  %v2884_v3 = vmul.f32 0.5, %v2868_v56  ;;  %v2847_v56 = vpop.f32.mrf.mxu1 }
 0x6e7   :  { %v5901_v48 = vpop.f32.mrf.mxu0 }
 0x6e8   :  { %v2899_v61 = vmul.f32 0.5, %v2871_v59  ;;  %v2870_v58 = vadd.f32 %v2808_v32, %v8558_v9  ;;  %v2823_v8 = vadd.f32 %v5929_v28, %v5901_v48 }
 0x6e9   :  { %v2672_v41 = vpop.f32.mrf.mxu0 }
 0x6ea   :  { %6338 = vtanh.f32 %v2899_v61  ;;  %v2898_v38 = vmul.f32 0.5, %v2870_v58  ;;  %v2873_v63 = vadd.f32 %v2823_v8, %v8559_v11  ;;  %v2818_v24 = vadd.f32 %v2817_v31, %v2672_v41 }
 0x6eb   :  { %6340 = vtanh.f32 %v2882_v4  ;;  %v5904_v19 = vpop.f32.mrf.mxu0 }
 0x6ec   :  { %6342 = vtanh.f32 %v2885_v45  ;;  %v2901_v42 = vmul.f32 0.5, %v2873_v63  ;;  %v2872_v2 = vadd.f32 %v2818_v24, %v8584_v50  ;;  %v2833_v25 = vadd.f32 %v5932_v14, %v5904_v19 }
 0x6ed   :  { %6344 = vtanh.f32 %v2898_v38  ;;  %v2682_v62 = vpop.f32.mrf.mxu0 }
 0x6ee   :  { %6346 = vtanh.f32 %v2901_v42  ;;  %v2900_v54 = vmul.f32 0.5, %v2872_v2  ;;  %v2875_v28 = vadd.f32 %v2833_v25, %v8585_v60  ;;  %v2828_v59 = vadd.f32 %v2827_v39, %v2682_v62  ;;  %v5941_v39 = vpop.f32.mrf.mxu1 }
 0x6ef   :  { %6348 = vtanh.f32 %v2884_v3  ;;  %v5907_v58 = vpop.f32.mrf.mxu0  ;;  %v6337_v41 = vpop.eup %6336 }
 0x6f0   :  { %6350 = vtanh.f32 %v2900_v54  ;;  %v2874_v31 = vadd.f32 %v2828_v59, %v8586_v36  ;;  %v2843_v32 = vadd.f32 %v5935_v5, %v5907_v58  ;;  %v2857_v62 = vpop.f32.mrf.mxu1  ;;  %v2891_v54 = vmul.f32 0.5, %v6337_v41 }
 0x6f1   :  { %6352 = vtanh.f32 %v2875_v28  ;;  %v2692_v4 = vpop.f32.mrf.mxu0 }
 0x6f2   :  { %v2877_v48 = vadd.f32 %v2843_v32, %v8587_v17  ;;  %6354 = vtanh.f32 %v2874_v31  ;;  %v2838_v14 = vadd.f32 %v2837_v51, %v2692_v4  ;;  %v2895_v41 = vadd.f32 0.5, %v2891_v54 }
 0x6f3   :  { %v5910_v45 = vpop.f32.mrf.mxu0 }
 0x6f4   :  { %6356 = vtanh.f32 %v2877_v48  ;;  %v2876_v61 = vadd.f32 %v2838_v14, %v8588_v47  ;;  %v2853_v63 = vadd.f32 %v5938_v49, %v5910_v45 }
 0x6f5   :  { %v2702_v8 = vpop.f32.mrf.mxu0 }
 0x6f6   :  { %6358 = vtanh.f32 %v2876_v61  ;;  %v2848_v19 = vadd.f32 %v2847_v56, %v2702_v8  ;;  %v2879_v59 = vadd.f32 %v2853_v63, %v8589_v7 }
 0x6f7   :  { %v6339_v38 = vpop.eup %6338  ;;  %v5913_v24 = vpop.f32.mrf.mxu0 }
 0x6f8   :  { %v6341_v3 = vpop.eup %6340  ;;  %v2863_v42 = vadd.f32 %v5941_v39, %v5913_v24  ;;  %v2907_v51 = vmul.f32 0.5, %v6339_v38  ;;  %v2878_v56 = vadd.f32 %v2848_v19, %v8582_v26  ;;  %v2919_v7 = vmul.f32 0.5, %v2879_v59 }
 0x6f9   :  { %v6343_v5 = vpop.eup %6342  ;;  %v2712_v2 = vpop.f32.mrf.mxu0  ;;  %v2890_v4 = vmul.f32 0.5, %v6341_v3 }
 0x6fa   :  { %v6345_v25 = vpop.eup %6344  ;;  %v2881_v58 = vadd.f32 %v2863_v42, %v8590_v30  ;;  %v2858_v31 = vadd.f32 %v2857_v62, %v2712_v2  ;;  %v2893_v48 = vmul.f32 0.5, %v6343_v5  ;;  %v2911_v38 = vadd.f32 0.5, %v2907_v51 }
 0x6fb   :  { %v6347_v28 = vpop.eup %6346  ;;  %v2906_v45 = vmul.f32 0.5, %v6345_v25  ;;  %v2894_v3 = vadd.f32 0.5, %v2890_v4  ;;  %v2918_v19 = vmul.f32 0.5, %v2878_v56 }
 0x6fc   :  { %v6349_v32 = vpop.eup %6348  ;;  %v2909_v49 = vmul.f32 0.5, %v6347_v28  ;;  %v2921_v61 = vmul.f32 0.5, %v2881_v58  ;;  %v2880_v8 = vadd.f32 %v2858_v31, %v8583_v29  ;;  %v2897_v5 = vadd.f32 0.5, %v2893_v48 }
 0x6fd   :  { %v6351_v14 = vpop.eup %6350  ;;  %v2892_v63 = vmul.f32 0.5, %v6349_v32  ;;  %v2910_v25 = vadd.f32 0.5, %v2906_v45  ;;  %v2935_v58 = vmul.f32 %v2911_v38, %v7896_v15 }
 0x6fe   :  { %v6353_v39 = vpop.eup %6352  ;;  %v2913_v24 = vadd.f32 0.5, %v2909_v49  ;;  %v2908_v47 = vmul.f32 0.5, %v6351_v14  ;;  %6360 = vtanh.f32 %v2921_v61  ;;  %v2920_v42 = vmul.f32 0.5, %v2880_v8 }
 0x6ff   :  { %v6355_v2 = vpop.eup %6354  ;;  %v2939_v62 = vmul.f32 %v6353_v39, %v2895_v41  ;;  %v2896_v31 = vadd.f32 0.5, %v2892_v63  ;;  %v2934_v4 = vmul.f32 %v2910_v25, %v7903_v37 }
 0x700   :  { %v2912_v30 = vadd.f32 0.5, %v2908_v47  ;;  %6362 = vtanh.f32 %v2920_v42  ;;  %v2937_v54 = vmul.f32 %v2913_v24, %v7898_v44  ;;  %v2938_v49 = vmul.f32 %v6355_v2, %v2894_v3 }
 0x701   :  { %v6357_v28 = vpop.eup %6356  ;;  %6364 = vtanh.f32 %v2919_v7  ;;  %v8031_v32 = vadd.f32 %v2939_v62, %v2935_v58  ;;  %v8598_v58 = vld [vmem:[#allocation23_spill] sm:$0xff] }
 0x702   :  { %v2941_v51 = vmul.f32 %v6357_v28, %v2897_v5  ;;  %v2936_v48 = vmul.f32 %v2912_v30, %v7905_v27  ;;  %6366 = vtanh.f32 %v2918_v19  ;;  %v8038_v15 = vadd.f32 %v2938_v49, %v2934_v4  ;;  %v8597_v19 = vld [vmem:[#allocation13_spill] sm:$0xff] }
 0x703   :  { %v6359_v59 = vpop.eup %6358  ;;  %v8602_v49 = vld [vmem:[#allocation25_spill] sm:$0xff] }
 0x704   :  { %v8033_v14 = vadd.f32 %v2941_v51, %v2937_v54  ;;  %v2940_v47 = vmul.f32 %v6359_v59, %v2896_v31  ;;  %v8599_v54 = vld [vmem:[#allocation7_spill] sm:$0xff]  ;;  %v8600_v51 = vld [vmem:[#allocation24_spill] sm:$0xff]  ;;  %v8604_v59 = vld [vmem:[#allocation26_spill] sm:$0xff] }
 0x705   :  { %v8601_v31 = vld [vmem:[#allocation12_spill] sm:$0xff] }
 0x706   :  { %6368 = vtanh.f32 %v8033_v14  ;;  %v8040_v44 = vadd.f32 %v2940_v47, %v2936_v48 }
 0x707   :  { %6370 = vtanh.f32 %v8031_v32 }
 0x708   :  { %6372 = vtanh.f32 %v8040_v44 }
 0x709   :  { %6374 = vtanh.f32 %v8038_v15 }
 0x70b   :  { %v6361_v7 = vpop.eup %6360 }
 0x70c   :  { %v2929_v56 = vmul.f32 0.5, %v6361_v7 }
 0x70d   :  { %v6363_v45 = vpop.eup %6362 }
 0x70e   :  { %v6365_v37 = vpop.eup %6364  ;;  %v2928_v61 = vmul.f32 0.5, %v6363_v45  ;;  %v2933_v27 = vadd.f32 0.5, %v2929_v56 }
 0x70f   :  { %v6367_v30 = vpop.eup %6366  ;;  %v2927_v39 = vmul.f32 0.5, %v6365_v37 }
 0x710   :  { %v2932_v24 = vadd.f32 0.5, %v2928_v61  ;;  %v2926_v63 = vmul.f32 0.5, %v6367_v30 }
 0x711   :  { %v2931_v3 = vadd.f32 0.5, %v2927_v39 }
 0x712   :  { %v2930_v28 = vadd.f32 0.5, %v2926_v63  ;;  %v8611_v63 = vld [vmem:[#allocation11_spill] sm:$0xff] }
 0x713   :  { %v6369_v8 = vpop.eup %6368 }
 0x714   :  { %v8045_v41 = vmul.f32 %v6369_v8, %v2933_v27  ;;  %v6371_v38 = vpop.eup %6370 }
 0x715   :  { %v6373_v42 = vpop.eup %6372  ;;  %v8052_v62 = vmul.f32 %v6371_v38, %v2931_v3 }
 0x716   :  { %5942 = vmatprep.subr.mxu0 %v8045_v41  ;;  %v8049_v2 = vmul.f32 %v6373_v42, %v2932_v24  ;;  %v6375_v5 = vpop.eup %6374 }
 0x717   :  { %5943 = vmatpush3.msra.mxu0 %v8045_v41  ;;  %v8056_v25 = vmul.f32 %v6375_v5, %v2930_v28 }
 0x718   :  { %5944 = vmatprep.subr.mxu0 %v8049_v2 }
 0x719   :  { %5945 = vmatpush3.msra.mxu0 %v8049_v2 }
 0x71a   :  { %5946 = vmatprep.subr.mxu0 %v8052_v62 }
 0x71b   :  { %5947 = vmatpush3.msra.mxu0 %v8052_v62 }
 0x71c   :  { %5948 = vmatprep.subr.mxu0 %v8056_v25 }
 0x71d   :  { %5949 = vmatpush3.msra.mxu0 %v8056_v25 }
 0x71e   :  { %5951 = vmatmul.mubr.msk.f32.vlgmr.msra.gmra.mxu0 %vm88_vm0, %v7824_v33  ;;  %3439 = vmatprep.subr.mxu0 %v8597_v19  ;;  %v8603_v33 = vld [vmem:[#allocation8_spill] sm:$0xff] }
 0x71f   :  { %3440 = vmatpush1.msra.mxu0 %v8598_v58  ;;  %5953 = vmatprep.mubr.msk.f32.mxu0 %vm88_vm0, %v7831_v52  ;;  %v8104_v52 = vld [vmem:[%s8470_s4] sm:$0xff] }
 0x720   :  { %3441 = vmatprep.subr.mxu0 %v8599_v54 }
 0x721   :  { %3442 = vmatpush1.msra.mxu0 %v8600_v51 }
 0x722   :  { %5954 = vmatmul.mubr.msk.f32.gmra.mxu0 %vm88_vm0, %v7838_v16  ;;  %3443 = vmatprep.subr.mxu0 %v8601_v31  ;;  %v8605_v16 = vld [vmem:[#allocation20_spill] sm:$0xff] }
 0x723   :  { %3444 = vmatpush1.msra.mxu0 %v8602_v49  ;;  %5956 = vmatprep.mubr.msk.f32.mxu0 %vm88_vm0, %v7845_v12  ;;  %v8606_v12 = vld [vmem:[#allocation14_spill] sm:$0xff] }
 0x724   :  { %3445 = vmatprep.subr.mxu0 %v8603_v33 }
 0x725   :  { %3446 = vmatpush1.msra.mxu0 %v8604_v59 }
 0x726   :  { %5957 = vmatmul.mubr.msk.f32.gmra.mxu0 %vm88_vm0, %v7937_v40  ;;  %3617 = vmatprep.subr.mxu0 %v7910_v1  ;;  %v8607_v1 = vld [vmem:[#allocation10_spill] sm:$0xff] }
 0x727   :  { %5959 = vmatprep.mubr.msk.f32.mxu0 %vm88_vm0, %v7944_v55  ;;  %v8116_v40 = vld [vmem:[%s8470_s4 + $0x8] sm:$0xff]  ;;  %v8608_v55 = vld [vmem:[#allocation9_spill] sm:$0xff] }
 0x72a   :  { %5960 = vmatmul.mubr.msk.f32.gmra.mxu0 %vm88_vm0, %v7951_v20  ;;  %v8610_v20 = vld [vmem:[#allocation22_spill] sm:$0xff] }
 0x72b   :  { %5962 = vmatprep.mubr.msk.f32.mxu0 %vm88_vm0, %v7958_v57  ;;  %v8127_v57 = vld [vmem:[%s8470_s4 + $0x10] sm:$0xff] }
 0x72e   :  { %5963 = vmatmul.mubr.msk.f32.gmra.mxu0 %vm88_vm0, %v7965_v43  ;;  %v8135_v43 = vld [vmem:[%s8470_s4 + $0x18] sm:$0xff] }
 0x72f   :  { %5965 = vmatprep.mubr.msk.f32.mxu0 %vm88_vm0, %v7972_v13  ;;  %v5980_v13 = vpop.f32.mrf.mxu1 }
 0x732   :  { %5966 = vmatmul.mubr.msk.f32.gmra.mxu0 %vm88_vm0, %v7979_v18  ;;  %v3172_v18 = vpop.f32.mrf.mxu1 }
 0x733   :  { %5968 = vmatprep.mubr.msk.f32.mxu0 %vm88_vm0, %v7986_v46 }
 0x734   :  { %v5983_v46 = vpop.f32.mrf.mxu1 }
 0x736   :  { %5969 = vmatmul.mubr.msk.f32.gmra.mxu0 %vm88_vm0, %v7993_v10  ;;  %v3182_v10 = vpop.f32.mrf.mxu1 }
 0x737   :  { %5971 = vmatprep.mubr.msk.f32.mxu0 %vm88_vm0, %v8000_v0 }
 0x738   :  { %v5986_v0 = vpop.f32.mrf.mxu1 }
 0x73a   :  { %5972 = vmatmul.mubr.msk.f32.gmra.mxu0 %vm88_vm0, %v8007_v53  ;;  %v3192_v53 = vpop.f32.mrf.mxu1 }
 0x73b   :  { %3479 = vmatprep.mubr.f32.mxu0 %v8577_v22 }
 0x73c   :  { %v5989_v4 = vpop.f32.mrf.mxu1 }
 0x73e   :  { %5146 = vmatmul.mubr.msk.f32.vlgmr.msra.gmra.mxu0 %vm88_vm0, %v8104_v52  ;;  %v3202_v48 = vpop.f32.mrf.mxu1 }
 0x73f   :  { %3618 = vmatpush1.msra.mxu0 %v7805_v34  ;;  %3485 = vmatprep.mubr.f32.mxu0 %v8577_v22  ;;  %v8609_v34 = vld [vmem:[#allocation17_spill] sm:$0xff] }
 0x740   :  { %3619 = vmatprep.subr.mxu0 %v8605_v16  ;;  %v5992_v47 = vpop.f32.mrf.mxu1 }
 0x741   :  { %3620 = vmatpush1.msra.mxu0 %v8606_v12 }
 0x742   :  { %3621 = vmatprep.subr.mxu0 %v8607_v1  ;;  %5147 = vmatmul.mubr.msk.f32.gmra.mxu0 %vm88_vm0, %v8116_v40  ;;  %v3212_v7 = vpop.f32.mrf.mxu1 }
 0x743   :  { %3622 = vmatpush1.msra.mxu0 %v8608_v55  ;;  %3491 = vmatprep.mubr.f32.mxu0 %v8577_v22 }
 0x744   :  { %3623 = vmatprep.subr.mxu0 %v8609_v34  ;;  %v5995_v45 = vpop.f32.mrf.mxu1 }
 0x745   :  { %3624 = vmatpush1.msra.mxu0 %v8610_v20 }
 0x746   :  { %5148 = vmatmul.mubr.msk.f32.gmra.mxu0 %vm88_vm0, %v8127_v57  ;;  %v3222_v56 = vpop.f32.mrf.mxu1 }
 0x747   :  { %3497 = vmatprep.mubr.f32.mxu0 %v8577_v22 }
 0x748   :  { %v8152_v37 = vpop.f32.mrf.mxu1 }
 0x74a   :  { %5149 = vmatmul.mubr.msk.f32.gmra.mxu0 %vm88_vm0, %v8135_v43  ;;  %v8154_v8 = vpop.f32.mrf.mxu1 }
 0x74b   :  { %3657 = vmatprep.mubr.f32.mxu0 %v8577_v22 }
 0x74c   :  { %v8157_v5 = vpop.f32.mrf.mxu1 }
 0x74e   :  { %5154 = vmatmul.mubr.msk.f32.vlgmr.msra.gmra.mxu0 %vm88_vm0, %v8104_v52  ;;  %v3242_v16 = vpop.f32.mrf.mxu1 }
 0x74f   :  { %3663 = vmatprep.mubr.f32.mxu0 %v8577_v22 }
 0x752   :  { %5155 = vmatmul.mubr.msk.f32.gmra.mxu0 %vm88_vm0, %v8116_v40 }
 0x753   :  { %3669 = vmatprep.mubr.f32.mxu0 %v8577_v22 }
 0x756   :  { %5156 = vmatmul.mubr.msk.f32.gmra.mxu0 %vm88_vm0, %v8127_v57 }
 0x757   :  { %3675 = vmatprep.mubr.f32.mxu0 %v8577_v22 }
 0x75a   :  { %5157 = vmatmul.mubr.msk.f32.gmra.mxu0 %vm88_vm0, %v8135_v43 }
 0x75b   :  { %3907 = vmatprep.mubr.f32.mxu0 %v8577_v22 }
 0x7de   :  { %v5952_v61 = vpop.f32.mrf.mxu0 }
 0x7df   :  { %v3178_v30 = vadd.f32 %v5980_v13, %v5952_v61 }
 0x7e0   :  { %v3027_v27 = vpop.f32.mrf.mxu0 }
 0x7e1   :  { %v3173_v39 = vadd.f32 %v3172_v18, %v3027_v27  ;;  %v3252_v42 = vadd.f32 %v3178_v30, %v8611_v63 }
 0x7e2   :  { %v5955_v38 = vpop.f32.mrf.mxu0 }
 0x7e3   :  { %v3188_v24 = vadd.f32 %v5983_v46, %v5955_v38  ;;  %v3251_v28 = vadd.f32 %v3173_v39, %v8554_v6  ;;  %v3268_v31 = vmul.f32 0.5, %v3252_v42 }
 0x7e4   :  { %v3037_v3 = vpop.f32.mrf.mxu0 }
 0x7e5   :  { %v3183_v19 = vadd.f32 %v3182_v10, %v3037_v3  ;;  %v3254_v54 = vadd.f32 %v3188_v24, %v8555_v23  ;;  %v3267_v12 = vmul.f32 0.5, %v3251_v28  ;;  %6376 = vtanh.f32 %v3268_v31 }
 0x7e6   :  { %v5958_v58 = vpop.f32.mrf.mxu0 }
 0x7e7   :  { %v3198_v51 = vadd.f32 %v5986_v0, %v5958_v58  ;;  %v3253_v1 = vadd.f32 %v3183_v19, %v8557_v35  ;;  %v3270_v34 = vmul.f32 0.5, %v3254_v54  ;;  %v8165_v0 = vpop.f32.mrf.mxu1 }
 0x7e8   :  { %v3047_v49 = vpop.f32.mrf.mxu0 }
 0x7e9   :  { %v3256_v33 = vadd.f32 %v3198_v51, %v8556_v21  ;;  %v3193_v59 = vadd.f32 %v3192_v53, %v3047_v49  ;;  %v3269_v21 = vmul.f32 0.5, %v3253_v1  ;;  %v8169_v38 = vpop.f32.mrf.mxu1 }
 0x7ea   :  { %v5961_v55 = vpop.f32.mrf.mxu0 }
 0x7eb   :  { %v3284_v20 = vmul.f32 0.5, %v3256_v33  ;;  %v3255_v13 = vadd.f32 %v3193_v59, %v8558_v9  ;;  %v3208_v6 = vadd.f32 %v5989_v4, %v5961_v55 }
 0x7ec   :  { %v3057_v18 = vpop.f32.mrf.mxu0 }
 0x7ed   :  { %6378 = vtanh.f32 %v3284_v20  ;;  %v3283_v23 = vmul.f32 0.5, %v3255_v13  ;;  %v3258_v46 = vadd.f32 %v3208_v6, %v8559_v11  ;;  %v3203_v10 = vadd.f32 %v3202_v48, %v3057_v18  ;;  %v8614_v13 = vld [vmem:[#allocation19_spill] sm:$0xff] }
 0x7ee   :  { %6380 = vtanh.f32 %v3267_v12  ;;  %v5964_v53 = vpop.f32.mrf.mxu0 }
 0x7ef   :  { %6382 = vtanh.f32 %v3270_v34  ;;  %v3286_v35 = vmul.f32 0.5, %v3258_v46  ;;  %v3257_v61 = vadd.f32 %v3203_v10, %v8584_v50  ;;  %v3218_v30 = vadd.f32 %v5992_v47, %v5964_v53  ;;  %v8173_v47 = vpop.f32.mrf.mxu1  ;;  %v8613_v34 = vld [vmem:[#allocation21_spill] sm:$0xff] }
 0x7f0   :  { %6384 = vtanh.f32 %v3283_v23  ;;  %v3067_v9 = vpop.f32.mrf.mxu0 }
 0x7f1   :  { %6386 = vtanh.f32 %v3286_v35  ;;  %v3285_v4 = vmul.f32 0.5, %v3257_v61  ;;  %v3260_v27 = vadd.f32 %v3218_v30, %v8585_v60  ;;  %v3213_v39 = vadd.f32 %v3212_v7, %v3067_v9  ;;  %v8612_v60 = vld [vmem:[#allocation16_spill] sm:$0xff]  ;;  %v8176_v54 = vpop.f32.mrf.mxu1 }
 0x7f2   :  { %6388 = vtanh.f32 %v3269_v21  ;;  %v5967_v11 = vpop.f32.mrf.mxu0  ;;  %v6377_v19 = vpop.eup %6376 }
 0x7f3   :  { %6390 = vtanh.f32 %v3285_v4  ;;  %v3259_v48 = vadd.f32 %v3213_v39, %v8586_v36  ;;  %v3228_v24 = vadd.f32 %v5995_v45, %v5967_v11  ;;  %v3276_v59 = vmul.f32 0.5, %v6377_v19  ;;  %v8181_v55 = vpop.f32.mrf.mxu1 }
 0x7f4   :  { %6392 = vtanh.f32 %v3260_v27  ;;  %v3077_v63 = vpop.f32.mrf.mxu0 }
 0x7f5   :  { %v3262_v50 = vadd.f32 %v3228_v24, %v8587_v17  ;;  %6394 = vtanh.f32 %v3259_v48  ;;  %v3223_v42 = vadd.f32 %v3222_v56, %v3077_v63  ;;  %v3280_v4 = vadd.f32 0.5, %v3276_v59  ;;  %v3584_v11 = vpop.f32.mrf.mxu1 }
 0x7f6   :  { %v5970_v3 = vpop.f32.mrf.mxu0 }
 0x7f7   :  { %6396 = vtanh.f32 %v3262_v50  ;;  %v3261_v7 = vadd.f32 %v3223_v42, %v8612_v60  ;;  %v3238_v36 = vadd.f32 %v8152_v37, %v5970_v3 }
 0x7f8   :  { %v3087_v28 = vpop.f32.mrf.mxu0 }
 0x7f9   :  { %6398 = vtanh.f32 %v3261_v7  ;;  %v3233_v17 = vadd.f32 %v8154_v8, %v3087_v28  ;;  %v3264_v20 = vadd.f32 %v3238_v36, %v8613_v34  ;;  %v8191_v28 = vpop.permute.xlu1 %3395 }
 0x7fa   :  { %v6379_v58 = vpop.eup %6378  ;;  %v5973_v45 = vpop.f32.mrf.mxu0 }
 0x7fb   :  { %v6381_v51 = vpop.eup %6380  ;;  %v3248_v49 = vadd.f32 %v8157_v5, %v5973_v45  ;;  %v3292_v12 = vmul.f32 0.5, %v6379_v58  ;;  %v3263_v53 = vadd.f32 %v3233_v17, %v8582_v26  ;;  %v3304_v24 = vmul.f32 0.5, %v3264_v20  ;;  %v8196_v20 = vpop.permute.xlu0 %3400 }
 0x7fc   :  { %v6383_v31 = vpop.eup %6382  ;;  %v3097_v56 = vpop.f32.mrf.mxu0  ;;  %v3275_v46 = vmul.f32 0.5, %v6381_v51  ;;  %v3585_v45 = vadd.f32 %v3584_v11, %v8191_v28 }
 0x7fd   :  { %v6385_v33 = vpop.eup %6384  ;;  %v3266_v6 = vadd.f32 %v3248_v49, %v8614_v13  ;;  %v3243_v18 = vadd.f32 %v3242_v16, %v3097_v56  ;;  %v3278_v10 = vmul.f32 0.5, %v6383_v31  ;;  %v3296_v27 = vadd.f32 0.5, %v3292_v12  ;;  %v3588_v49 = vpop.f32.mrf.mxu1 }
 0x7fe   :  { %v6387_v1 = vpop.eup %6386  ;;  %v8185_v37 = vpop.f32.mrf.mxu0  ;;  %v3291_v5 = vmul.f32 0.5, %v6385_v33  ;;  %v3279_v3 = vadd.f32 0.5, %v3275_v46  ;;  %v3303_v58 = vmul.f32 0.5, %v3263_v53 }
 0x7ff   :  { %v6389_v23 = vpop.eup %6388  ;;  %v3294_v8 = vmul.f32 0.5, %v6387_v1  ;;  %v3306_v35 = vmul.f32 0.5, %v3266_v6  ;;  %v3265_v61 = vadd.f32 %v3243_v18, %v8583_v29  ;;  %v3282_v60 = vadd.f32 0.5, %v3278_v10  ;;  %v8204_v53 = vpop.permute.xlu0 %3390 }
 0x800   :  { %v6391_v21 = vpop.eup %6390  ;;  %v8189_v30 = vpop.f32.mrf.mxu0  ;;  %v3277_v48 = vmul.f32 0.5, %v6389_v23  ;;  %v3295_v29 = vadd.f32 0.5, %v3291_v5  ;;  %v3320_v51 = vmul.f32 %v3296_v27, %v8031_v32 }
 0x801   :  { %v6393_v9 = vpop.eup %6392  ;;  %v3298_v39 = vadd.f32 0.5, %v3294_v8  ;;  %v3293_v16 = vmul.f32 0.5, %v6391_v21  ;;  %6400 = vtanh.f32 %v3306_v35  ;;  %v3305_v63 = vmul.f32 0.5, %v3265_v61  ;;  %v3590_v5 = vpop.f32.mrf.mxu1 }
 0x802   :  { %v3487_v50 = vpop.f32.mrf.mxu0  ;;  %v6395_v42 = vpop.eup %6394  ;;  %v3324_v26 = vmul.f32 %v6393_v9, %v3280_v4  ;;  %v3281_v56 = vadd.f32 0.5, %v3277_v48  ;;  %v3319_v13 = vmul.f32 %v3295_v29, %v8038_v15  ;;  %v3591_v27 = vadd.f32 %v3590_v5, %v8196_v20 }
 0x803   :  { %v3297_v19 = vadd.f32 0.5, %v3293_v16  ;;  %6402 = vtanh.f32 %v3305_v63  ;;  %v3322_v31 = vmul.f32 %v3298_v39, %v8033_v14  ;;  %v3323_v33 = vmul.f32 %v6395_v42, %v3279_v3  ;;  %v8213_v11 = vpop.permute.xlu1 %3385 }
 0x804   :  { %v6397_v7 = vpop.eup %6396  ;;  %v3489_v36 = vpop.f32.mrf.mxu0  ;;  %6404 = vtanh.f32 %v3304_v24  ;;  %v3328_v34 = vadd.f32 %v3324_v26, %v3320_v51  ;;  %v3589_v14 = vadd.f32 %v3588_v49, %v8196_v20  ;;  %v3488_v48 = vadd.f32 %v3487_v50, %v8204_v53 }
 0x805   :  { %v3326_v17 = vmul.f32 %v6397_v7, %v3282_v60  ;;  %v3321_v6 = vmul.f32 %v3297_v19, %v8040_v44  ;;  %6406 = vtanh.f32 %v3303_v58  ;;  %v3327_v10 = vadd.f32 %v3323_v33, %v3319_v13 }
 0x806   :  { %v3493_v59 = vpop.f32.mrf.mxu0  ;;  %v6399_v12 = vpop.eup %6398  ;;  %6408 = vtanh.f32 %v3585_v45  ;;  %v3490_v4 = vadd.f32 %v3489_v36, %v8204_v53  ;;  %v3484_v24 = vadd.f32 %v8189_v30, %v8213_v11  ;;  %v3482_v60 = vadd.f32 %v8185_v37, %v8213_v11 }
 0x807   :  { %v3330_v1 = vadd.f32 %v3326_v17, %v3322_v31  ;;  %v3325_v18 = vmul.f32 %v6399_v12, %v3281_v56  ;;  %v3494_v35 = vadd.f32 %v3493_v59, %v8191_v28  ;;  %v3583_v26 = vadd.f32 %v8181_v55, %v8191_v28 }
 0x808   :  { %v3495_v32 = vpop.f32.mrf.mxu0  ;;  %v3579_v19 = vadd.f32 %v8176_v54, %v8204_v53  ;;  %v3577_v58 = vadd.f32 %v8173_v47, %v8204_v53  ;;  %v3571_v55 = vadd.f32 %v8165_v0, %v8213_v11  ;;  %v3573_v31 = vadd.f32 %v8169_v38, %v8213_v11 }
 0x809   :  { %6410 = vtanh.f32 %v3330_v1  ;;  %v3329_v46 = vadd.f32 %v3325_v18, %v3321_v6  ;;  %v3496_v15 = vadd.f32 %v3495_v32, %v8191_v28 }
 0x80a   :  { %v3499_v23 = vpop.f32.mrf.mxu0  ;;  %6412 = vtanh.f32 %v3328_v34 }
 0x80b   :  { %v3500_v8 = vadd.f32 %v3499_v23, %v8196_v20  ;;  %6414 = vtanh.f32 %v3329_v46 }
 0x80c   :  { %v3501_v21 = vpop.f32.mrf.mxu0  ;;  %6416 = vtanh.f32 %v3589_v14 }
 0x80d   :  { %v3502_v44 = vadd.f32 %v3501_v21, %v8196_v20  ;;  %6418 = vtanh.f32 %v3327_v10 }
 0x80e   :  { %v8207_v61 = vpop.f32.mrf.mxu0  ;;  %v6401_v9 = vpop.eup %6400 }
 0x80f   :  { %6420 = vtanh.f32 %v3502_v44  ;;  %v3314_v42 = vmul.f32 0.5, %v6401_v9 }
 0x810   :  { %6422 = vtanh.f32 %v3500_v8  ;;  %v8211_v39 = vpop.f32.mrf.mxu0  ;;  %v6403_v16 = vpop.eup %6402 }
 0x811   :  { %6424 = vtanh.f32 %v3496_v15  ;;  %v6405_v3 = vpop.eup %6404  ;;  %v3313_v29 = vmul.f32 0.5, %v6403_v16  ;;  %v3318_v37 = vadd.f32 0.5, %v3314_v42  ;;  %v3662_v9 = vadd.f32 %v8211_v39, %v8213_v11  ;;  %v8265_v16 = vld [vmem:[%s8472_s6 + $0x8] sm:$0xff] }
 0x812   :  { %6426 = vtanh.f32 %v3494_v35  ;;  %v8218_v63 = vpop.f32.mrf.mxu0  ;;  %v6407_v50 = vpop.eup %6406  ;;  %v3312_v45 = vmul.f32 0.5, %v6405_v3 }
 0x813   :  { %6428 = vtanh.f32 %v3490_v4  ;;  %v8226_v30 = vpop.eup %6408  ;;  %v3317_v56 = vadd.f32 0.5, %v3313_v29  ;;  %v3311_v33 = vmul.f32 0.5, %v6407_v50  ;;  %v3666_v44 = vadd.f32 %v8218_v63, %v8204_v53 }
 0x814   :  { %6430 = vtanh.f32 %v3591_v27  ;;  %v3667_v7 = vpop.f32.mrf.mxu0  ;;  %v3316_v34 = vadd.f32 0.5, %v3312_v45  ;;  %v3660_v4 = vadd.f32 %v8207_v61, %v8213_v11 }
 0x815   :  { %6432 = vtanh.f32 %v3488_v48  ;;  %v3315_v18 = vadd.f32 0.5, %v3311_v33  ;;  %v3668_v15 = vadd.f32 %v3667_v7, %v8204_v53 }
 0x816   :  { %6434 = vtanh.f32 %v3484_v24  ;;  %v3671_v36 = vpop.f32.mrf.mxu0  ;;  %v6411_v51 = vpop.eup %6410 }
 0x817   :  { %6436 = vtanh.f32 %v3482_v60  ;;  %v6413_v17 = vpop.eup %6412  ;;  %v3338_v49 = vmul.f32 %v6411_v51, %v3318_v37  ;;  %v3672_v21 = vadd.f32 %v3671_v36, %v8191_v28 }
 0x818   :  { %6438 = vtanh.f32 %v3583_v26  ;;  %v3673_v54 = vpop.f32.mrf.mxu0  ;;  %v6415_v59 = vpop.eup %6414  ;;  %v3336_v6 = vmul.f32 %v6413_v17, %v3316_v34 }
 0x819   :  { %6440 = vtanh.f32 %v3579_v19  ;;  %v6417_v47 = vpop.eup %6416  ;;  %3706 = vmatprep.subr.mxu1 %v3338_v49  ;;  %v3337_v1 = vmul.f32 %v6415_v59, %v3317_v56  ;;  %v3674_v10 = vadd.f32 %v3673_v54, %v8191_v28  ;;  %v8322_v49 = vpop.permute.xlu0 %3828 }
 0x81a   :  { %6442 = vtanh.f32 %v3577_v58  ;;  %v3677_v12 = vpop.f32.mrf.mxu0  ;;  %v6419_v13 = vpop.eup %6418  ;;  %3707 = vmatpush1.msra.mxu1 %v8045_v41 }
 0x81b   :  { %6444 = vtanh.f32 %v3573_v31  ;;  %3708 = vmatprep.subr.mxu1 %v3337_v1  ;;  %v3678_v14 = vadd.f32 %v3677_v12, %v8196_v20  ;;  %v3335_v41 = vmul.f32 %v6419_v13, %v3315_v18 }
 0x81c   :  { %v6421_v0 = vpop.eup %6420  ;;  %6446 = vtanh.f32 %v3571_v55  ;;  %v3679_v38 = vpop.f32.mrf.mxu0  ;;  %3709 = vmatpush1.msra.mxu1 %v8049_v2 }
 0x81d   :  { %v6423_v32 = vpop.eup %6422  ;;  %v3680_v23 = vadd.f32 %v3679_v38, %v8196_v20  ;;  %3867 = vmatprep.subr.mxu0 %v6421_v0  ;;  %3710 = vmatprep.subr.mxu1 %v3336_v6 }
 0x81e   :  { %v6425_v46 = vpop.eup %6424  ;;  %3868 = vmatpush1.msra.mxu0 %v6423_v32  ;;  %3711 = vmatpush1.msra.mxu1 %v8052_v62 }
 0x81f   :  { %v6427_v8 = vpop.eup %6426  ;;  %6448 = vtanh.f32 %v3680_v23  ;;  %3869 = vmatprep.subr.mxu0 %v6425_v46  ;;  %3712 = vmatprep.subr.mxu1 %v3335_v41 }
 0x820   :  { %v6429_v5 = vpop.eup %6428  ;;  %3870 = vmatpush1.msra.mxu0 %v6427_v8  ;;  %6450 = vtanh.f32 %v3678_v14  ;;  %3713 = vmatpush1.msra.mxu1 %v8056_v25  ;;  %v8254_v25 = vld [vmem:[%s8472_s6] sm:$0xff]  ;;  %v8332_v14 = vpop.permute.xlu0 %3818 }
 0x821   :  { %v6431_v2 = vpop.eup %6430  ;;  %3871 = vmatprep.subr.mxu0 %v6429_v5  ;;  %6452 = vtanh.f32 %v3674_v10  ;;  %5158 = vmatmul.mubr.msk.f32.vlgmr.msra.gmra.mxu1 %vm88_vm0, %v8104_v52 }
 0x822   :  { %v6433_v35 = vpop.eup %6432  ;;  %3956 = vmatprep.subr.mxu1 %v6431_v2  ;;  %6454 = vtanh.f32 %v3672_v21  ;;  %3752 = vmatprep.mubr.f32.mxu1 %v8577_v22 }
 0x823   :  { %v6435_v62 = vpop.eup %6434  ;;  %3872 = vmatpush1.msra.mxu0 %v6433_v35  ;;  %3957 = vmatpush1.msra.mxu1 %v6417_v47  ;;  %6456 = vtanh.f32 %v3668_v15  ;;  %v8325_v47 = vpop.permute.xlu1 %3823 }
 0x824   :  { %v6437_v27 = vpop.eup %6436  ;;  %3873 = vmatprep.subr.mxu0 %v6435_v62  ;;  %3958 = vmatprep.subr.mxu1 %v8226_v30  ;;  %6458 = vtanh.f32 %v3666_v44 }
 0x825   :  { %v6439_v39 = vpop.eup %6438  ;;  %3874 = vmatpush1.msra.mxu0 %v6437_v27  ;;  %6460 = vtanh.f32 %v3662_v9  ;;  %5159 = vmatmul.mubr.msk.f32.gmra.mxu1 %vm88_vm0, %v8116_v40  ;;  %v8277_v40 = vld [vmem:[%s8472_s6 + $0x10] sm:$0xff] }
 0x826   :  { %v6441_v52 = vpop.eup %6440  ;;  %3959 = vmatpush1.msra.mxu1 %v6439_v39  ;;  %5162 = vmatmul.mubr.msk.f32.vlgmr.msra.gmra.mxu0 %vm88_vm0, %v8254_v25  ;;  %6462 = vtanh.f32 %v3660_v4 }
 0x827   :  { %v6443_v61 = vpop.eup %6442  ;;  %3960 = vmatprep.subr.mxu1 %v6441_v52  ;;  %3758 = vmatprep.mubr.f32.mxu1 %v8577_v22 }
 0x828   :  { %v6445_v48 = vpop.eup %6444  ;;  %3961 = vmatpush1.msra.mxu1 %v6443_v61  ;;  %3913 = vmatprep.mubr.f32.mxu0 %v8577_v22 }
 0x829   :  { %v6447_v24 = vpop.eup %6446  ;;  %3962 = vmatprep.subr.mxu1 %v6445_v48  ;;  %5160 = vmatmul.mubr.msk.f32.gmra.mxu1 %vm88_vm0, %v8127_v57  ;;  %v8287_v57 = vld [vmem:[%s8472_s6 + $0x18] sm:$0xff] }
 0x82a   :  { %3963 = vmatpush1.msra.mxu1 %v6447_v24  ;;  %5163 = vmatmul.mubr.msk.f32.gmra.mxu0 %vm88_vm0, %v8265_v16 }
 0x82b   :  { %3919 = vmatprep.mubr.f32.mxu0 %v8577_v22  ;;  %3764 = vmatprep.mubr.f32.mxu1 %v8577_v22 }
 0x82c   :  { %v6449_v63 = vpop.eup %6448 }
 0x82d   :  { %4045 = vmatprep.subr.mxu0 %v6449_v63  ;;  %v6451_v42 = vpop.eup %6450  ;;  %5161 = vmatmul.mubr.msk.f32.gmra.mxu1 %vm88_vm0, %v8135_v43 }
 0x82e   :  { %5164 = vmatmul.mubr.msk.f32.gmra.mxu0 %vm88_vm0, %v8277_v40  ;;  %v6453_v3 = vpop.eup %6452  ;;  %3996 = vmatprep.mubr.f32.mxu1 %v8577_v22 }
 0x82f   :  { %4046 = vmatpush1.msra.mxu0 %v6451_v42  ;;  %v6455_v60 = vpop.eup %6454  ;;  %3925 = vmatprep.mubr.f32.mxu0 %v8577_v22 }
 0x830   :  { %4047 = vmatprep.subr.mxu0 %v6453_v3  ;;  %v6457_v26 = vpop.eup %6456 }
 0x831   :  { %4048 = vmatpush1.msra.mxu0 %v6455_v60  ;;  %v6459_v7 = vpop.eup %6458  ;;  %5166 = vmatmul.mubr.msk.f32.vlgmr.msra.gmra.mxu1 %vm88_vm0, %v8254_v25 }
 0x832   :  { %5165 = vmatmul.mubr.msk.f32.gmra.mxu0 %vm88_vm0, %v8287_v57  ;;  %4049 = vmatprep.subr.mxu0 %v6457_v26  ;;  %v6461_v43 = vpop.eup %6460 }
 0x833   :  { %4050 = vmatpush1.msra.mxu0 %v6459_v7  ;;  %v6463_v29 = vpop.eup %6462  ;;  %4002 = vmatprep.mubr.f32.mxu1 %v8577_v22 }
 0x834   :  { %4051 = vmatprep.subr.mxu0 %v6461_v43  ;;  %4085 = vmatprep.mubr.f32.mxu0 %v8577_v22 }
 0x835   :  { %4052 = vmatpush1.msra.mxu0 %v6463_v29  ;;  %5167 = vmatmul.mubr.msk.f32.gmra.mxu1 %vm88_vm0, %v8265_v16 }
 0x836   :  { %5170 = vmatmul.mubr.msk.f32.vlgmr.msra.gmra.mxu0 %vm88_vm0, %v8254_v25  ;;  %6002 = vmatprep.subr.mxu0 %v8577_v22 }
 0x837   :  { %4091 = vmatprep.mubr.f32.mxu0 %v8577_v22  ;;  %4008 = vmatprep.mubr.f32.mxu1 %v8577_v22 }
 0x839   :  { %5168 = vmatmul.mubr.msk.f32.gmra.mxu1 %vm88_vm0, %v8277_v40 }
 0x83a   :  { %5171 = vmatmul.mubr.msk.f32.gmra.mxu0 %vm88_vm0, %v8265_v16  ;;  %4014 = vmatprep.mubr.f32.mxu1 %v8577_v22 }
 0x83b   :  { %4097 = vmatprep.mubr.f32.mxu0 %v8577_v22 }
 0x83d   :  { %5169 = vmatmul.mubr.msk.f32.gmra.mxu1 %vm88_vm0, %v8287_v57 }
 0x83e   :  { %5172 = vmatmul.mubr.msk.f32.gmra.mxu0 %vm88_vm0, %v8277_v40  ;;  %4174 = vmatprep.mubr.f32.mxu1 %v8577_v22 }
 0x83f   :  { %4103 = vmatprep.mubr.f32.mxu0 %v8577_v22 }
 0x842   :  { %5173 = vmatmul.mubr.msk.f32.gmra.mxu0 %vm88_vm0, %v8287_v57 }
 0x843   :  { %6010 = vmatprep.mubr.msk.f32.mxu0 %vm6624_vm2, %v8577_v22 }
 0x8e1   :  { %v3748_v50 = vpop.f32.mrf.mxu1 }
 0x8e2   :  { %v3749_v55 = vadd.f32 %v3748_v50, %v8213_v11 }
 0x8e3   :  { %v3750_v19 = vpop.f32.mrf.mxu1 }
 0x8e4   :  { %6464 = vtanh.f32 %v3749_v55 }
 0x8e5   :  { %v3754_v58 = vpop.f32.mrf.mxu1 }
 0x8e6   :  { %v3909_v30 = vpop.f32.mrf.mxu0  ;;  %v3755_v17 = vadd.f32 %v3754_v58, %v8204_v53 }
 0x8e7   :  { %v3756_v37 = vpop.f32.mrf.mxu1 }
 0x8e8   :  { %v3911_v36 = vpop.f32.mrf.mxu0  ;;  %6466 = vtanh.f32 %v3755_v17  ;;  %v3757_v23 = vadd.f32 %v3756_v37, %v8204_v53 }
 0x8e9   :  { %v3760_v51 = vpop.f32.mrf.mxu1 }
 0x8ea   :  { %v3915_v45 = vpop.f32.mrf.mxu0  ;;  %v3761_v56 = vadd.f32 %v3760_v51, %v8191_v28 }
 0x8eb   :  { %v3762_v54 = vpop.f32.mrf.mxu1  ;;  %v3916_v10 = vadd.f32 %v3915_v45, %v8332_v14 }
 0x8ec   :  { %v3917_v31 = vpop.f32.mrf.mxu0  ;;  %6468 = vtanh.f32 %v3761_v56  ;;  %v3763_v13 = vadd.f32 %v3762_v54, %v8191_v28  ;;  %v8338_v28 = vpop.permute.xlu1 %3813 }
 0x8ed   :  { %v3766_v59 = vpop.f32.mrf.mxu1  ;;  %v3910_v21 = vadd.f32 %v3909_v30, %v8338_v28  ;;  %v3918_v4 = vadd.f32 %v3917_v31, %v8332_v14  ;;  %v3912_v48 = vadd.f32 %v3911_v36, %v8338_v28 }
 0x8ee   :  { %v3921_v33 = vpop.f32.mrf.mxu0  ;;  %v3767_v12 = vadd.f32 %v3766_v59, %v8196_v20 }
 0x8ef   :  { %v3768_v34 = vpop.f32.mrf.mxu1  ;;  %v3922_v6 = vadd.f32 %v3921_v33, %v8325_v47  ;;  %v8373_v33 = vld [vmem:[%s8474_s8] sm:$0x1]  ;;  %s6625_s8 = smov [#allocation4]  }
 0x8f0   :  { %v3923_v1 = vpop.f32.mrf.mxu0  ;;  %v3769_v0 = vadd.f32 %v3768_v34, %v8196_v20  ;;  %6470 = vtanh.f32 %v3767_v12  ;;  %v3751_v20 = vadd.f32 %v3750_v19, %v8213_v11  ;;  %s4868_s9 = sshll.u32 %s6625_s8, 4  ;;  %s4869_s9 = int_to_ptr.vmem [resolvable:$true] %s4868_s9 }
 0x8f1   :  { %v3998_v32 = vpop.f32.mrf.mxu1  ;;  %v3924_v11 = vadd.f32 %v3923_v1, %v8325_v47  ;;  %v6465_v62 = vpop.eup %6464  ;;  %s6600_s21 = scalar_lea.vmem %s4869_s9, 128  ;;  %p6605_p1 = scmp.lt.s32.totalorder %s4869_s9, %s4869_s9 }
 0x8f2   :  { %v3927_v38 = vpop.f32.mrf.mxu0  ;;  %6472 = vtanh.f32 %v3769_v0  ;;  %v3999_v30 = vadd.f32 %v3998_v32, %v8338_v28  ;;  %p6601_p0 = scmp.ne.s32.totalorder %s4869_s9, %s6600_s21  ;;  %p6606_p2 = scmp.lt.s32.totalorder %s6600_s21, %s6600_s21 }
 0x8f3   :  { %v3928_v18 = vadd.f32 %v3927_v38, %v8322_v49  ;;  %v8336_v41 = vpop.f32.mrf.mxu1 }
 0x8f4   :  { %v3929_v46 = vpop.f32.mrf.mxu0  ;;  %v4001_v38 = vadd.f32 %v8336_v41, %v8338_v28  ;;  %p6607_p3 = por %p6606_p2, %p6605_p1 }
 0x8f5   :  { %6474 = vtanh.f32 %v3928_v18  ;;  %v4004_v5 = vpop.f32.mrf.mxu1  ;;  %v3930_v15 = vadd.f32 %v3929_v46, %v8322_v49  ;;  %v6467_v39 = vpop.eup %6466 }
 0x8f6   :  { %6476 = vtanh.f32 %v3763_v13  ;;  %v8341_v8 = vpop.f32.mrf.mxu0  ;;  %v4005_v43 = vadd.f32 %v4004_v5, %v8332_v14  ;;  %p6608_p4 = pnand %p6607_p3, %p6601_p0 }
 0x8f7   :  { %6478 = vtanh.f32 %v3922_v6  ;;  %v8347_v2 = vpop.f32.mrf.mxu1  ;;  %v4088_v1 = vadd.f32 %v8341_v8, %v8338_v28 }
 0x8f8   :  { %6480 = vtanh.f32 %v3757_v23  ;;  %v8344_v53 = vpop.f32.mrf.mxu0 }
 0x8f9   :  { %6482 = vtanh.f32 %v3916_v10  ;;  %v4010_v35 = vpop.f32.mrf.mxu1  ;;  %v6469_v61 = vpop.eup %6468  ;;  %v4090_v41 = vadd.f32 %v8344_v53, %v8338_v28 }
 0x8fa   :  { %6484 = vtanh.f32 %v3751_v20  ;;  %v4093_v44 = vpop.f32.mrf.mxu0  ;;  %v4011_v42 = vadd.f32 %v4010_v35, %v8325_v47 }
 0x8fb   :  { %6486 = vtanh.f32 %v3910_v21  ;;  %v4012_v27 = vpop.f32.mrf.mxu1  ;;  %v4094_v56 = vadd.f32 %v4093_v44, %v8332_v14 }
 0x8fc   :  { %v8350_v9 = vpop.f32.mrf.mxu0  ;;  %6488 = vtanh.f32 %v3930_v15  ;;  %v4013_v59 = vadd.f32 %v4012_v27, %v8325_v47 }
 0x8fd   :  { %6490 = vtanh.f32 %v3924_v11  ;;  %v4016_v24 = vpop.f32.mrf.mxu1  ;;  %v6471_v63 = vpop.eup %6470  ;;  %v4096_v10 = vadd.f32 %v8350_v9, %v8332_v14 }
 0x8fe   :  { %v4099_v52 = vpop.f32.mrf.mxu0  ;;  %v4017_v3 = vadd.f32 %v4016_v24, %v8322_v49  ;;  %6492 = vtanh.f32 %v3918_v4 }
 0x8ff   :  { %v6473_v26 = vpop.eup %6472  ;;  %v4018_v37 = vpop.f32.mrf.mxu1  ;;  %v4100_v31 = vadd.f32 %v4099_v52, %v8325_v47 }
 0x900   :  { %v8356_v60 = vpop.f32.mrf.mxu0  ;;  %6494 = vtanh.f32 %v4017_v3  ;;  %4134 = vmatprep.subr.mxu1 %v6473_v26  ;;  %v4019_v17 = vadd.f32 %v4018_v37, %v8322_v49 }
 0x901   :  { %6496 = vtanh.f32 %v3912_v48  ;;  %4135 = vmatpush1.msra.mxu1 %v6471_v63  ;;  %v4102_v23 = vadd.f32 %v8356_v60, %v8325_v47 }
 0x902   :  { %v6475_v7 = vpop.eup %6474  ;;  %v4105_v50 = vpop.f32.mrf.mxu0  ;;  %6498 = vtanh.f32 %v4011_v42 }
 0x903   :  { %v6477_v29 = vpop.eup %6476  ;;  %6003 = vmatpush3.msra.mxu0 %v6475_v7  ;;  %6500 = vtanh.f32 %v4005_v43  ;;  %v4106_v45 = vadd.f32 %v4105_v50, %v8322_v49 }
 0x904   :  { %v6479_v19 = vpop.eup %6478  ;;  %4136 = vmatprep.subr.mxu1 %v6477_v29  ;;  %6004 = vmatprep.subr.mxu0 %v8577_v22  ;;  %6502 = vtanh.f32 %v3999_v30  ;;  %v4107_v13 = vpop.f32.mrf.mxu0 }
 0x905   :  { %v6481_v58 = vpop.eup %6480  ;;  %4137 = vmatpush1.msra.mxu1 %v6469_v61  ;;  %6005 = vmatpush3.msra.mxu0 %v6479_v19  ;;  %6504 = vtanh.f32 %v4106_v45  ;;  %v4108_v32 = vadd.f32 %v4107_v13, %v8322_v49 }
 0x906   :  { %v6483_v36 = vpop.eup %6482  ;;  %4138 = vmatprep.subr.mxu1 %v6481_v58  ;;  %6006 = vmatprep.subr.mxu0 %v8577_v22  ;;  %6506 = vtanh.f32 %v4100_v31 }
 0x907   :  { %v6485_v51 = vpop.eup %6484  ;;  %4139 = vmatpush1.msra.mxu1 %v6467_v39  ;;  %6007 = vmatpush3.msra.mxu0 %v6483_v36  ;;  %6508 = vtanh.f32 %v4019_v17 }
 0x908   :  { %v6487_v55 = vpop.eup %6486  ;;  %4140 = vmatprep.subr.mxu1 %v6485_v51  ;;  %6008 = vmatprep.subr.mxu0 %v8577_v22  ;;  %6510 = vtanh.f32 %v4094_v56 }
 0x909   :  { %4141 = vmatpush1.msra.mxu1 %v6465_v62  ;;  %6009 = vmatpush3.msra.mxu0 %v6487_v55  ;;  %v6489_v54 = vpop.eup %6488  ;;  %6512 = vtanh.f32 %v4013_v59 }
 0x90a   :  { %5174 = vmatmul.mubr.msk.f32.vlgmr.msra.gmra.mxu1 %vm88_vm0, %v8254_v25  ;;  %6013 = vmatprep.subr.mxu1 %v8577_v22  ;;  %v6491_v12 = vpop.eup %6490  ;;  %v4007_v25 = vadd.f32 %v8347_v2, %v8332_v14  ;;  %6514 = vtanh.f32 %v4088_v1 }
 0x90b   :  { %6014 = vmatpush3.msra.mxu1 %v6489_v54  ;;  %4180 = vmatprep.mubr.f32.mxu1 %v8577_v22  ;;  %v6493_v34 = vpop.eup %6492 }
 0x90c   :  { %6015 = vmatprep.subr.mxu1 %v8577_v22  ;;  %6024 = vmatprep.subr.mxu0 %v8577_v22  ;;  %6516 = vtanh.f32 %v4007_v25 }
 0x90d   :  { %6016 = vmatpush3.msra.mxu1 %v6491_v12  ;;  %6011 = vmatmul.mubr.msk.f32.vlgmr.msra.gmra.mxu0 %vm88_vm0, %v8373_v33  ;;  %v6495_v0 = vpop.eup %6494  ;;  %6518 = vtanh.f32 %v4001_v38 }
 0x90e   :  { %5175 = vmatmul.mubr.msk.f32.gmra.mxu1 %vm88_vm0, %v8265_v16  ;;  %6017 = vmatprep.subr.mxu1 %v8577_v22  ;;  %v6497_v6 = vpop.eup %6496  ;;  %6520 = vtanh.f32 %v4108_v32 }
 0x90f   :  { %6018 = vmatpush3.msra.mxu1 %v6493_v34  ;;  %4186 = vmatprep.mubr.f32.mxu1 %v8577_v22  ;;  %v6499_v18 = vpop.eup %6498  ;;  %6522 = vtanh.f32 %v4102_v23 }
 0x910   :  { %6019 = vmatprep.subr.mxu1 %v8577_v22  ;;  %6025 = vmatpush3.msra.mxu0 %v6495_v0  ;;  %v6501_v16 = vpop.eup %6500  ;;  %6524 = vtanh.f32 %v4096_v10 }
 0x911   :  { %6020 = vmatpush3.msra.mxu1 %v6497_v6  ;;  %6026 = vmatprep.subr.mxu0 %v8577_v22  ;;  %v6503_v46 = vpop.eup %6502  ;;  %6526 = vtanh.f32 %v4090_v41 }
 0x912   :  { %5176 = vmatmul.mubr.msk.f32.gmra.mxu1 %vm88_vm0, %v8277_v40  ;;  %6027 = vmatpush3.msra.mxu0 %v6499_v18  ;;  %v6505_v40 = vpop.eup %6504 }
 0x913   :  { %6028 = vmatprep.subr.mxu0 %v8577_v22  ;;  %4192 = vmatprep.mubr.f32.mxu1 %v8577_v22  ;;  %v6507_v20 = vpop.eup %6506 }
 0x914   :  { %6029 = vmatpush3.msra.mxu0 %v6501_v16  ;;  %6032 = vmatprep.mubr.msk.f32.mxu0 %vm6624_vm2, %v8577_v22 }
 0x915   :  { %6030 = vmatprep.subr.mxu0 %v8577_v22  ;;  %6035 = vmatprep.subr.mxu1 %v8577_v22 }
 0x916   :  { %5177 = vmatmul.mubr.msk.f32.gmra.mxu1 %vm88_vm0, %v8287_v57  ;;  %6031 = vmatpush3.msra.mxu0 %v6503_v46  ;;  %v6509_v57 = vpop.eup %6508 }
 0x917   :  { %6046 = vmatprep.subr.mxu0 %v8577_v22  ;;  %6033 = vmatmul.mubr.msk.f32.vlgmr.msra.gmra.mxu0 %vm88_vm0, %v8373_v33  ;;  %v6511_v8 = vpop.eup %6510 }
 0x918   :  { %6047 = vmatpush3.msra.mxu0 %v6505_v40  ;;  %6021 = vmatprep.mubr.msk.f32.mxu1 %vm6624_vm2, %v8577_v22  ;;  %v6513_v21 = vpop.eup %6512 }
 0x919   :  { %6048 = vmatprep.subr.mxu0 %v8577_v22  ;;  %6054 = vmatprep.mubr.msk.f32.mxu0 %vm6624_vm2, %v8577_v22  ;;  %v6515_v5 = vpop.eup %6514 }
 0x91a   :  { %6022 = vmatmul.mubr.msk.f32.vlgmr.msra.gmra.mxu1 %vm88_vm0, %v8373_v33  ;;  %6049 = vmatpush3.msra.mxu0 %v6507_v20  ;;  %v6517_v53 = vpop.eup %6516 }
 0x91b   :  { %6036 = vmatpush3.msra.mxu1 %v6509_v57  ;;  %6050 = vmatprep.subr.mxu0 %v8577_v22  ;;  %v6519_v15 = vpop.eup %6518 }
 0x91c   :  { %6037 = vmatprep.subr.mxu1 %v8577_v22  ;;  %6051 = vmatpush3.msra.mxu0 %v6511_v8  ;;  %v6521_v2 = vpop.eup %6520  ;;  %v4838_v8 = vpop.permute.xlu0 %4837 }
 0x91d   :  { %6038 = vmatpush3.msra.mxu1 %v6513_v21  ;;  %6052 = vmatprep.subr.mxu0 %v8577_v22  ;;  %v6523_v44 = vpop.eup %6522 }
 0x91e   :  { %6039 = vmatprep.subr.mxu1 %v8577_v22  ;;  %6053 = vmatpush3.msra.mxu0 %v6515_v5  ;;  %v6525_v11 = vpop.eup %6524 }
 0x91f   :  { %6040 = vmatpush3.msra.mxu1 %v6517_v53  ;;  %6043 = vmatprep.mubr.msk.f32.mxu1 %vm6624_vm2, %v8577_v22  ;;  %v6527_v35 = vpop.eup %6526 }
 0x920   :  { %6041 = vmatprep.subr.mxu1 %v8577_v22  ;;  %6068 = vmatprep.subr.mxu0 %v8577_v22 }
 0x921   :  { %6042 = vmatpush3.msra.mxu1 %v6519_v15  ;;  %6055 = vmatmul.mubr.msk.f32.vlgmr.msra.gmra.mxu0 %vm88_vm0, %v8373_v33 }
 0x922   :  { %6057 = vmatprep.subr.mxu1 %v8577_v22  ;;  %6044 = vmatmul.mubr.msk.f32.vlgmr.msra.gmra.mxu1 %vm88_vm0, %v8373_v33 }
 0x923   :  { %6058 = vmatpush3.msra.mxu1 %v6521_v2  ;;  %6065 = vmatprep.mubr.msk.f32.mxu1 %vm6624_vm2, %v8577_v22 }
 0x924   :  { %6059 = vmatprep.subr.mxu1 %v8577_v22  ;;  %6076 = vmatprep.mubr.msk.f32.mxu0 %vm6624_vm2, %v8577_v22 }
 0x925   :  { %6060 = vmatpush3.msra.mxu1 %v6523_v44 }
 0x926   :  { %6061 = vmatprep.subr.mxu1 %v8577_v22 }
 0x927   :  { %6062 = vmatpush3.msra.mxu1 %v6525_v11 }
 0x928   :  { %6063 = vmatprep.subr.mxu1 %v8577_v22 }
 0x929   :  { %6064 = vmatpush3.msra.mxu1 %v6527_v35 }
 0x92a   :  { %6079 = vmatprep.subr.mxu1 %v8577_v22  ;;  %6066 = vmatmul.mubr.msk.f32.vlgmr.msra.gmra.mxu1 %vm88_vm0, %v8373_v33 }
 0x92b   :  { %6087 = vmatprep.mubr.msk.f32.mxu1 %vm6624_vm2, %v8577_v22 }
 0x9ca   :  { %v4176_v9 = vpop.f32.mrf.mxu1 }
 0x9cb   :  { %v4177_v50 = vadd.f32 %v4176_v9, %v8338_v28 }
 0x9cc   :  { %v4178_v62 = vpop.f32.mrf.mxu1 }
 0x9cd   :  { %v4301_v4 = vpop.f32.mrf.mxu0  ;;  %v4179_v45 = vadd.f32 %v4178_v62, %v8338_v28 }
 0x9ce   :  { %v4182_v27 = vpop.f32.mrf.mxu1 }
 0x9cf   :  { %v6012_v39 = vpop.f32.mrf.mxu0  ;;  %v4183_v60 = vadd.f32 %v4182_v27, %v8332_v14 }
 0x9d0   :  { %v4184_v52 = vpop.f32.mrf.mxu1 }
 0x9d1   :  { %v4185_v58 = vadd.f32 %v4184_v52, %v8332_v14 }
 0x9d2   :  { %v4188_v61 = vpop.f32.mrf.mxu1 }
 0x9d3   :  { %v4189_v24 = vadd.f32 %v4188_v61, %v8325_v47 }
 0x9d4   :  { %v4190_v48 = vpop.f32.mrf.mxu1 }
 0x9d5   :  { %v4191_v7 = vadd.f32 %v4190_v48, %v8325_v47 }
 0x9d6   :  { %v4194_v63 = vpop.f32.mrf.mxu1 }
 0x9d7   :  { %v4195_v42 = vadd.f32 %v4194_v63, %v8322_v49  ;;  %v4441_v3 = vpop.f32.mrf.mxu0 }
 0x9d8   :  { %v4196_v26 = vpop.f32.mrf.mxu1  ;;  %v4799_v30 = vrot.slane %v4441_v3, 6 }
 0x9d9   :  { %6528 = vtanh.f32 %v4195_v42  ;;  %v4197_v43 = vadd.f32 %v4196_v26, %v8322_v49  ;;  %v6034_v29 = vpop.f32.mrf.mxu0 }
 0x9da   :  { %6530 = vtanh.f32 %v4189_v24  ;;  %v4371_v19 = vpop.f32.mrf.mxu1 }
 0x9db   :  { %6532 = vtanh.f32 %v4197_v43  ;;  %v4796_v36 = vrot.slane %v4371_v19, 7 }
 0x9dc   :  { %6534 = vtanh.f32 %v4183_v60  ;;  %v6023_v37 = vpop.f32.mrf.mxu1 }
 0x9dd   :  { %6536 = vtanh.f32 %v4191_v7  ;;  %v4817_v47 = vsel %vm4816_vm3, %v4301_v4, %v4796_v36 }
 0x9de   :  { %6538 = vtanh.f32 %v4177_v50  ;;  %v4819_v49 = vsel %vm4818_vm4, %v4817_v47, %v4799_v30 }
 0x9df   :  { %6540 = vtanh.f32 %v4185_v58 }
 0x9e0   :  { %6542 = vtanh.f32 %v4179_v45 }
 0x9e1   :  { %v4581_v51 = vpop.f32.mrf.mxu0 }
 0x9e2   :  { %v4511_v55 = vpop.f32.mrf.mxu1  ;;  %v4805_v31 = vrot.slane %v4581_v51, 4 }
 0x9e3   :  { %v4802_v17 = vrot.slane %v4511_v55, 5  ;;  %v6056_v14 = vpop.f32.mrf.mxu0 }
 0x9e4   :  { %v6045_v54 = vpop.f32.mrf.mxu1 }
 0x9e5   :  { %v4821_v56 = vsel %vm4820_vm5, %v4819_v49, %v4802_v17 }
 0x9e6   :  { %v6529_v59 = vpop.eup %6528  ;;  %v4823_v12 = vsel %vm4822_vm6, %v4821_v56, %v4805_v31 }
 0x9e7   :  { %v6531_v1 = vpop.eup %6530  ;;  %6069 = vmatpush3.msra.mxu0 %v6529_v59 }
 0x9e8   :  { %v6533_v28 = vpop.eup %6532  ;;  %6070 = vmatprep.subr.mxu0 %v8577_v22 }
 0x9e9   :  { %v6535_v25 = vpop.eup %6534  ;;  %6071 = vmatpush3.msra.mxu0 %v6531_v1  ;;  %6080 = vmatpush3.msra.mxu1 %v6533_v28 }
 0x9ea   :  { %v6537_v34 = vpop.eup %6536  ;;  %6072 = vmatprep.subr.mxu0 %v8577_v22  ;;  %6081 = vmatprep.subr.mxu1 %v8577_v22  ;;  %v4651_v13 = vpop.f32.mrf.mxu1 }
 0x9eb   :  { %v6539_v0 = vpop.eup %6538  ;;  %6073 = vmatpush3.msra.mxu0 %v6535_v25  ;;  %6082 = vmatpush3.msra.mxu1 %v6537_v34  ;;  %v4808_v38 = vrot.slane %v4651_v13, 3 }
 0x9ec   :  { %v6541_v6 = vpop.eup %6540  ;;  %6074 = vmatprep.subr.mxu0 %v8577_v22  ;;  %6083 = vmatprep.subr.mxu1 %v8577_v22  ;;  %v6067_v18 = vpop.f32.mrf.mxu1 }
 0x9ed   :  { %6075 = vmatpush3.msra.mxu0 %v6539_v0  ;;  %6084 = vmatpush3.msra.mxu1 %v6541_v6  ;;  %v4825_v32 = vsel %vm4824_vm7, %v4823_v12, %v4808_v38  ;;  %v6543_v16 = vpop.eup %6542 }
 0x9ee   :  { %6085 = vmatprep.subr.mxu1 %v8577_v22  ;;  %6077 = vmatmul.mubr.msk.f32.vlgmr.msra.gmra.mxu0 %vm88_vm0, %v8373_v33 }
 0x9ef   :  { %6086 = vmatpush3.msra.mxu1 %v6543_v16 }
 0x9f0   :  { %6088 = vmatmul.mubr.msk.f32.vlgmr.msra.gmra.mxu1 %vm88_vm0, %v8373_v33 }
 0xaae   :  { %v4721_v23 = vpop.f32.mrf.mxu0 }
 0xaaf   :  { %v4811_v46 = vrot.slane %v4721_v23, 2 }
 0xab0   :  { %v4791_v10 = vpop.f32.mrf.mxu1  ;;  %v6078_v40 = vpop.f32.mrf.mxu0 }
 0xab1   :  { %v4827_v41 = vsel %vm4826_vm8, %v4825_v32, %v4811_v46  ;;  %v4814_v20 = vrot.slane %v4791_v10, 1 }
 0xab2   :  { %v6089_v57 = vpop.f32.mrf.mxu1 }
 0xab3   :  { %v4829_v21 = vsel %vm4828_vm9, %v4827_v41, %v4814_v20 }
 0xab4   :  { %v4840_v5 = vadd.f32 %v4838_v8, %v4829_v21 }
 0xab6   :  { %v4841_v22 = vrot.slane %v4840_v5, 4 }
 0xab8   :  { %v4842_v53 = vmax.f32 %v4840_v5, %v4841_v22 }
 0xaba   :  { %v4843_v15 = vrot.slane %v4842_v53, 2 }
 0xabc   :  { %v4844_v2 = vmax.f32 %v4842_v53, %v4843_v15 }
 0xabe   :  { %v4845_v44 = vrot.slane %v4844_v2, 1 }
 0xac0   :  { %v4846_v11 = vmax.f32 %v4844_v2, %v4845_v44 }
 0xac2   :  { %v4847_v35 = vsub.f32 %v4840_v5, %v4846_v11 }
 0xac4   :  { %v4848_v33 = vmul.f32 1.442695, %v4847_v35 }
 0xac6   :  { %6544 = vpow2.f32 %v4848_v33 }
 0xad3   :  { %v6545_v9 = vpop.eup %6544 }
 0xad4   :  { %v4850_v62 = vrot.slane %v6545_v9, 4 }
 0xad6   :  { %v4851_v4 = vadd.f32 %v6545_v9, %v4850_v62 }
 0xad8   :  { %v4852_v27 = vrot.slane %v4851_v4, 2 }
 0xada   :  { %v4853_v39 = vadd.f32 %v4852_v27, %v4851_v4 }
 0xadc   :  { %v4854_v52 = vrot.slane %v4853_v39, 1 }
 0xade   :  { %v4855_v61 = vadd.f32 %v4854_v52, %v4853_v39 }
 0xae0   :  { %6546 = vrcp.f32 %v4855_v61 }
 0xaed   :  { %v6547_v48 = vpop.eup %6546 }
 0xaee   :  { %v4857_v24 = vmul.f32 %v6547_v48, %v4855_v61 }
 0xaf0   :  { %v4858_v63 = vsub.f32 2.0, %v4857_v24 }
 0xaf2   :  { %v4859_v42 = vmul.f32 %v6547_v48, %v4858_v63 }
 0xaf4   :  { %v4860_v3 = vmul.f32 %v6545_v9, %v4859_v42 }
 0xaf6   :  { %4861 = vst [vmem:[#allocation4] sm:$0xff] %v4860_v3 }
 0xaf7   :  { %6611 = shalt.err (!%p6608_p4)
}
 0xaf8   :  { %4871 = dma.vmem_to_hbm [thread:$0]  %s4869_s9, 128, %s8476_s10, [#allocation5]  }
 0xaf9   :  { %6620 = dma.done.wait [#allocation5], 128  }
 0xafa   :  { %6621 = vsyncadd [#allocation5], 4294967168 }
 0xafb   :  { %4875 = vsyncpa [#allocation5], 1 }

</bundles_post_ra>
